<compile_context>
chip_gen: v5e
topology: v5e:2x2
jax: 0.10.0
libtpu: 0.0.40
codegen_flags: <defaults>
</compile_context>

<pallas_src>
import jax
import jax.numpy as jnp
from jax.experimental import pallas as pl
from jax.experimental.pallas import tpu as pltpu

# ---- hyper-parameters (small, deterministic) --------------------------------
B, L, D = 2, 16, 32          # batch, seq_len, d_model
H = 4                        # heads
DH = D // H                  # head dim
D_FF = 64                    # feed-forward width
MA_K = 5                     # series_decomp moving-average kernel
MA_PAD = (MA_K - 1) // 2
N_LAYERS = 2                 # number of attn_layers
EPS = 1e-5                   # LayerNorm eps
BL = B * L                   # flattened batch*seq rows


def _dot(a, b):
    return jnp.dot(a, b, preferred_element_type=jnp.float32)


def make_ma_matrix():
    """Constant (L, L) averaging matrix: replicate-pad moving average == A @ x."""
    rows = jnp.arange(L)[:, None]                        # (L, 1)
    cols = jnp.arange(L)[None, :]                        # (1, L)
    A = jnp.zeros((L, L), jnp.float32)
    for jj in range(MA_K):
        src = jnp.clip(rows + jj - MA_PAD, 0, L - 1)     # (L, 1)
        A = A + (cols == src).astype(jnp.float32)
    return A * (1.0 / MA_K)


# ---- fused Pallas kernel -----------------------------------------------------
def encoder_kernel(x_ref, ima_ref, mseq_ref, wqkv_ref, bqkv_ref, wo_ref, bo_ref,
                   w1_ref, w2_ref, g_ref, b_ref, o_ref):
    x = x_ref[...]                                       # (B*L, D) f32
    ImA = ima_ref[...]                                   # (B*L, B*L) f32, block-diag (I - movavg)

    for layer in range(N_LAYERS):                        # static layer loop (no HBM round-trip)
        # ---- fused QKV projection (bf16 operands, f32 accumulate); scale
        # already folded into the Q block of wqkv / bqkv at pack time ----
        qkv = _dot(x.astype(jnp.bfloat16), wqkv_ref[layer]) + bqkv_ref[layer]   # (B*L, 3D) f32

        attn_blocks = []
        for b in range(B):                               # static per-sequence attention
            blk = qkv[b * L:(b + 1) * L]                 # (L, 3D), sublane-aligned row slice
            acc = None
            for h in range(H):                           # static head loop
                c = h * DH
                qh = blk[:, c:c + DH].astype(jnp.bfloat16)               # (L, DH)
                kh = blk[:, D + c:D + c + DH].astype(jnp.bfloat16)
                vh = blk[:, 2 * D + c:2 * D + c + DH].astype(jnp.bfloat16)
                # scores = qh @ kh^T (contract head dim, no explicit transpose)
                s = jax.lax.dot_general(qh, kh, (((1,), (1,)), ((), ())),
                                        preferred_element_type=jnp.float32)
                s = s - jnp.max(s, axis=-1, keepdims=True)
                p = jnp.exp(s)
                inv = pl.reciprocal(jnp.sum(p, axis=-1, keepdims=True),
                                    approx=True)          # EUP slot
                oh = _dot(p.astype(jnp.bfloat16), vh) * inv               # (L, DH) f32
                # accumulate through Wo's head row-block directly -> no lane concat
                contrib = _dot(oh.astype(jnp.bfloat16), wo_ref[layer, h])  # (L, D) f32
                acc = contrib if acc is None else acc + contrib
            attn_blocks.append(acc)
        attn_out = jnp.concatenate(attn_blocks, axis=0) + bo_ref[layer]   # (B*L, D)

        # residual + series_decomp fused: x = (I - A)(x + attn_out); kept in f32
        x = _dot(ImA, x + attn_out)

        # FFN: 1x1 conv (D -> D_FF), relu, 1x1 conv (D_FF -> D); bias=False
        y = jnp.maximum(_dot(x.astype(jnp.bfloat16), w1_ref[layer]), 0.0)
        y = _dot(y.astype(jnp.bfloat16), w2_ref[layer])

        # residual + series_decomp fused again
        x = _dot(ImA, x + y)

    # ---- my_Layernorm: LayerNorm over features (f32), then subtract the
    # per-sequence mean via the precomputed kron(I_B, I - 1/L) matrix ----
    mu = jnp.mean(x, axis=-1, keepdims=True)
    var = jnp.mean((x - mu) ** 2, axis=-1, keepdims=True)
    xh = (x - mu) * jax.lax.rsqrt(var + EPS) * g_ref[...] + b_ref[...]
    o_ref[...] = _dot(mseq_ref[...], xh)


# ---- wrapper -----------------------------------------------------------------
def encoder_forward(x, packed):
    x2 = x.reshape(BL, D)
    args = (x2,) + tuple(packed)

    def full_spec(a):
        nd = a.ndim
        return pl.BlockSpec(a.shape, lambda i, _nd=nd: (0,) * _nd)

    out = pl.pallas_call(
        encoder_kernel,
        out_shape=jax.ShapeDtypeStruct((BL, D), jnp.float32),
        grid=(1,),                                   # single grid step over the whole batch
        in_specs=[full_spec(a) for a in args],
        out_specs=pl.BlockSpec((BL, D), lambda i: (0, 0)),
    )(*args)
    return out.reshape(B, L, D)


# ---- deterministic parameter init -------------------------------------------
def init_params(key):
    layers = []
    for _ in range(N_LAYERS):
        key, *ks = jax.random.split(key, 11)

        def w(k, shape, scale):
            return jax.random.normal(k, shape, jnp.float32) * scale

        layers.append(dict(
            wq=w(ks[0], (D, D), 0.1),  bq=w(ks[1], (1, D), 0.05),
            wk=w(ks[2], (D, D), 0.1),  bk=w(ks[3], (1, D), 0.05),
            wv=w(ks[4], (D, D), 0.1),  bv=w(ks[5], (1, D), 0.05),
            wo=w(ks[6], (D, D), 0.1),  bo=w(ks[7], (1, D), 0.05),
            w1=w(ks[8], (D, D_FF), 0.1),
            w2=w(ks[9], (D_FF, D), 0.1),
        ))
    key, k1, k2 = jax.random.split(key, 3)
    gamma = jnp.ones((1, D), jnp.float32) + 0.01 * jax.random.normal(k1, (1, D))
    beta = 0.01 * jax.random.normal(k2, (1, D))
    return layers, gamma, beta


def pack_params(layer_params, gamma, beta):
    """Stack per-layer params; fuse Q|K|V; fold the attention scale; pre-cast
    matmul weights to bf16; build block-diagonal decomp / mean-subtract mats."""
    scale = 1.0 / (DH ** 0.5)
    # fold 1/sqrt(DH) into the Q column block (weights AND bias)
    wqkv = jnp.stack([jnp.concatenate([p["wq"] * scale, p["wk"], p["wv"]], axis=1)
                      for p in layer_params]).astype(jnp.bfloat16)   # (N, D, 3D)
    bqkv = jnp.stack([jnp.concatenate([p["bq"] * scale, p["bk"], p["bv"]], axis=1)
                      for p in layer_params])                        # (N, 1, 3D) f32
    # wo reshaped head-major so the kernel indexes wo[layer, h] -> (DH, D)
    wo = jnp.stack([p["wo"].reshape(H, DH, D) for p in layer_params]
                   ).astype(jnp.bfloat16)                            # (N, H, DH, D)
    bo = jnp.stack([p["bo"] for p in layer_params])                  # (N, 1, D) f32
    w1 = jnp.stack([p["w1"] for p in layer_params]).astype(jnp.bfloat16)
    w2 = jnp.stack([p["w2"] for p in layer_params]).astype(jnp.bfloat16)

    ima = jnp.kron(jnp.eye(B, dtype=jnp.float32),
                   jnp.eye(L, dtype=jnp.float32) - make_ma_matrix())        # (B*L, B*L)
    mseq = jnp.kron(jnp.eye(B, dtype=jnp.float32),
                    jnp.eye(L, dtype=jnp.float32)
                    - jnp.full((L, L), 1.0 / L, jnp.float32))               # (B*L, B*L)
    return (ima, mseq, wqkv, bqkv, wo, bo, w1, w2, gamma, beta)


# ---- pure-JAX reference (mirrors PyTorch semantics, f32) ---------------------
def _moving_avg_ref(x):
    front = jnp.repeat(x[:, :1, :], MA_PAD, axis=1)
    end = jnp.repeat(x[:, -1:, :], MA_PAD, axis=1)
    xp = jnp.concatenate([front, x, end], axis=1)
    return sum(xp[:, j:j + L, :] for j in range(MA_K)) / MA_K


def _encoder_layer_ref(x, p):
    q = (x @ p["wq"] + p["bq"]).reshape(B, L, H, DH)
    k = (x @ p["wk"] + p["bk"]).reshape(B, L, H, DH)
    v = (x @ p["wv"] + p["bv"]).reshape(B, L, H, DH)
    s = jnp.einsum("blhe,bshe->bhls", q, k) / (DH ** 0.5)
    s = s - jnp.max(s, axis=-1, keepdims=True)
    pr = jnp.exp(s)
    pr = pr / jnp.sum(pr, axis=-1, keepdims=True)
    o = jnp.einsum("bhls,bshe->blhe", pr, v).reshape(B, L, D)
    o = o @ p["wo"] + p["bo"]
    x = x + o
    x = x - _moving_avg_ref(x)
    y = jnp.maximum(x @ p["w1"], 0.0) @ p["w2"]
    res = x + y
    return res - _moving_avg_ref(res)


def _norm_ref(x, gamma, beta):
    mu = jnp.mean(x, axis=-1, keepdims=True)
    var = jnp.mean((x - mu) ** 2, axis=-1, keepdims=True)
    xh = (x - mu) * jax.lax.rsqrt(var + EPS) * gamma + beta
    return xh - jnp.mean(xh, axis=1, keepdims=True)


def _encoder_ref(x, layer_params, gamma, beta):
    y = x
    for p in layer_params:
        y = _encoder_layer_ref(y, p)
    return _norm_ref(y, gamma, beta)


# ---- main --------------------------------------------------------------------
if __name__ == "__main__":
    x = jax.random.normal(jax.random.PRNGKey(0), (B, L, D), jnp.float32)
    layer_params, gamma, beta = init_params(jax.random.PRNGKey(42))
    packed = pack_params(layer_params, gamma, beta)

    out = encoder_forward(x, packed)
    out = jax.block_until_ready(out)

    ref = _encoder_ref(x, layer_params, gamma, beta)
    assert out.shape == (B, L, D)
    # tolerance relaxed vs. exact: matmul operands are bf16 (f32 accumulation)
    # and the softmax normalization uses the hardware approx reciprocal; the
    # f32 reference deviates by ~1e-2 on the matmul chain.
    assert jnp.allclose(out, ref, atol=5e-2, rtol=5e-2), \
        float(jnp.max(jnp.abs(out - ref)))

    print("KERNEL_OK")
</pallas_src>

<mosaic_0001>
module attributes {stable_mosaic.version = 11 : i64} {
  func.func @encoder_kernel(%arg0: i32, %arg1: memref<32x32xf32, #tpu.memory_space<vmem>>, %arg2: memref<32x32xf32, #tpu.memory_space<vmem>>, %arg3: memref<32x32xf32, #tpu.memory_space<vmem>>, %arg4: memref<2x32x96xbf16, #tpu.memory_space<vmem>>, %arg5: memref<2x1x96xf32, #tpu.memory_space<vmem>>, %arg6: memref<2x4x8x32xbf16, #tpu.memory_space<vmem>>, %arg7: memref<2x1x32xf32, #tpu.memory_space<vmem>>, %arg8: memref<2x32x64xbf16, #tpu.memory_space<vmem>>, %arg9: memref<2x64x32xbf16, #tpu.memory_space<vmem>>, %arg10: memref<1x32xf32, #tpu.memory_space<vmem>>, %arg11: memref<1x32xf32, #tpu.memory_space<vmem>>, %arg12: memref<32x32xf32, #tpu.memory_space<vmem>>) attributes {dimension_semantics = [#tpu.dimension_semantics<arbitrary>], iteration_bounds = array<i64: 1>, scalar_prefetch = 0 : i64, scratch_operands = 0 : i64, tpu.core_type = #tpu.core_type<tc>, window_params = [{pipeline_mode = #tpu.pipeline_mode<synchronous>, transform_indices = @transform_0, window_bounds = array<i64: 32, 32>}, {pipeline_mode = #tpu.pipeline_mode<synchronous>, transform_indices = @transform_1, window_bounds = array<i64: 32, 32>}, {pipeline_mode = #tpu.pipeline_mode<synchronous>, transform_indices = @transform_2, window_bounds = array<i64: 32, 32>}, {pipeline_mode = #tpu.pipeline_mode<synchronous>, transform_indices = @transform_3, window_bounds = array<i64: 2, 32, 96>}, {pipeline_mode = #tpu.pipeline_mode<synchronous>, transform_indices = @transform_4, window_bounds = array<i64: 2, 1, 96>}, {pipeline_mode = #tpu.pipeline_mode<synchronous>, transform_indices = @transform_5, window_bounds = array<i64: 2, 4, 8, 32>}, {pipeline_mode = #tpu.pipeline_mode<synchronous>, transform_indices = @transform_6, window_bounds = array<i64: 2, 1, 32>}, {pipeline_mode = #tpu.pipeline_mode<synchronous>, transform_indices = @transform_7, window_bounds = array<i64: 2, 32, 64>}, {pipeline_mode = #tpu.pipeline_mode<synchronous>, transform_indices = @transform_8, window_bounds = array<i64: 2, 64, 32>}, {pipeline_mode = #tpu.pipeline_mode<synchronous>, transform_indices = @transform_9, window_bounds = array<i64: 1, 32>}, {pipeline_mode = #tpu.pipeline_mode<synchronous>, transform_indices = @transform_10, window_bounds = array<i64: 1, 32>}, {pipeline_mode = #tpu.pipeline_mode<synchronous>, transform_indices = @transform_11, window_bounds = array<i64: 32, 32>}]} {
    %c0 = arith.constant 0 : index
    %c0_0 = arith.constant 0 : index
    %0 = vector.load %arg1[%c0, %c0_0] : memref<32x32xf32, #tpu.memory_space<vmem>>, vector<32x32xf32>
    %c0_1 = arith.constant 0 : index
    %c0_2 = arith.constant 0 : index
    %1 = vector.load %arg2[%c0_1, %c0_2] : memref<32x32xf32, #tpu.memory_space<vmem>>, vector<32x32xf32>
    %2 = arith.truncf %0 : vector<32x32xf32> to vector<32x32xbf16>
    %c0_3 = arith.constant 0 : index
    %c0_4 = arith.constant 0 : index
    %c0_5 = arith.constant 0 : index
    %3 = vector.load %arg4[%c0_3, %c0_4, %c0_5] : memref<2x32x96xbf16, #tpu.memory_space<vmem>>, vector<1x32x96xbf16>
    %4 = vector.shape_cast %3 : vector<1x32x96xbf16> to vector<32x96xbf16>
    %cst = arith.constant dense<0.000000e+00> : vector<32x96xf32>
    %5 = tpu.matmul %2, %4, %cst {dimension_numbers = #tpu.dot_dimension_numbers<[1], [0], [0], [1], [0, 0, 1, 1], [], []>} : vector<32x32xbf16>, vector<32x96xbf16>, vector<32x96xf32> -> vector<32x96xf32>
    %c0_6 = arith.constant 0 : index
    %c0_7 = arith.constant 0 : index
    %c0_8 = arith.constant 0 : index
    %6 = vector.load %arg5[%c0_6, %c0_7, %c0_8] : memref<2x1x96xf32, #tpu.memory_space<vmem>>, vector<1x1x96xf32>
    %7 = vector.shape_cast %6 : vector<1x1x96xf32> to vector<1x96xf32>
    %8 = vector.broadcast %7 : vector<1x96xf32> to vector<32x96xf32>
    %9 = arith.addf %5, %8 : vector<32x96xf32>
    %10 = vector.extract_strided_slice %9 {offsets = [0, 0], sizes = [16, 96], strides = [1, 1]} : vector<32x96xf32> to vector<16x96xf32>
    %11 = vector.extract_strided_slice %10 {offsets = [0, 0], sizes = [16, 8], strides = [1, 1]} : vector<16x96xf32> to vector<16x8xf32>
    %12 = arith.truncf %11 : vector<16x8xf32> to vector<16x8xbf16>
    %13 = vector.extract_strided_slice %10 {offsets = [0, 32], sizes = [16, 8], strides = [1, 1]} : vector<16x96xf32> to vector<16x8xf32>
    %14 = arith.truncf %13 : vector<16x8xf32> to vector<16x8xbf16>
    %15 = vector.extract_strided_slice %10 {offsets = [0, 64], sizes = [16, 8], strides = [1, 1]} : vector<16x96xf32> to vector<16x8xf32>
    %16 = arith.truncf %15 : vector<16x8xf32> to vector<16x8xbf16>
    %cst_9 = arith.constant dense<0.000000e+00> : vector<16x16xf32>
    %17 = tpu.matmul %12, %14, %cst_9 {dimension_numbers = #tpu.dot_dimension_numbers<[1], [1], [0], [0], [0, 0, 1, 0], [], []>} : vector<16x8xbf16>, vector<16x8xbf16>, vector<16x16xf32> -> vector<16x16xf32>
    %cst_10 = arith.constant dense<0xFF800000> : vector<16xf32>
    %18 = vector.multi_reduction <maximumf>, %17, %cst_10 [1] : vector<16x16xf32> to vector<16xf32>
    %19 = vector.shape_cast %18 : vector<16xf32> to vector<16x1xf32>
    %20 = vector.broadcast %19 : vector<16x1xf32> to vector<16x16xf32>
    %21 = arith.subf %17, %20 : vector<16x16xf32>
    %22 = math.exp %21 : vector<16x16xf32>
    %cst_11 = arith.constant dense<0.000000e+00> : vector<16xf32>
    %23 = vector.multi_reduction <add>, %22, %cst_11 [1] : vector<16x16xf32> to vector<16xf32>
    %24 = vector.shape_cast %23 : vector<16xf32> to vector<16x1xf32>
    %25 = tpu.reciprocal %24 {approx = true} : vector<16x1xf32> -> vector<16x1xf32>
    %26 = arith.truncf %22 : vector<16x16xf32> to vector<16x16xbf16>
    %cst_12 = arith.constant dense<0.000000e+00> : vector<16x8xf32>
    %27 = tpu.matmul %26, %16, %cst_12 {dimension_numbers = #tpu.dot_dimension_numbers<[1], [0], [0], [1], [0, 0, 1, 1], [], []>} : vector<16x16xbf16>, vector<16x8xbf16>, vector<16x8xf32> -> vector<16x8xf32>
    %28 = vector.broadcast %25 : vector<16x1xf32> to vector<16x8xf32>
    %29 = arith.mulf %27, %28 : vector<16x8xf32>
    %30 = arith.truncf %29 : vector<16x8xf32> to vector<16x8xbf16>
    %c0_13 = arith.constant 0 : index
    %c0_14 = arith.constant 0 : index
    %c0_15 = arith.constant 0 : index
    %c0_16 = arith.constant 0 : index
    %31 = vector.load %arg6[%c0_13, %c0_14, %c0_15, %c0_16] : memref<2x4x8x32xbf16, #tpu.memory_space<vmem>>, vector<1x1x8x32xbf16>
    %32 = vector.shape_cast %31 : vector<1x1x8x32xbf16> to vector<8x32xbf16>
    %cst_17 = arith.constant dense<0.000000e+00> : vector<16x32xf32>
    %33 = tpu.matmul %30, %32, %cst_17 {dimension_numbers = #tpu.dot_dimension_numbers<[1], [0], [0], [1], [0, 0, 1, 1], [], []>} : vector<16x8xbf16>, vector<8x32xbf16>, vector<16x32xf32> -> vector<16x32xf32>
    %34 = vector.extract_strided_slice %10 {offsets = [0, 8], sizes = [16, 8], strides = [1, 1]} : vector<16x96xf32> to vector<16x8xf32>
    %35 = arith.truncf %34 : vector<16x8xf32> to vector<16x8xbf16>
    %36 = vector.extract_strided_slice %10 {offsets = [0, 40], sizes = [16, 8], strides = [1, 1]} : vector<16x96xf32> to vector<16x8xf32>
    %37 = arith.truncf %36 : vector<16x8xf32> to vector<16x8xbf16>
    %38 = vector.extract_strided_slice %10 {offsets = [0, 72], sizes = [16, 8], strides = [1, 1]} : vector<16x96xf32> to vector<16x8xf32>
    %39 = arith.truncf %38 : vector<16x8xf32> to vector<16x8xbf16>
    %cst_18 = arith.constant dense<0.000000e+00> : vector<16x16xf32>
    %40 = tpu.matmul %35, %37, %cst_18 {dimension_numbers = #tpu.dot_dimension_numbers<[1], [1], [0], [0], [0, 0, 1, 0], [], []>} : vector<16x8xbf16>, vector<16x8xbf16>, vector<16x16xf32> -> vector<16x16xf32>
    %cst_19 = arith.constant dense<0xFF800000> : vector<16xf32>
    %41 = vector.multi_reduction <maximumf>, %40, %cst_19 [1] : vector<16x16xf32> to vector<16xf32>
    %42 = vector.shape_cast %41 : vector<16xf32> to vector<16x1xf32>
    %43 = vector.broadcast %42 : vector<16x1xf32> to vector<16x16xf32>
    %44 = arith.subf %40, %43 : vector<16x16xf32>
    %45 = math.exp %44 : vector<16x16xf32>
    %cst_20 = arith.constant dense<0.000000e+00> : vector<16xf32>
    %46 = vector.multi_reduction <add>, %45, %cst_20 [1] : vector<16x16xf32> to vector<16xf32>
    %47 = vector.shape_cast %46 : vector<16xf32> to vector<16x1xf32>
    %48 = tpu.reciprocal %47 {approx = true} : vector<16x1xf32> -> vector<16x1xf32>
    %49 = arith.truncf %45 : vector<16x16xf32> to vector<16x16xbf16>
    %cst_21 = arith.constant dense<0.000000e+00> : vector<16x8xf32>
    %50 = tpu.matmul %49, %39, %cst_21 {dimension_numbers = #tpu.dot_dimension_numbers<[1], [0], [0], [1], [0, 0, 1, 1], [], []>} : vector<16x16xbf16>, vector<16x8xbf16>, vector<16x8xf32> -> vector<16x8xf32>
    %51 = vector.broadcast %48 : vector<16x1xf32> to vector<16x8xf32>
    %52 = arith.mulf %50, %51 : vector<16x8xf32>
    %53 = arith.truncf %52 : vector<16x8xf32> to vector<16x8xbf16>
    %c0_22 = arith.constant 0 : index
    %c1 = arith.constant 1 : index
    %c0_23 = arith.constant 0 : index
    %c0_24 = arith.constant 0 : index
    %54 = vector.load %arg6[%c0_22, %c1, %c0_23, %c0_24] : memref<2x4x8x32xbf16, #tpu.memory_space<vmem>>, vector<1x1x8x32xbf16>
    %55 = vector.shape_cast %54 : vector<1x1x8x32xbf16> to vector<8x32xbf16>
    %cst_25 = arith.constant dense<0.000000e+00> : vector<16x32xf32>
    %56 = tpu.matmul %53, %55, %cst_25 {dimension_numbers = #tpu.dot_dimension_numbers<[1], [0], [0], [1], [0, 0, 1, 1], [], []>} : vector<16x8xbf16>, vector<8x32xbf16>, vector<16x32xf32> -> vector<16x32xf32>
    %57 = arith.addf %33, %56 : vector<16x32xf32>
    %58 = vector.extract_strided_slice %10 {offsets = [0, 16], sizes = [16, 8], strides = [1, 1]} : vector<16x96xf32> to vector<16x8xf32>
    %59 = arith.truncf %58 : vector<16x8xf32> to vector<16x8xbf16>
    %60 = vector.extract_strided_slice %10 {offsets = [0, 48], sizes = [16, 8], strides = [1, 1]} : vector<16x96xf32> to vector<16x8xf32>
    %61 = arith.truncf %60 : vector<16x8xf32> to vector<16x8xbf16>
    %62 = vector.extract_strided_slice %10 {offsets = [0, 80], sizes = [16, 8], strides = [1, 1]} : vector<16x96xf32> to vector<16x8xf32>
    %63 = arith.truncf %62 : vector<16x8xf32> to vector<16x8xbf16>
    %cst_26 = arith.constant dense<0.000000e+00> : vector<16x16xf32>
    %64 = tpu.matmul %59, %61, %cst_26 {dimension_numbers = #tpu.dot_dimension_numbers<[1], [1], [0], [0], [0, 0, 1, 0], [], []>} : vector<16x8xbf16>, vector<16x8xbf16>, vector<16x16xf32> -> vector<16x16xf32>
    %cst_27 = arith.constant dense<0xFF800000> : vector<16xf32>
    %65 = vector.multi_reduction <maximumf>, %64, %cst_27 [1] : vector<16x16xf32> to vector<16xf32>
    %66 = vector.shape_cast %65 : vector<16xf32> to vector<16x1xf32>
    %67 = vector.broadcast %66 : vector<16x1xf32> to vector<16x16xf32>
    %68 = arith.subf %64, %67 : vector<16x16xf32>
    %69 = math.exp %68 : vector<16x16xf32>
    %cst_28 = arith.constant dense<0.000000e+00> : vector<16xf32>
    %70 = vector.multi_reduction <add>, %69, %cst_28 [1] : vector<16x16xf32> to vector<16xf32>
    %71 = vector.shape_cast %70 : vector<16xf32> to vector<16x1xf32>
    %72 = tpu.reciprocal %71 {approx = true} : vector<16x1xf32> -> vector<16x1xf32>
    %73 = arith.truncf %69 : vector<16x16xf32> to vector<16x16xbf16>
    %cst_29 = arith.constant dense<0.000000e+00> : vector<16x8xf32>
    %74 = tpu.matmul %73, %63, %cst_29 {dimension_numbers = #tpu.dot_dimension_numbers<[1], [0], [0], [1], [0, 0, 1, 1], [], []>} : vector<16x16xbf16>, vector<16x8xbf16>, vector<16x8xf32> -> vector<16x8xf32>
    %75 = vector.broadcast %72 : vector<16x1xf32> to vector<16x8xf32>
    %76 = arith.mulf %74, %75 : vector<16x8xf32>
    %77 = arith.truncf %76 : vector<16x8xf32> to vector<16x8xbf16>
    %c0_30 = arith.constant 0 : index
    %c2 = arith.constant 2 : index
    %c0_31 = arith.constant 0 : index
    %c0_32 = arith.constant 0 : index
    %78 = vector.load %arg6[%c0_30, %c2, %c0_31, %c0_32] : memref<2x4x8x32xbf16, #tpu.memory_space<vmem>>, vector<1x1x8x32xbf16>
    %79 = vector.shape_cast %78 : vector<1x1x8x32xbf16> to vector<8x32xbf16>
    %cst_33 = arith.constant dense<0.000000e+00> : vector<16x32xf32>
    %80 = tpu.matmul %77, %79, %cst_33 {dimension_numbers = #tpu.dot_dimension_numbers<[1], [0], [0], [1], [0, 0, 1, 1], [], []>} : vector<16x8xbf16>, vector<8x32xbf16>, vector<16x32xf32> -> vector<16x32xf32>
    %81 = arith.addf %57, %80 : vector<16x32xf32>
    %82 = vector.extract_strided_slice %10 {offsets = [0, 24], sizes = [16, 8], strides = [1, 1]} : vector<16x96xf32> to vector<16x8xf32>
    %83 = arith.truncf %82 : vector<16x8xf32> to vector<16x8xbf16>
    %84 = vector.extract_strided_slice %10 {offsets = [0, 56], sizes = [16, 8], strides = [1, 1]} : vector<16x96xf32> to vector<16x8xf32>
    %85 = arith.truncf %84 : vector<16x8xf32> to vector<16x8xbf16>
    %86 = vector.extract_strided_slice %10 {offsets = [0, 88], sizes = [16, 8], strides = [1, 1]} : vector<16x96xf32> to vector<16x8xf32>
    %87 = arith.truncf %86 : vector<16x8xf32> to vector<16x8xbf16>
    %cst_34 = arith.constant dense<0.000000e+00> : vector<16x16xf32>
    %88 = tpu.matmul %83, %85, %cst_34 {dimension_numbers = #tpu.dot_dimension_numbers<[1], [1], [0], [0], [0, 0, 1, 0], [], []>} : vector<16x8xbf16>, vector<16x8xbf16>, vector<16x16xf32> -> vector<16x16xf32>
    %cst_35 = arith.constant dense<0xFF800000> : vector<16xf32>
    %89 = vector.multi_reduction <maximumf>, %88, %cst_35 [1] : vector<16x16xf32> to vector<16xf32>
    %90 = vector.shape_cast %89 : vector<16xf32> to vector<16x1xf32>
    %91 = vector.broadcast %90 : vector<16x1xf32> to vector<16x16xf32>
    %92 = arith.subf %88, %91 : vector<16x16xf32>
    %93 = math.exp %92 : vector<16x16xf32>
    %cst_36 = arith.constant dense<0.000000e+00> : vector<16xf32>
    %94 = vector.multi_reduction <add>, %93, %cst_36 [1] : vector<16x16xf32> to vector<16xf32>
    %95 = vector.shape_cast %94 : vector<16xf32> to vector<16x1xf32>
    %96 = tpu.reciprocal %95 {approx = true} : vector<16x1xf32> -> vector<16x1xf32>
    %97 = arith.truncf %93 : vector<16x16xf32> to vector<16x16xbf16>
    %cst_37 = arith.constant dense<0.000000e+00> : vector<16x8xf32>
    %98 = tpu.matmul %97, %87, %cst_37 {dimension_numbers = #tpu.dot_dimension_numbers<[1], [0], [0], [1], [0, 0, 1, 1], [], []>} : vector<16x16xbf16>, vector<16x8xbf16>, vector<16x8xf32> -> vector<16x8xf32>
    %99 = vector.broadcast %96 : vector<16x1xf32> to vector<16x8xf32>
    %100 = arith.mulf %98, %99 : vector<16x8xf32>
    %101 = arith.truncf %100 : vector<16x8xf32> to vector<16x8xbf16>
    %c0_38 = arith.constant 0 : index
    %c3 = arith.constant 3 : index
    %c0_39 = arith.constant 0 : index
    %c0_40 = arith.constant 0 : index
    %102 = vector.load %arg6[%c0_38, %c3, %c0_39, %c0_40] : memref<2x4x8x32xbf16, #tpu.memory_space<vmem>>, vector<1x1x8x32xbf16>
    %103 = vector.shape_cast %102 : vector<1x1x8x32xbf16> to vector<8x32xbf16>
    %cst_41 = arith.constant dense<0.000000e+00> : vector<16x32xf32>
    %104 = tpu.matmul %101, %103, %cst_41 {dimension_numbers = #tpu.dot_dimension_numbers<[1], [0], [0], [1], [0, 0, 1, 1], [], []>} : vector<16x8xbf16>, vector<8x32xbf16>, vector<16x32xf32> -> vector<16x32xf32>
    %105 = arith.addf %81, %104 : vector<16x32xf32>
    %106 = vector.extract_strided_slice %9 {offsets = [16, 0], sizes = [16, 96], strides = [1, 1]} : vector<32x96xf32> to vector<16x96xf32>
    %107 = vector.extract_strided_slice %106 {offsets = [0, 0], sizes = [16, 8], strides = [1, 1]} : vector<16x96xf32> to vector<16x8xf32>
    %108 = arith.truncf %107 : vector<16x8xf32> to vector<16x8xbf16>
    %109 = vector.extract_strided_slice %106 {offsets = [0, 32], sizes = [16, 8], strides = [1, 1]} : vector<16x96xf32> to vector<16x8xf32>
    %110 = arith.truncf %109 : vector<16x8xf32> to vector<16x8xbf16>
    %111 = vector.extract_strided_slice %106 {offsets = [0, 64], sizes = [16, 8], strides = [1, 1]} : vector<16x96xf32> to vector<16x8xf32>
    %112 = arith.truncf %111 : vector<16x8xf32> to vector<16x8xbf16>
    %cst_42 = arith.constant dense<0.000000e+00> : vector<16x16xf32>
    %113 = tpu.matmul %108, %110, %cst_42 {dimension_numbers = #tpu.dot_dimension_numbers<[1], [1], [0], [0], [0, 0, 1, 0], [], []>} : vector<16x8xbf16>, vector<16x8xbf16>, vector<16x16xf32> -> vector<16x16xf32>
    %cst_43 = arith.constant dense<0xFF800000> : vector<16xf32>
    %114 = vector.multi_reduction <maximumf>, %113, %cst_43 [1] : vector<16x16xf32> to vector<16xf32>
    %115 = vector.shape_cast %114 : vector<16xf32> to vector<16x1xf32>
    %116 = vector.broadcast %115 : vector<16x1xf32> to vector<16x16xf32>
    %117 = arith.subf %113, %116 : vector<16x16xf32>
    %118 = math.exp %117 : vector<16x16xf32>
    %cst_44 = arith.constant dense<0.000000e+00> : vector<16xf32>
    %119 = vector.multi_reduction <add>, %118, %cst_44 [1] : vector<16x16xf32> to vector<16xf32>
    %120 = vector.shape_cast %119 : vector<16xf32> to vector<16x1xf32>
    %121 = tpu.reciprocal %120 {approx = true} : vector<16x1xf32> -> vector<16x1xf32>
    %122 = arith.truncf %118 : vector<16x16xf32> to vector<16x16xbf16>
    %cst_45 = arith.constant dense<0.000000e+00> : vector<16x8xf32>
    %123 = tpu.matmul %122, %112, %cst_45 {dimension_numbers = #tpu.dot_dimension_numbers<[1], [0], [0], [1], [0, 0, 1, 1], [], []>} : vector<16x16xbf16>, vector<16x8xbf16>, vector<16x8xf32> -> vector<16x8xf32>
    %124 = vector.broadcast %121 : vector<16x1xf32> to vector<16x8xf32>
    %125 = arith.mulf %123, %124 : vector<16x8xf32>
    %126 = arith.truncf %125 : vector<16x8xf32> to vector<16x8xbf16>
    %c0_46 = arith.constant 0 : index
    %c0_47 = arith.constant 0 : index
    %c0_48 = arith.constant 0 : index
    %c0_49 = arith.constant 0 : index
    %127 = vector.load %arg6[%c0_46, %c0_47, %c0_48, %c0_49] : memref<2x4x8x32xbf16, #tpu.memory_space<vmem>>, vector<1x1x8x32xbf16>
    %128 = vector.shape_cast %127 : vector<1x1x8x32xbf16> to vector<8x32xbf16>
    %cst_50 = arith.constant dense<0.000000e+00> : vector<16x32xf32>
    %129 = tpu.matmul %126, %128, %cst_50 {dimension_numbers = #tpu.dot_dimension_numbers<[1], [0], [0], [1], [0, 0, 1, 1], [], []>} : vector<16x8xbf16>, vector<8x32xbf16>, vector<16x32xf32> -> vector<16x32xf32>
    %130 = vector.extract_strided_slice %106 {offsets = [0, 8], sizes = [16, 8], strides = [1, 1]} : vector<16x96xf32> to vector<16x8xf32>
    %131 = arith.truncf %130 : vector<16x8xf32> to vector<16x8xbf16>
    %132 = vector.extract_strided_slice %106 {offsets = [0, 40], sizes = [16, 8], strides = [1, 1]} : vector<16x96xf32> to vector<16x8xf32>
    %133 = arith.truncf %132 : vector<16x8xf32> to vector<16x8xbf16>
    %134 = vector.extract_strided_slice %106 {offsets = [0, 72], sizes = [16, 8], strides = [1, 1]} : vector<16x96xf32> to vector<16x8xf32>
    %135 = arith.truncf %134 : vector<16x8xf32> to vector<16x8xbf16>
    %cst_51 = arith.constant dense<0.000000e+00> : vector<16x16xf32>
    %136 = tpu.matmul %131, %133, %cst_51 {dimension_numbers = #tpu.dot_dimension_numbers<[1], [1], [0], [0], [0, 0, 1, 0], [], []>} : vector<16x8xbf16>, vector<16x8xbf16>, vector<16x16xf32> -> vector<16x16xf32>
    %cst_52 = arith.constant dense<0xFF800000> : vector<16xf32>
    %137 = vector.multi_reduction <maximumf>, %136, %cst_52 [1] : vector<16x16xf32> to vector<16xf32>
    %138 = vector.shape_cast %137 : vector<16xf32> to vector<16x1xf32>
    %139 = vector.broadcast %138 : vector<16x1xf32> to vector<16x16xf32>
    %140 = arith.subf %136, %139 : vector<16x16xf32>
    %141 = math.exp %140 : vector<16x16xf32>
    %cst_53 = arith.constant dense<0.000000e+00> : vector<16xf32>
    %142 = vector.multi_reduction <add>, %141, %cst_53 [1] : vector<16x16xf32> to vector<16xf32>
    %143 = vector.shape_cast %142 : vector<16xf32> to vector<16x1xf32>
    %144 = tpu.reciprocal %143 {approx = true} : vector<16x1xf32> -> vector<16x1xf32>
    %145 = arith.truncf %141 : vector<16x16xf32> to vector<16x16xbf16>
    %cst_54 = arith.constant dense<0.000000e+00> : vector<16x8xf32>
    %146 = tpu.matmul %145, %135, %cst_54 {dimension_numbers = #tpu.dot_dimension_numbers<[1], [0], [0], [1], [0, 0, 1, 1], [], []>} : vector<16x16xbf16>, vector<16x8xbf16>, vector<16x8xf32> -> vector<16x8xf32>
    %147 = vector.broadcast %144 : vector<16x1xf32> to vector<16x8xf32>
    %148 = arith.mulf %146, %147 : vector<16x8xf32>
    %149 = arith.truncf %148 : vector<16x8xf32> to vector<16x8xbf16>
    %c0_55 = arith.constant 0 : index
    %c1_56 = arith.constant 1 : index
    %c0_57 = arith.constant 0 : index
    %c0_58 = arith.constant 0 : index
    %150 = vector.load %arg6[%c0_55, %c1_56, %c0_57, %c0_58] : memref<2x4x8x32xbf16, #tpu.memory_space<vmem>>, vector<1x1x8x32xbf16>
    %151 = vector.shape_cast %150 : vector<1x1x8x32xbf16> to vector<8x32xbf16>
    %cst_59 = arith.constant dense<0.000000e+00> : vector<16x32xf32>
    %152 = tpu.matmul %149, %151, %cst_59 {dimension_numbers = #tpu.dot_dimension_numbers<[1], [0], [0], [1], [0, 0, 1, 1], [], []>} : vector<16x8xbf16>, vector<8x32xbf16>, vector<16x32xf32> -> vector<16x32xf32>
    %153 = arith.addf %129, %152 : vector<16x32xf32>
    %154 = vector.extract_strided_slice %106 {offsets = [0, 16], sizes = [16, 8], strides = [1, 1]} : vector<16x96xf32> to vector<16x8xf32>
    %155 = arith.truncf %154 : vector<16x8xf32> to vector<16x8xbf16>
    %156 = vector.extract_strided_slice %106 {offsets = [0, 48], sizes = [16, 8], strides = [1, 1]} : vector<16x96xf32> to vector<16x8xf32>
    %157 = arith.truncf %156 : vector<16x8xf32> to vector<16x8xbf16>
    %158 = vector.extract_strided_slice %106 {offsets = [0, 80], sizes = [16, 8], strides = [1, 1]} : vector<16x96xf32> to vector<16x8xf32>
    %159 = arith.truncf %158 : vector<16x8xf32> to vector<16x8xbf16>
    %cst_60 = arith.constant dense<0.000000e+00> : vector<16x16xf32>
    %160 = tpu.matmul %155, %157, %cst_60 {dimension_numbers = #tpu.dot_dimension_numbers<[1], [1], [0], [0], [0, 0, 1, 0], [], []>} : vector<16x8xbf16>, vector<16x8xbf16>, vector<16x16xf32> -> vector<16x16xf32>
    %cst_61 = arith.constant dense<0xFF800000> : vector<16xf32>
    %161 = vector.multi_reduction <maximumf>, %160, %cst_61 [1] : vector<16x16xf32> to vector<16xf32>
    %162 = vector.shape_cast %161 : vector<16xf32> to vector<16x1xf32>
    %163 = vector.broadcast %162 : vector<16x1xf32> to vector<16x16xf32>
    %164 = arith.subf %160, %163 : vector<16x16xf32>
    %165 = math.exp %164 : vector<16x16xf32>
    %cst_62 = arith.constant dense<0.000000e+00> : vector<16xf32>
    %166 = vector.multi_reduction <add>, %165, %cst_62 [1] : vector<16x16xf32> to vector<16xf32>
    %167 = vector.shape_cast %166 : vector<16xf32> to vector<16x1xf32>
    %168 = tpu.reciprocal %167 {approx = true} : vector<16x1xf32> -> vector<16x1xf32>
    %169 = arith.truncf %165 : vector<16x16xf32> to vector<16x16xbf16>
    %cst_63 = arith.constant dense<0.000000e+00> : vector<16x8xf32>
    %170 = tpu.matmul %169, %159, %cst_63 {dimension_numbers = #tpu.dot_dimension_numbers<[1], [0], [0], [1], [0, 0, 1, 1], [], []>} : vector<16x16xbf16>, vector<16x8xbf16>, vector<16x8xf32> -> vector<16x8xf32>
    %171 = vector.broadcast %168 : vector<16x1xf32> to vector<16x8xf32>
    %172 = arith.mulf %170, %171 : vector<16x8xf32>
    %173 = arith.truncf %172 : vector<16x8xf32> to vector<16x8xbf16>
    %c0_64 = arith.constant 0 : index
    %c2_65 = arith.constant 2 : index
    %c0_66 = arith.constant 0 : index
    %c0_67 = arith.constant 0 : index
    %174 = vector.load %arg6[%c0_64, %c2_65, %c0_66, %c0_67] : memref<2x4x8x32xbf16, #tpu.memory_space<vmem>>, vector<1x1x8x32xbf16>
    %175 = vector.shape_cast %174 : vector<1x1x8x32xbf16> to vector<8x32xbf16>
    %cst_68 = arith.constant dense<0.000000e+00> : vector<16x32xf32>
    %176 = tpu.matmul %173, %175, %cst_68 {dimension_numbers = #tpu.dot_dimension_numbers<[1], [0], [0], [1], [0, 0, 1, 1], [], []>} : vector<16x8xbf16>, vector<8x32xbf16>, vector<16x32xf32> -> vector<16x32xf32>
    %177 = arith.addf %153, %176 : vector<16x32xf32>
    %178 = vector.extract_strided_slice %106 {offsets = [0, 24], sizes = [16, 8], strides = [1, 1]} : vector<16x96xf32> to vector<16x8xf32>
    %179 = arith.truncf %178 : vector<16x8xf32> to vector<16x8xbf16>
    %180 = vector.extract_strided_slice %106 {offsets = [0, 56], sizes = [16, 8], strides = [1, 1]} : vector<16x96xf32> to vector<16x8xf32>
    %181 = arith.truncf %180 : vector<16x8xf32> to vector<16x8xbf16>
    %182 = vector.extract_strided_slice %106 {offsets = [0, 88], sizes = [16, 8], strides = [1, 1]} : vector<16x96xf32> to vector<16x8xf32>
    %183 = arith.truncf %182 : vector<16x8xf32> to vector<16x8xbf16>
    %cst_69 = arith.constant dense<0.000000e+00> : vector<16x16xf32>
    %184 = tpu.matmul %179, %181, %cst_69 {dimension_numbers = #tpu.dot_dimension_numbers<[1], [1], [0], [0], [0, 0, 1, 0], [], []>} : vector<16x8xbf16>, vector<16x8xbf16>, vector<16x16xf32> -> vector<16x16xf32>
    %cst_70 = arith.constant dense<0xFF800000> : vector<16xf32>
    %185 = vector.multi_reduction <maximumf>, %184, %cst_70 [1] : vector<16x16xf32> to vector<16xf32>
    %186 = vector.shape_cast %185 : vector<16xf32> to vector<16x1xf32>
    %187 = vector.broadcast %186 : vector<16x1xf32> to vector<16x16xf32>
    %188 = arith.subf %184, %187 : vector<16x16xf32>
    %189 = math.exp %188 : vector<16x16xf32>
    %cst_71 = arith.constant dense<0.000000e+00> : vector<16xf32>
    %190 = vector.multi_reduction <add>, %189, %cst_71 [1] : vector<16x16xf32> to vector<16xf32>
    %191 = vector.shape_cast %190 : vector<16xf32> to vector<16x1xf32>
    %192 = tpu.reciprocal %191 {approx = true} : vector<16x1xf32> -> vector<16x1xf32>
    %193 = arith.truncf %189 : vector<16x16xf32> to vector<16x16xbf16>
    %cst_72 = arith.constant dense<0.000000e+00> : vector<16x8xf32>
    %194 = tpu.matmul %193, %183, %cst_72 {dimension_numbers = #tpu.dot_dimension_numbers<[1], [0], [0], [1], [0, 0, 1, 1], [], []>} : vector<16x16xbf16>, vector<16x8xbf16>, vector<16x8xf32> -> vector<16x8xf32>
    %195 = vector.broadcast %192 : vector<16x1xf32> to vector<16x8xf32>
    %196 = arith.mulf %194, %195 : vector<16x8xf32>
    %197 = arith.truncf %196 : vector<16x8xf32> to vector<16x8xbf16>
    %c0_73 = arith.constant 0 : index
    %c3_74 = arith.constant 3 : index
    %c0_75 = arith.constant 0 : index
    %c0_76 = arith.constant 0 : index
    %198 = vector.load %arg6[%c0_73, %c3_74, %c0_75, %c0_76] : memref<2x4x8x32xbf16, #tpu.memory_space<vmem>>, vector<1x1x8x32xbf16>
    %199 = vector.shape_cast %198 : vector<1x1x8x32xbf16> to vector<8x32xbf16>
    %cst_77 = arith.constant dense<0.000000e+00> : vector<16x32xf32>
    %200 = tpu.matmul %197, %199, %cst_77 {dimension_numbers = #tpu.dot_dimension_numbers<[1], [0], [0], [1], [0, 0, 1, 1], [], []>} : vector<16x8xbf16>, vector<8x32xbf16>, vector<16x32xf32> -> vector<16x32xf32>
    %201 = arith.addf %177, %200 : vector<16x32xf32>
    %202 = tpu.concatenate %105, %201 in 0 : vector<16x32xf32>, vector<16x32xf32> -> vector<32x32xf32>
    %c0_78 = arith.constant 0 : index
    %c0_79 = arith.constant 0 : index
    %c0_80 = arith.constant 0 : index
    %203 = vector.load %arg7[%c0_78, %c0_79, %c0_80] : memref<2x1x32xf32, #tpu.memory_space<vmem>>, vector<1x1x32xf32>
    %204 = vector.shape_cast %203 : vector<1x1x32xf32> to vector<1x32xf32>
    %205 = vector.broadcast %204 : vector<1x32xf32> to vector<32x32xf32>
    %206 = arith.addf %202, %205 : vector<32x32xf32>
    %207 = arith.addf %0, %206 : vector<32x32xf32>
    %cst_81 = arith.constant dense<0.000000e+00> : vector<32x32xf32>
    %208 = tpu.matmul %1, %207, %cst_81 {dimension_numbers = #tpu.dot_dimension_numbers<[1], [0], [0], [1], [0, 0, 1, 1], [], []>} : vector<32x32xf32>, vector<32x32xf32>, vector<32x32xf32> -> vector<32x32xf32>
    %209 = arith.truncf %208 : vector<32x32xf32> to vector<32x32xbf16>
    %c0_82 = arith.constant 0 : index
    %c0_83 = arith.constant 0 : index
    %c0_84 = arith.constant 0 : index
    %210 = vector.load %arg8[%c0_82, %c0_83, %c0_84] : memref<2x32x64xbf16, #tpu.memory_space<vmem>>, vector<1x32x64xbf16>
    %211 = vector.shape_cast %210 : vector<1x32x64xbf16> to vector<32x64xbf16>
    %cst_85 = arith.constant dense<0.000000e+00> : vector<32x64xf32>
    %212 = tpu.matmul %209, %211, %cst_85 {dimension_numbers = #tpu.dot_dimension_numbers<[1], [0], [0], [1], [0, 0, 1, 1], [], []>} : vector<32x32xbf16>, vector<32x64xbf16>, vector<32x64xf32> -> vector<32x64xf32>
    %cst_86 = arith.constant 0.000000e+00 : f32
    %213 = vector.broadcast %cst_86 : f32 to vector<32x64xf32>
    %214 = arith.maximumf %212, %213 : vector<32x64xf32>
    %215 = arith.truncf %214 : vector<32x64xf32> to vector<32x64xbf16>
    %c0_87 = arith.constant 0 : index
    %c0_88 = arith.constant 0 : index
    %c0_89 = arith.constant 0 : index
    %216 = vector.load %arg9[%c0_87, %c0_88, %c0_89] : memref<2x64x32xbf16, #tpu.memory_space<vmem>>, vector<1x64x32xbf16>
    %217 = vector.shape_cast %216 : vector<1x64x32xbf16> to vector<64x32xbf16>
    %cst_90 = arith.constant dense<0.000000e+00> : vector<32x32xf32>
    %218 = tpu.matmul %215, %217, %cst_90 {dimension_numbers = #tpu.dot_dimension_numbers<[1], [0], [0], [1], [0, 0, 1, 1], [], []>} : vector<32x64xbf16>, vector<64x32xbf16>, vector<32x32xf32> -> vector<32x32xf32>
    %219 = arith.addf %208, %218 : vector<32x32xf32>
    %cst_91 = arith.constant dense<0.000000e+00> : vector<32x32xf32>
    %220 = tpu.matmul %1, %219, %cst_91 {dimension_numbers = #tpu.dot_dimension_numbers<[1], [0], [0], [1], [0, 0, 1, 1], [], []>} : vector<32x32xf32>, vector<32x32xf32>, vector<32x32xf32> -> vector<32x32xf32>
    %221 = arith.truncf %220 : vector<32x32xf32> to vector<32x32xbf16>
    %c1_92 = arith.constant 1 : index
    %c0_93 = arith.constant 0 : index
    %c0_94 = arith.constant 0 : index
    %222 = vector.load %arg4[%c1_92, %c0_93, %c0_94] : memref<2x32x96xbf16, #tpu.memory_space<vmem>>, vector<1x32x96xbf16>
    %223 = vector.shape_cast %222 : vector<1x32x96xbf16> to vector<32x96xbf16>
    %cst_95 = arith.constant dense<0.000000e+00> : vector<32x96xf32>
    %224 = tpu.matmul %221, %223, %cst_95 {dimension_numbers = #tpu.dot_dimension_numbers<[1], [0], [0], [1], [0, 0, 1, 1], [], []>} : vector<32x32xbf16>, vector<32x96xbf16>, vector<32x96xf32> -> vector<32x96xf32>
    %c1_96 = arith.constant 1 : index
    %c0_97 = arith.constant 0 : index
    %c0_98 = arith.constant 0 : index
    %225 = vector.load %arg5[%c1_96, %c0_97, %c0_98] : memref<2x1x96xf32, #tpu.memory_space<vmem>>, vector<1x1x96xf32>
    %226 = vector.shape_cast %225 : vector<1x1x96xf32> to vector<1x96xf32>
    %227 = vector.broadcast %226 : vector<1x96xf32> to vector<32x96xf32>
    %228 = arith.addf %224, %227 : vector<32x96xf32>
    %229 = vector.extract_strided_slice %228 {offsets = [0, 0], sizes = [16, 96], strides = [1, 1]} : vector<32x96xf32> to vector<16x96xf32>
    %230 = vector.extract_strided_slice %229 {offsets = [0, 0], sizes = [16, 8], strides = [1, 1]} : vector<16x96xf32> to vector<16x8xf32>
    %231 = arith.truncf %230 : vector<16x8xf32> to vector<16x8xbf16>
    %232 = vector.extract_strided_slice %229 {offsets = [0, 32], sizes = [16, 8], strides = [1, 1]} : vector<16x96xf32> to vector<16x8xf32>
    %233 = arith.truncf %232 : vector<16x8xf32> to vector<16x8xbf16>
    %234 = vector.extract_strided_slice %229 {offsets = [0, 64], sizes = [16, 8], strides = [1, 1]} : vector<16x96xf32> to vector<16x8xf32>
    %235 = arith.truncf %234 : vector<16x8xf32> to vector<16x8xbf16>
    %cst_99 = arith.constant dense<0.000000e+00> : vector<16x16xf32>
    %236 = tpu.matmul %231, %233, %cst_99 {dimension_numbers = #tpu.dot_dimension_numbers<[1], [1], [0], [0], [0, 0, 1, 0], [], []>} : vector<16x8xbf16>, vector<16x8xbf16>, vector<16x16xf32> -> vector<16x16xf32>
    %cst_100 = arith.constant dense<0xFF800000> : vector<16xf32>
    %237 = vector.multi_reduction <maximumf>, %236, %cst_100 [1] : vector<16x16xf32> to vector<16xf32>
    %238 = vector.shape_cast %237 : vector<16xf32> to vector<16x1xf32>
    %239 = vector.broadcast %238 : vector<16x1xf32> to vector<16x16xf32>
    %240 = arith.subf %236, %239 : vector<16x16xf32>
    %241 = math.exp %240 : vector<16x16xf32>
    %cst_101 = arith.constant dense<0.000000e+00> : vector<16xf32>
    %242 = vector.multi_reduction <add>, %241, %cst_101 [1] : vector<16x16xf32> to vector<16xf32>
    %243 = vector.shape_cast %242 : vector<16xf32> to vector<16x1xf32>
    %244 = tpu.reciprocal %243 {approx = true} : vector<16x1xf32> -> vector<16x1xf32>
    %245 = arith.truncf %241 : vector<16x16xf32> to vector<16x16xbf16>
    %cst_102 = arith.constant dense<0.000000e+00> : vector<16x8xf32>
    %246 = tpu.matmul %245, %235, %cst_102 {dimension_numbers = #tpu.dot_dimension_numbers<[1], [0], [0], [1], [0, 0, 1, 1], [], []>} : vector<16x16xbf16>, vector<16x8xbf16>, vector<16x8xf32> -> vector<16x8xf32>
    %247 = vector.broadcast %244 : vector<16x1xf32> to vector<16x8xf32>
    %248 = arith.mulf %246, %247 : vector<16x8xf32>
    %249 = arith.truncf %248 : vector<16x8xf32> to vector<16x8xbf16>
    %c1_103 = arith.constant 1 : index
    %c0_104 = arith.constant 0 : index
    %c0_105 = arith.constant 0 : index
    %c0_106 = arith.constant 0 : index
    %250 = vector.load %arg6[%c1_103, %c0_104, %c0_105, %c0_106] : memref<2x4x8x32xbf16, #tpu.memory_space<vmem>>, vector<1x1x8x32xbf16>
    %251 = vector.shape_cast %250 : vector<1x1x8x32xbf16> to vector<8x32xbf16>
    %cst_107 = arith.constant dense<0.000000e+00> : vector<16x32xf32>
    %252 = tpu.matmul %249, %251, %cst_107 {dimension_numbers = #tpu.dot_dimension_numbers<[1], [0], [0], [1], [0, 0, 1, 1], [], []>} : vector<16x8xbf16>, vector<8x32xbf16>, vector<16x32xf32> -> vector<16x32xf32>
    %253 = vector.extract_strided_slice %229 {offsets = [0, 8], sizes = [16, 8], strides = [1, 1]} : vector<16x96xf32> to vector<16x8xf32>
    %254 = arith.truncf %253 : vector<16x8xf32> to vector<16x8xbf16>
    %255 = vector.extract_strided_slice %229 {offsets = [0, 40], sizes = [16, 8], strides = [1, 1]} : vector<16x96xf32> to vector<16x8xf32>
    %256 = arith.truncf %255 : vector<16x8xf32> to vector<16x8xbf16>
    %257 = vector.extract_strided_slice %229 {offsets = [0, 72], sizes = [16, 8], strides = [1, 1]} : vector<16x96xf32> to vector<16x8xf32>
    %258 = arith.truncf %257 : vector<16x8xf32> to vector<16x8xbf16>
    %cst_108 = arith.constant dense<0.000000e+00> : vector<16x16xf32>
    %259 = tpu.matmul %254, %256, %cst_108 {dimension_numbers = #tpu.dot_dimension_numbers<[1], [1], [0], [0], [0, 0, 1, 0], [], []>} : vector<16x8xbf16>, vector<16x8xbf16>, vector<16x16xf32> -> vector<16x16xf32>
    %cst_109 = arith.constant dense<0xFF800000> : vector<16xf32>
    %260 = vector.multi_reduction <maximumf>, %259, %cst_109 [1] : vector<16x16xf32> to vector<16xf32>
    %261 = vector.shape_cast %260 : vector<16xf32> to vector<16x1xf32>
    %262 = vector.broadcast %261 : vector<16x1xf32> to vector<16x16xf32>
    %263 = arith.subf %259, %262 : vector<16x16xf32>
    %264 = math.exp %263 : vector<16x16xf32>
    %cst_110 = arith.constant dense<0.000000e+00> : vector<16xf32>
    %265 = vector.multi_reduction <add>, %264, %cst_110 [1] : vector<16x16xf32> to vector<16xf32>
    %266 = vector.shape_cast %265 : vector<16xf32> to vector<16x1xf32>
    %267 = tpu.reciprocal %266 {approx = true} : vector<16x1xf32> -> vector<16x1xf32>
    %268 = arith.truncf %264 : vector<16x16xf32> to vector<16x16xbf16>
    %cst_111 = arith.constant dense<0.000000e+00> : vector<16x8xf32>
    %269 = tpu.matmul %268, %258, %cst_111 {dimension_numbers = #tpu.dot_dimension_numbers<[1], [0], [0], [1], [0, 0, 1, 1], [], []>} : vector<16x16xbf16>, vector<16x8xbf16>, vector<16x8xf32> -> vector<16x8xf32>
    %270 = vector.broadcast %267 : vector<16x1xf32> to vector<16x8xf32>
    %271 = arith.mulf %269, %270 : vector<16x8xf32>
    %272 = arith.truncf %271 : vector<16x8xf32> to vector<16x8xbf16>
    %c1_112 = arith.constant 1 : index
    %c1_113 = arith.constant 1 : index
    %c0_114 = arith.constant 0 : index
    %c0_115 = arith.constant 0 : index
    %273 = vector.load %arg6[%c1_112, %c1_113, %c0_114, %c0_115] : memref<2x4x8x32xbf16, #tpu.memory_space<vmem>>, vector<1x1x8x32xbf16>
    %274 = vector.shape_cast %273 : vector<1x1x8x32xbf16> to vector<8x32xbf16>
    %cst_116 = arith.constant dense<0.000000e+00> : vector<16x32xf32>
    %275 = tpu.matmul %272, %274, %cst_116 {dimension_numbers = #tpu.dot_dimension_numbers<[1], [0], [0], [1], [0, 0, 1, 1], [], []>} : vector<16x8xbf16>, vector<8x32xbf16>, vector<16x32xf32> -> vector<16x32xf32>
    %276 = arith.addf %252, %275 : vector<16x32xf32>
    %277 = vector.extract_strided_slice %229 {offsets = [0, 16], sizes = [16, 8], strides = [1, 1]} : vector<16x96xf32> to vector<16x8xf32>
    %278 = arith.truncf %277 : vector<16x8xf32> to vector<16x8xbf16>
    %279 = vector.extract_strided_slice %229 {offsets = [0, 48], sizes = [16, 8], strides = [1, 1]} : vector<16x96xf32> to vector<16x8xf32>
    %280 = arith.truncf %279 : vector<16x8xf32> to vector<16x8xbf16>
    %281 = vector.extract_strided_slice %229 {offsets = [0, 80], sizes = [16, 8], strides = [1, 1]} : vector<16x96xf32> to vector<16x8xf32>
    %282 = arith.truncf %281 : vector<16x8xf32> to vector<16x8xbf16>
    %cst_117 = arith.constant dense<0.000000e+00> : vector<16x16xf32>
    %283 = tpu.matmul %278, %280, %cst_117 {dimension_numbers = #tpu.dot_dimension_numbers<[1], [1], [0], [0], [0, 0, 1, 0], [], []>} : vector<16x8xbf16>, vector<16x8xbf16>, vector<16x16xf32> -> vector<16x16xf32>
    %cst_118 = arith.constant dense<0xFF800000> : vector<16xf32>
    %284 = vector.multi_reduction <maximumf>, %283, %cst_118 [1] : vector<16x16xf32> to vector<16xf32>
    %285 = vector.shape_cast %284 : vector<16xf32> to vector<16x1xf32>
    %286 = vector.broadcast %285 : vector<16x1xf32> to vector<16x16xf32>
    %287 = arith.subf %283, %286 : vector<16x16xf32>
    %288 = math.exp %287 : vector<16x16xf32>
    %cst_119 = arith.constant dense<0.000000e+00> : vector<16xf32>
    %289 = vector.multi_reduction <add>, %288, %cst_119 [1] : vector<16x16xf32> to vector<16xf32>
    %290 = vector.shape_cast %289 : vector<16xf32> to vector<16x1xf32>
    %291 = tpu.reciprocal %290 {approx = true} : vector<16x1xf32> -> vector<16x1xf32>
    %292 = arith.truncf %288 : vector<16x16xf32> to vector<16x16xbf16>
    %cst_120 = arith.constant dense<0.000000e+00> : vector<16x8xf32>
    %293 = tpu.matmul %292, %282, %cst_120 {dimension_numbers = #tpu.dot_dimension_numbers<[1], [0], [0], [1], [0, 0, 1, 1], [], []>} : vector<16x16xbf16>, vector<16x8xbf16>, vector<16x8xf32> -> vector<16x8xf32>
    %294 = vector.broadcast %291 : vector<16x1xf32> to vector<16x8xf32>
    %295 = arith.mulf %293, %294 : vector<16x8xf32>
    %296 = arith.truncf %295 : vector<16x8xf32> to vector<16x8xbf16>
    %c1_121 = arith.constant 1 : index
    %c2_122 = arith.constant 2 : index
    %c0_123 = arith.constant 0 : index
    %c0_124 = arith.constant 0 : index
    %297 = vector.load %arg6[%c1_121, %c2_122, %c0_123, %c0_124] : memref<2x4x8x32xbf16, #tpu.memory_space<vmem>>, vector<1x1x8x32xbf16>
    %298 = vector.shape_cast %297 : vector<1x1x8x32xbf16> to vector<8x32xbf16>
    %cst_125 = arith.constant dense<0.000000e+00> : vector<16x32xf32>
    %299 = tpu.matmul %296, %298, %cst_125 {dimension_numbers = #tpu.dot_dimension_numbers<[1], [0], [0], [1], [0, 0, 1, 1], [], []>} : vector<16x8xbf16>, vector<8x32xbf16>, vector<16x32xf32> -> vector<16x32xf32>
    %300 = arith.addf %276, %299 : vector<16x32xf32>
    %301 = vector.extract_strided_slice %229 {offsets = [0, 24], sizes = [16, 8], strides = [1, 1]} : vector<16x96xf32> to vector<16x8xf32>
    %302 = arith.truncf %301 : vector<16x8xf32> to vector<16x8xbf16>
    %303 = vector.extract_strided_slice %229 {offsets = [0, 56], sizes = [16, 8], strides = [1, 1]} : vector<16x96xf32> to vector<16x8xf32>
    %304 = arith.truncf %303 : vector<16x8xf32> to vector<16x8xbf16>
    %305 = vector.extract_strided_slice %229 {offsets = [0, 88], sizes = [16, 8], strides = [1, 1]} : vector<16x96xf32> to vector<16x8xf32>
    %306 = arith.truncf %305 : vector<16x8xf32> to vector<16x8xbf16>
    %cst_126 = arith.constant dense<0.000000e+00> : vector<16x16xf32>
    %307 = tpu.matmul %302, %304, %cst_126 {dimension_numbers = #tpu.dot_dimension_numbers<[1], [1], [0], [0], [0, 0, 1, 0], [], []>} : vector<16x8xbf16>, vector<16x8xbf16>, vector<16x16xf32> -> vector<16x16xf32>
    %cst_127 = arith.constant dense<0xFF800000> : vector<16xf32>
    %308 = vector.multi_reduction <maximumf>, %307, %cst_127 [1] : vector<16x16xf32> to vector<16xf32>
    %309 = vector.shape_cast %308 : vector<16xf32> to vector<16x1xf32>
    %310 = vector.broadcast %309 : vector<16x1xf32> to vector<16x16xf32>
    %311 = arith.subf %307, %310 : vector<16x16xf32>
    %312 = math.exp %311 : vector<16x16xf32>
    %cst_128 = arith.constant dense<0.000000e+00> : vector<16xf32>
    %313 = vector.multi_reduction <add>, %312, %cst_128 [1] : vector<16x16xf32> to vector<16xf32>
    %314 = vector.shape_cast %313 : vector<16xf32> to vector<16x1xf32>
    %315 = tpu.reciprocal %314 {approx = true} : vector<16x1xf32> -> vector<16x1xf32>
    %316 = arith.truncf %312 : vector<16x16xf32> to vector<16x16xbf16>
    %cst_129 = arith.constant dense<0.000000e+00> : vector<16x8xf32>
    %317 = tpu.matmul %316, %306, %cst_129 {dimension_numbers = #tpu.dot_dimension_numbers<[1], [0], [0], [1], [0, 0, 1, 1], [], []>} : vector<16x16xbf16>, vector<16x8xbf16>, vector<16x8xf32> -> vector<16x8xf32>
    %318 = vector.broadcast %315 : vector<16x1xf32> to vector<16x8xf32>
    %319 = arith.mulf %317, %318 : vector<16x8xf32>
    %320 = arith.truncf %319 : vector<16x8xf32> to vector<16x8xbf16>
    %c1_130 = arith.constant 1 : index
    %c3_131 = arith.constant 3 : index
    %c0_132 = arith.constant 0 : index
    %c0_133 = arith.constant 0 : index
    %321 = vector.load %arg6[%c1_130, %c3_131, %c0_132, %c0_133] : memref<2x4x8x32xbf16, #tpu.memory_space<vmem>>, vector<1x1x8x32xbf16>
    %322 = vector.shape_cast %321 : vector<1x1x8x32xbf16> to vector<8x32xbf16>
    %cst_134 = arith.constant dense<0.000000e+00> : vector<16x32xf32>
    %323 = tpu.matmul %320, %322, %cst_134 {dimension_numbers = #tpu.dot_dimension_numbers<[1], [0], [0], [1], [0, 0, 1, 1], [], []>} : vector<16x8xbf16>, vector<8x32xbf16>, vector<16x32xf32> -> vector<16x32xf32>
    %324 = arith.addf %300, %323 : vector<16x32xf32>
    %325 = vector.extract_strided_slice %228 {offsets = [16, 0], sizes = [16, 96], strides = [1, 1]} : vector<32x96xf32> to vector<16x96xf32>
    %326 = vector.extract_strided_slice %325 {offsets = [0, 0], sizes = [16, 8], strides = [1, 1]} : vector<16x96xf32> to vector<16x8xf32>
    %327 = arith.truncf %326 : vector<16x8xf32> to vector<16x8xbf16>
    %328 = vector.extract_strided_slice %325 {offsets = [0, 32], sizes = [16, 8], strides = [1, 1]} : vector<16x96xf32> to vector<16x8xf32>
    %329 = arith.truncf %328 : vector<16x8xf32> to vector<16x8xbf16>
    %330 = vector.extract_strided_slice %325 {offsets = [0, 64], sizes = [16, 8], strides = [1, 1]} : vector<16x96xf32> to vector<16x8xf32>
    %331 = arith.truncf %330 : vector<16x8xf32> to vector<16x8xbf16>
    %cst_135 = arith.constant dense<0.000000e+00> : vector<16x16xf32>
    %332 = tpu.matmul %327, %329, %cst_135 {dimension_numbers = #tpu.dot_dimension_numbers<[1], [1], [0], [0], [0, 0, 1, 0], [], []>} : vector<16x8xbf16>, vector<16x8xbf16>, vector<16x16xf32> -> vector<16x16xf32>
    %cst_136 = arith.constant dense<0xFF800000> : vector<16xf32>
    %333 = vector.multi_reduction <maximumf>, %332, %cst_136 [1] : vector<16x16xf32> to vector<16xf32>
    %334 = vector.shape_cast %333 : vector<16xf32> to vector<16x1xf32>
    %335 = vector.broadcast %334 : vector<16x1xf32> to vector<16x16xf32>
    %336 = arith.subf %332, %335 : vector<16x16xf32>
    %337 = math.exp %336 : vector<16x16xf32>
    %cst_137 = arith.constant dense<0.000000e+00> : vector<16xf32>
    %338 = vector.multi_reduction <add>, %337, %cst_137 [1] : vector<16x16xf32> to vector<16xf32>
    %339 = vector.shape_cast %338 : vector<16xf32> to vector<16x1xf32>
    %340 = tpu.reciprocal %339 {approx = true} : vector<16x1xf32> -> vector<16x1xf32>
    %341 = arith.truncf %337 : vector<16x16xf32> to vector<16x16xbf16>
    %cst_138 = arith.constant dense<0.000000e+00> : vector<16x8xf32>
    %342 = tpu.matmul %341, %331, %cst_138 {dimension_numbers = #tpu.dot_dimension_numbers<[1], [0], [0], [1], [0, 0, 1, 1], [], []>} : vector<16x16xbf16>, vector<16x8xbf16>, vector<16x8xf32> -> vector<16x8xf32>
    %343 = vector.broadcast %340 : vector<16x1xf32> to vector<16x8xf32>
    %344 = arith.mulf %342, %343 : vector<16x8xf32>
    %345 = arith.truncf %344 : vector<16x8xf32> to vector<16x8xbf16>
    %c1_139 = arith.constant 1 : index
    %c0_140 = arith.constant 0 : index
    %c0_141 = arith.constant 0 : index
    %c0_142 = arith.constant 0 : index
    %346 = vector.load %arg6[%c1_139, %c0_140, %c0_141, %c0_142] : memref<2x4x8x32xbf16, #tpu.memory_space<vmem>>, vector<1x1x8x32xbf16>
    %347 = vector.shape_cast %346 : vector<1x1x8x32xbf16> to vector<8x32xbf16>
    %cst_143 = arith.constant dense<0.000000e+00> : vector<16x32xf32>
    %348 = tpu.matmul %345, %347, %cst_143 {dimension_numbers = #tpu.dot_dimension_numbers<[1], [0], [0], [1], [0, 0, 1, 1], [], []>} : vector<16x8xbf16>, vector<8x32xbf16>, vector<16x32xf32> -> vector<16x32xf32>
    %349 = vector.extract_strided_slice %325 {offsets = [0, 8], sizes = [16, 8], strides = [1, 1]} : vector<16x96xf32> to vector<16x8xf32>
    %350 = arith.truncf %349 : vector<16x8xf32> to vector<16x8xbf16>
    %351 = vector.extract_strided_slice %325 {offsets = [0, 40], sizes = [16, 8], strides = [1, 1]} : vector<16x96xf32> to vector<16x8xf32>
    %352 = arith.truncf %351 : vector<16x8xf32> to vector<16x8xbf16>
    %353 = vector.extract_strided_slice %325 {offsets = [0, 72], sizes = [16, 8], strides = [1, 1]} : vector<16x96xf32> to vector<16x8xf32>
    %354 = arith.truncf %353 : vector<16x8xf32> to vector<16x8xbf16>
    %cst_144 = arith.constant dense<0.000000e+00> : vector<16x16xf32>
    %355 = tpu.matmul %350, %352, %cst_144 {dimension_numbers = #tpu.dot_dimension_numbers<[1], [1], [0], [0], [0, 0, 1, 0], [], []>} : vector<16x8xbf16>, vector<16x8xbf16>, vector<16x16xf32> -> vector<16x16xf32>
    %cst_145 = arith.constant dense<0xFF800000> : vector<16xf32>
    %356 = vector.multi_reduction <maximumf>, %355, %cst_145 [1] : vector<16x16xf32> to vector<16xf32>
    %357 = vector.shape_cast %356 : vector<16xf32> to vector<16x1xf32>
    %358 = vector.broadcast %357 : vector<16x1xf32> to vector<16x16xf32>
    %359 = arith.subf %355, %358 : vector<16x16xf32>
    %360 = math.exp %359 : vector<16x16xf32>
    %cst_146 = arith.constant dense<0.000000e+00> : vector<16xf32>
    %361 = vector.multi_reduction <add>, %360, %cst_146 [1] : vector<16x16xf32> to vector<16xf32>
    %362 = vector.shape_cast %361 : vector<16xf32> to vector<16x1xf32>
    %363 = tpu.reciprocal %362 {approx = true} : vector<16x1xf32> -> vector<16x1xf32>
    %364 = arith.truncf %360 : vector<16x16xf32> to vector<16x16xbf16>
    %cst_147 = arith.constant dense<0.000000e+00> : vector<16x8xf32>
    %365 = tpu.matmul %364, %354, %cst_147 {dimension_numbers = #tpu.dot_dimension_numbers<[1], [0], [0], [1], [0, 0, 1, 1], [], []>} : vector<16x16xbf16>, vector<16x8xbf16>, vector<16x8xf32> -> vector<16x8xf32>
    %366 = vector.broadcast %363 : vector<16x1xf32> to vector<16x8xf32>
    %367 = arith.mulf %365, %366 : vector<16x8xf32>
    %368 = arith.truncf %367 : vector<16x8xf32> to vector<16x8xbf16>
    %c1_148 = arith.constant 1 : index
    %c1_149 = arith.constant 1 : index
    %c0_150 = arith.constant 0 : index
    %c0_151 = arith.constant 0 : index
    %369 = vector.load %arg6[%c1_148, %c1_149, %c0_150, %c0_151] : memref<2x4x8x32xbf16, #tpu.memory_space<vmem>>, vector<1x1x8x32xbf16>
    %370 = vector.shape_cast %369 : vector<1x1x8x32xbf16> to vector<8x32xbf16>
    %cst_152 = arith.constant dense<0.000000e+00> : vector<16x32xf32>
    %371 = tpu.matmul %368, %370, %cst_152 {dimension_numbers = #tpu.dot_dimension_numbers<[1], [0], [0], [1], [0, 0, 1, 1], [], []>} : vector<16x8xbf16>, vector<8x32xbf16>, vector<16x32xf32> -> vector<16x32xf32>
    %372 = arith.addf %348, %371 : vector<16x32xf32>
    %373 = vector.extract_strided_slice %325 {offsets = [0, 16], sizes = [16, 8], strides = [1, 1]} : vector<16x96xf32> to vector<16x8xf32>
    %374 = arith.truncf %373 : vector<16x8xf32> to vector<16x8xbf16>
    %375 = vector.extract_strided_slice %325 {offsets = [0, 48], sizes = [16, 8], strides = [1, 1]} : vector<16x96xf32> to vector<16x8xf32>
    %376 = arith.truncf %375 : vector<16x8xf32> to vector<16x8xbf16>
    %377 = vector.extract_strided_slice %325 {offsets = [0, 80], sizes = [16, 8], strides = [1, 1]} : vector<16x96xf32> to vector<16x8xf32>
    %378 = arith.truncf %377 : vector<16x8xf32> to vector<16x8xbf16>
    %cst_153 = arith.constant dense<0.000000e+00> : vector<16x16xf32>
    %379 = tpu.matmul %374, %376, %cst_153 {dimension_numbers = #tpu.dot_dimension_numbers<[1], [1], [0], [0], [0, 0, 1, 0], [], []>} : vector<16x8xbf16>, vector<16x8xbf16>, vector<16x16xf32> -> vector<16x16xf32>
    %cst_154 = arith.constant dense<0xFF800000> : vector<16xf32>
    %380 = vector.multi_reduction <maximumf>, %379, %cst_154 [1] : vector<16x16xf32> to vector<16xf32>
    %381 = vector.shape_cast %380 : vector<16xf32> to vector<16x1xf32>
    %382 = vector.broadcast %381 : vector<16x1xf32> to vector<16x16xf32>
    %383 = arith.subf %379, %382 : vector<16x16xf32>
    %384 = math.exp %383 : vector<16x16xf32>
    %cst_155 = arith.constant dense<0.000000e+00> : vector<16xf32>
    %385 = vector.multi_reduction <add>, %384, %cst_155 [1] : vector<16x16xf32> to vector<16xf32>
    %386 = vector.shape_cast %385 : vector<16xf32> to vector<16x1xf32>
    %387 = tpu.reciprocal %386 {approx = true} : vector<16x1xf32> -> vector<16x1xf32>
    %388 = arith.truncf %384 : vector<16x16xf32> to vector<16x16xbf16>
    %cst_156 = arith.constant dense<0.000000e+00> : vector<16x8xf32>
    %389 = tpu.matmul %388, %378, %cst_156 {dimension_numbers = #tpu.dot_dimension_numbers<[1], [0], [0], [1], [0, 0, 1, 1], [], []>} : vector<16x16xbf16>, vector<16x8xbf16>, vector<16x8xf32> -> vector<16x8xf32>
    %390 = vector.broadcast %387 : vector<16x1xf32> to vector<16x8xf32>
    %391 = arith.mulf %389, %390 : vector<16x8xf32>
    %392 = arith.truncf %391 : vector<16x8xf32> to vector<16x8xbf16>
    %c1_157 = arith.constant 1 : index
    %c2_158 = arith.constant 2 : index
    %c0_159 = arith.constant 0 : index
    %c0_160 = arith.constant 0 : index
    %393 = vector.load %arg6[%c1_157, %c2_158, %c0_159, %c0_160] : memref<2x4x8x32xbf16, #tpu.memory_space<vmem>>, vector<1x1x8x32xbf16>
    %394 = vector.shape_cast %393 : vector<1x1x8x32xbf16> to vector<8x32xbf16>
    %cst_161 = arith.constant dense<0.000000e+00> : vector<16x32xf32>
    %395 = tpu.matmul %392, %394, %cst_161 {dimension_numbers = #tpu.dot_dimension_numbers<[1], [0], [0], [1], [0, 0, 1, 1], [], []>} : vector<16x8xbf16>, vector<8x32xbf16>, vector<16x32xf32> -> vector<16x32xf32>
    %396 = arith.addf %372, %395 : vector<16x32xf32>
    %397 = vector.extract_strided_slice %325 {offsets = [0, 24], sizes = [16, 8], strides = [1, 1]} : vector<16x96xf32> to vector<16x8xf32>
    %398 = arith.truncf %397 : vector<16x8xf32> to vector<16x8xbf16>
    %399 = vector.extract_strided_slice %325 {offsets = [0, 56], sizes = [16, 8], strides = [1, 1]} : vector<16x96xf32> to vector<16x8xf32>
    %400 = arith.truncf %399 : vector<16x8xf32> to vector<16x8xbf16>
    %401 = vector.extract_strided_slice %325 {offsets = [0, 88], sizes = [16, 8], strides = [1, 1]} : vector<16x96xf32> to vector<16x8xf32>
    %402 = arith.truncf %401 : vector<16x8xf32> to vector<16x8xbf16>
    %cst_162 = arith.constant dense<0.000000e+00> : vector<16x16xf32>
    %403 = tpu.matmul %398, %400, %cst_162 {dimension_numbers = #tpu.dot_dimension_numbers<[1], [1], [0], [0], [0, 0, 1, 0], [], []>} : vector<16x8xbf16>, vector<16x8xbf16>, vector<16x16xf32> -> vector<16x16xf32>
    %cst_163 = arith.constant dense<0xFF800000> : vector<16xf32>
    %404 = vector.multi_reduction <maximumf>, %403, %cst_163 [1] : vector<16x16xf32> to vector<16xf32>
    %405 = vector.shape_cast %404 : vector<16xf32> to vector<16x1xf32>
    %406 = vector.broadcast %405 : vector<16x1xf32> to vector<16x16xf32>
    %407 = arith.subf %403, %406 : vector<16x16xf32>
    %408 = math.exp %407 : vector<16x16xf32>
    %cst_164 = arith.constant dense<0.000000e+00> : vector<16xf32>
    %409 = vector.multi_reduction <add>, %408, %cst_164 [1] : vector<16x16xf32> to vector<16xf32>
    %410 = vector.shape_cast %409 : vector<16xf32> to vector<16x1xf32>
    %411 = tpu.reciprocal %410 {approx = true} : vector<16x1xf32> -> vector<16x1xf32>
    %412 = arith.truncf %408 : vector<16x16xf32> to vector<16x16xbf16>
    %cst_165 = arith.constant dense<0.000000e+00> : vector<16x8xf32>
    %413 = tpu.matmul %412, %402, %cst_165 {dimension_numbers = #tpu.dot_dimension_numbers<[1], [0], [0], [1], [0, 0, 1, 1], [], []>} : vector<16x16xbf16>, vector<16x8xbf16>, vector<16x8xf32> -> vector<16x8xf32>
    %414 = vector.broadcast %411 : vector<16x1xf32> to vector<16x8xf32>
    %415 = arith.mulf %413, %414 : vector<16x8xf32>
    %416 = arith.truncf %415 : vector<16x8xf32> to vector<16x8xbf16>
    %c1_166 = arith.constant 1 : index
    %c3_167 = arith.constant 3 : index
    %c0_168 = arith.constant 0 : index
    %c0_169 = arith.constant 0 : index
    %417 = vector.load %arg6[%c1_166, %c3_167, %c0_168, %c0_169] : memref<2x4x8x32xbf16, #tpu.memory_space<vmem>>, vector<1x1x8x32xbf16>
    %418 = vector.shape_cast %417 : vector<1x1x8x32xbf16> to vector<8x32xbf16>
    %cst_170 = arith.constant dense<0.000000e+00> : vector<16x32xf32>
    %419 = tpu.matmul %416, %418, %cst_170 {dimension_numbers = #tpu.dot_dimension_numbers<[1], [0], [0], [1], [0, 0, 1, 1], [], []>} : vector<16x8xbf16>, vector<8x32xbf16>, vector<16x32xf32> -> vector<16x32xf32>
    %420 = arith.addf %396, %419 : vector<16x32xf32>
    %421 = tpu.concatenate %324, %420 in 0 : vector<16x32xf32>, vector<16x32xf32> -> vector<32x32xf32>
    %c1_171 = arith.constant 1 : index
    %c0_172 = arith.constant 0 : index
    %c0_173 = arith.constant 0 : index
    %422 = vector.load %arg7[%c1_171, %c0_172, %c0_173] : memref<2x1x32xf32, #tpu.memory_space<vmem>>, vector<1x1x32xf32>
    %423 = vector.shape_cast %422 : vector<1x1x32xf32> to vector<1x32xf32>
    %424 = vector.broadcast %423 : vector<1x32xf32> to vector<32x32xf32>
    %425 = arith.addf %421, %424 : vector<32x32xf32>
    %426 = arith.addf %220, %425 : vector<32x32xf32>
    %cst_174 = arith.constant dense<0.000000e+00> : vector<32x32xf32>
    %427 = tpu.matmul %1, %426, %cst_174 {dimension_numbers = #tpu.dot_dimension_numbers<[1], [0], [0], [1], [0, 0, 1, 1], [], []>} : vector<32x32xf32>, vector<32x32xf32>, vector<32x32xf32> -> vector<32x32xf32>
    %428 = arith.truncf %427 : vector<32x32xf32> to vector<32x32xbf16>
    %c1_175 = arith.constant 1 : index
    %c0_176 = arith.constant 0 : index
    %c0_177 = arith.constant 0 : index
    %429 = vector.load %arg8[%c1_175, %c0_176, %c0_177] : memref<2x32x64xbf16, #tpu.memory_space<vmem>>, vector<1x32x64xbf16>
    %430 = vector.shape_cast %429 : vector<1x32x64xbf16> to vector<32x64xbf16>
    %cst_178 = arith.constant dense<0.000000e+00> : vector<32x64xf32>
    %431 = tpu.matmul %428, %430, %cst_178 {dimension_numbers = #tpu.dot_dimension_numbers<[1], [0], [0], [1], [0, 0, 1, 1], [], []>} : vector<32x32xbf16>, vector<32x64xbf16>, vector<32x64xf32> -> vector<32x64xf32>
    %cst_179 = arith.constant 0.000000e+00 : f32
    %432 = vector.broadcast %cst_179 : f32 to vector<32x64xf32>
    %433 = arith.maximumf %431, %432 : vector<32x64xf32>
    %434 = arith.truncf %433 : vector<32x64xf32> to vector<32x64xbf16>
    %c1_180 = arith.constant 1 : index
    %c0_181 = arith.constant 0 : index
    %c0_182 = arith.constant 0 : index
    %435 = vector.load %arg9[%c1_180, %c0_181, %c0_182] : memref<2x64x32xbf16, #tpu.memory_space<vmem>>, vector<1x64x32xbf16>
    %436 = vector.shape_cast %435 : vector<1x64x32xbf16> to vector<64x32xbf16>
    %cst_183 = arith.constant dense<0.000000e+00> : vector<32x32xf32>
    %437 = tpu.matmul %434, %436, %cst_183 {dimension_numbers = #tpu.dot_dimension_numbers<[1], [0], [0], [1], [0, 0, 1, 1], [], []>} : vector<32x64xbf16>, vector<64x32xbf16>, vector<32x32xf32> -> vector<32x32xf32>
    %438 = arith.addf %427, %437 : vector<32x32xf32>
    %cst_184 = arith.constant dense<0.000000e+00> : vector<32x32xf32>
    %439 = tpu.matmul %1, %438, %cst_184 {dimension_numbers = #tpu.dot_dimension_numbers<[1], [0], [0], [1], [0, 0, 1, 1], [], []>} : vector<32x32xf32>, vector<32x32xf32>, vector<32x32xf32> -> vector<32x32xf32>
    %cst_185 = arith.constant dense<0.000000e+00> : vector<32xf32>
    %440 = vector.multi_reduction <add>, %439, %cst_185 [1] : vector<32x32xf32> to vector<32xf32>
    %441 = vector.shape_cast %440 : vector<32xf32> to vector<32x1xf32>
    %cst_186 = arith.constant 3.200000e+01 : f32
    %442 = vector.broadcast %cst_186 : f32 to vector<32x1xf32>
    %443 = arith.divf %441, %442 : vector<32x1xf32>
    %444 = vector.broadcast %443 : vector<32x1xf32> to vector<32x32xf32>
    %445 = arith.subf %439, %444 : vector<32x32xf32>
    %446 = arith.mulf %445, %445 : vector<32x32xf32>
    %cst_187 = arith.constant dense<0.000000e+00> : vector<32xf32>
    %447 = vector.multi_reduction <add>, %446, %cst_187 [1] : vector<32x32xf32> to vector<32xf32>
    %448 = vector.shape_cast %447 : vector<32xf32> to vector<32x1xf32>
    %cst_188 = arith.constant 3.200000e+01 : f32
    %449 = vector.broadcast %cst_188 : f32 to vector<32x1xf32>
    %450 = arith.divf %448, %449 : vector<32x1xf32>
    %451 = vector.broadcast %443 : vector<32x1xf32> to vector<32x32xf32>
    %452 = arith.subf %439, %451 : vector<32x32xf32>
    %cst_189 = arith.constant 9.99999974E-6 : f32
    %453 = vector.broadcast %cst_189 : f32 to vector<32x1xf32>
    %454 = arith.addf %450, %453 : vector<32x1xf32>
    %455 = math.rsqrt %454 : vector<32x1xf32>
    %456 = vector.broadcast %455 : vector<32x1xf32> to vector<32x32xf32>
    %457 = arith.mulf %452, %456 : vector<32x32xf32>
    %c0_190 = arith.constant 0 : index
    %c0_191 = arith.constant 0 : index
    %458 = vector.load %arg10[%c0_190, %c0_191] : memref<1x32xf32, #tpu.memory_space<vmem>>, vector<1x32xf32>
    %459 = vector.broadcast %458 : vector<1x32xf32> to vector<32x32xf32>
    %460 = arith.mulf %457, %459 : vector<32x32xf32>
    %c0_192 = arith.constant 0 : index
    %c0_193 = arith.constant 0 : index
    %461 = vector.load %arg11[%c0_192, %c0_193] : memref<1x32xf32, #tpu.memory_space<vmem>>, vector<1x32xf32>
    %462 = vector.broadcast %461 : vector<1x32xf32> to vector<32x32xf32>
    %463 = arith.addf %460, %462 : vector<32x32xf32>
    %c0_194 = arith.constant 0 : index
    %c0_195 = arith.constant 0 : index
    %464 = vector.load %arg3[%c0_194, %c0_195] : memref<32x32xf32, #tpu.memory_space<vmem>>, vector<32x32xf32>
    %cst_196 = arith.constant dense<0.000000e+00> : vector<32x32xf32>
    %465 = tpu.matmul %464, %463, %cst_196 {dimension_numbers = #tpu.dot_dimension_numbers<[1], [0], [0], [1], [0, 0, 1, 1], [], []>} : vector<32x32xf32>, vector<32x32xf32>, vector<32x32xf32> -> vector<32x32xf32>
    %c0_197 = arith.constant 0 : index
    %c0_198 = arith.constant 0 : index
    %466 = vector.load %arg12[%c0_197, %c0_198] : memref<32x32xf32, #tpu.memory_space<vmem>>, vector<32x32xf32>
    tpu.vector_store %arg12[%c0_197, %c0_198], %465 {strides = array<i32>} : memref<32x32xf32, #tpu.memory_space<vmem>>, vector<32x32xf32>,
    return
  }
  func.func @transform_0(%arg0: i32) -> (i32, i32) {
    %c0_i32 = arith.constant 0 : i32
    %c0_i32_0 = arith.constant 0 : i32
    %c0_i32_1 = arith.constant 0 : i32
    return %c0_i32, %c0_i32_0 : i32, i32
  }
  func.func @transform_1(%arg0: i32) -> (i32, i32) {
    %c0_i32 = arith.constant 0 : i32
    %c0_i32_0 = arith.constant 0 : i32
    %c0_i32_1 = arith.constant 0 : i32
    return %c0_i32, %c0_i32_0 : i32, i32
  }
  func.func @transform_2(%arg0: i32) -> (i32, i32) {
    %c0_i32 = arith.constant 0 : i32
    %c0_i32_0 = arith.constant 0 : i32
    %c0_i32_1 = arith.constant 0 : i32
    return %c0_i32, %c0_i32_0 : i32, i32
  }
  func.func @transform_3(%arg0: i32) -> (i32, i32, i32) {
    %c0_i32 = arith.constant 0 : i32
    %c0_i32_0 = arith.constant 0 : i32
    %c0_i32_1 = arith.constant 0 : i32
    %c0_i32_2 = arith.constant 0 : i32
    return %c0_i32, %c0_i32_0, %c0_i32_1 : i32, i32, i32
  }
  func.func @transform_4(%arg0: i32) -> (i32, i32, i32) {
    %c0_i32 = arith.constant 0 : i32
    %c0_i32_0 = arith.constant 0 : i32
    %c0_i32_1 = arith.constant 0 : i32
    %c0_i32_2 = arith.constant 0 : i32
    return %c0_i32, %c0_i32_0, %c0_i32_1 : i32, i32, i32
  }
  func.func @transform_5(%arg0: i32) -> (i32, i32, i32, i32) {
    %c0_i32 = arith.constant 0 : i32
    %c0_i32_0 = arith.constant 0 : i32
    %c0_i32_1 = arith.constant 0 : i32
    %c0_i32_2 = arith.constant 0 : i32
    %c0_i32_3 = arith.constant 0 : i32
    return %c0_i32, %c0_i32_0, %c0_i32_1, %c0_i32_2 : i32, i32, i32, i32
  }
  func.func @transform_6(%arg0: i32) -> (i32, i32, i32) {
    %c0_i32 = arith.constant 0 : i32
    %c0_i32_0 = arith.constant 0 : i32
    %c0_i32_1 = arith.constant 0 : i32
    %c0_i32_2 = arith.constant 0 : i32
    return %c0_i32, %c0_i32_0, %c0_i32_1 : i32, i32, i32
  }
  func.func @transform_7(%arg0: i32) -> (i32, i32, i32) {
    %c0_i32 = arith.constant 0 : i32
    %c0_i32_0 = arith.constant 0 : i32
    %c0_i32_1 = arith.constant 0 : i32
    %c0_i32_2 = arith.constant 0 : i32
    return %c0_i32, %c0_i32_0, %c0_i32_1 : i32, i32, i32
  }
  func.func @transform_8(%arg0: i32) -> (i32, i32, i32) {
    %c0_i32 = arith.constant 0 : i32
    %c0_i32_0 = arith.constant 0 : i32
    %c0_i32_1 = arith.constant 0 : i32
    %c0_i32_2 = arith.constant 0 : i32
    return %c0_i32, %c0_i32_0, %c0_i32_1 : i32, i32, i32
  }
  func.func @transform_9(%arg0: i32) -> (i32, i32) {
    %c0_i32 = arith.constant 0 : i32
    %c0_i32_0 = arith.constant 0 : i32
    %c0_i32_1 = arith.constant 0 : i32
    return %c0_i32, %c0_i32_0 : i32, i32
  }
  func.func @transform_10(%arg0: i32) -> (i32, i32) {
    %c0_i32 = arith.constant 0 : i32
    %c0_i32_0 = arith.constant 0 : i32
    %c0_i32_1 = arith.constant 0 : i32
    return %c0_i32, %c0_i32_0 : i32, i32
  }
  func.func @transform_11(%arg0: i32) -> (i32, i32) {
    %c0_i32 = arith.constant 0 : i32
    %c0_i32_0 = arith.constant 0 : i32
    %c0_i32_1 = arith.constant 0 : i32
    return %c0_i32, %c0_i32_0 : i32, i32
  }
}

</mosaic_0001>

<bundles_post_ra>
// kernel: tpu_custom_call.1
= control target key start
LH: loop header
LB: loop body
LE: loop exit
PB: predicated region body
PF: predicated region fallthrough
CT: control target
= control target key end

     0   :  { %16 = vsyncpa [#allocation3], 0  ;;  %s3200_s0 = inlined_call_operand.vmem [shape: f32[32,32], index: 0, kind: input, shape index: {}]   ;;  %s3201_s1 = inlined_call_operand.vmem [shape: f32[32,32], index: 1, kind: input, shape index: {}]   ;;  %s3202_s2 = inlined_call_operand.vmem [shape: f32[32,32], index: 2, kind: input, shape index: {}]   ;;  %s3203_s3 = inlined_call_operand.hbm [shape: bf16[2,32,96], index: 3, kind: input, shape index: {}]   ;;  %s3204_s4 = inlined_call_operand.vmem [shape: f32[2,1,96], index: 4, kind: input, shape index: {}]   ;;  %s3205_s5 = inlined_call_operand.hbm [shape: bf16[2,4,8,32], index: 5, kind: input, shape index: {}]   ;;  %s3206_s6 = inlined_call_operand.vmem [shape: f32[2,1,32], index: 6, kind: input, shape index: {}]   ;;  %s3207_s7 = inlined_call_operand.hbm [shape: bf16[2,32,64], index: 7, kind: input, shape index: {}]   ;;  %s3208_s8 = inlined_call_operand.vmem [shape: bf16[2,64,32], index: 8, kind: input, shape index: {}]   ;;  %s3209_s9 = inlined_call_operand.vmem [shape: f32[1,32], index: 9, kind: input, shape index: {}]   ;;  %s3210_s10 = inlined_call_operand.vmem [shape: f32[1,32], index: 10, kind: input, shape index: {}]   ;;  %s3211_s11 = inlined_call_operand.hbm [shape: f32[32,32], index: 11, kind: output, shape index: {}]  }
   0x1   :  { %17 = vsyncpa [#allocation6], 0 }
   0x2   :  { %18 = vsyncpa [#allocation4], 0  ;;  %s44_s19 = sshll.u32 %s3205_s5, 4  ;;  %s2609_s20 = smov [#allocation5]   ;;  %s45_s19 = int_to_ptr.hbm [resolvable:$true] %s44_s19 }
   0x3   :  { %s46_s21 = sshll.u32 %s2609_s20, 4  ;;  %s29_s24 = sshll.u32 %s3203_s3, 4  ;;  %s47_s21 = int_to_ptr.vmem [resolvable:$true] %s46_s21  ;;  %s30_s24 = int_to_ptr.hbm [resolvable:$true] %s29_s24 }
   0x4   :  { %s2610_s25 = smov 64   ;;  %s2611_s26 = smov 4  }
   0x5   :  { %52 = dma.hbm_to_vmem [thread:$0]  %s45_s19, 512, %s47_s21, [#allocation6], %s2610_s25, %s2610_s25, %s2611_s26  }
   0x6   :  { %s2612_s27 = smov [#allocation2]   ;;  %s59_s5 = sshll.u32 %s3207_s7, 4  ;;  %s60_s5 = int_to_ptr.hbm [resolvable:$true] %s59_s5 }
   0x7   :  { %s31_s28 = sshll.u32 %s2612_s27, 4  ;;  %s2613_s12 = smov [#allocation7]   ;;  %s32_s28 = int_to_ptr.vmem [resolvable:$true] %s31_s28 }
   0x8   :  { %37 = dma.hbm_to_vmem [thread:$0]  %s30_s24, 512, %s32_s28, [#allocation3], %s2610_s25, %s2610_s25, %s2611_s26  }
   0x9   :  { %s61_s13 = sshll.u32 %s2613_s12, 4  ;;  %s62_s13 = int_to_ptr.vmem [resolvable:$true] %s61_s13 }
   0xa   :  { %67 = dma.hbm_to_vmem [thread:$0]  %s60_s5, 512, %s62_s13, [#allocation6], %s2610_s25, %s2610_s25, %s2611_s26  }
   0xb   :  { %2603 = dma.done.wait [#allocation3], 512  }
   0xc   :  { %2604 = vsyncadd [#allocation3], 4294966784 }
   0xd   :  { %2605 = dma.done.wait [#allocation6], 1024  }
   0xe   :  { %2606 = vsyncadd [#allocation6], 4294966272  ;;  %v2321_v0 = vld [vmem:[#allocation2 + $0x8] sm:$0xff]  ;;  %v2320_v1 = vld [vmem:[#allocation2] sm:$0xff]  ;;  %vm117_vm0 = vcmask 261120   ;;  %s2614_s18 = smov 56  }
   0xf   :  { %v2706_v2 = vld [vmem:[%s3200_s0] sm:$0xff]  ;;  %v2711_v3 = vld [vmem:[%s3200_s0 + $0x8] sm:$0xff]  ;;  %130 = vmatpush.bf16.msra.mxu0 %v2321_v0  ;;  %s2615_s19 = smov 88   ;;  %s2616_s20 = smov 96   ;;  %vm147_vm1 = vcmask 64512   ;;  %vm168_vm2 = vcmask 130048  }
  0x10   :  { %v95_v4 = vpack.c.bf16 %v2711_v3, %v2706_v2  ;;  %v2719_v6 = vld [vmem:[%s3204_s4] ss:$0 sm:$0xff]  ;;  %s2617_s21 = smov 120   ;;  %s2618_s22 = smov 80   ;;  %v2752_v27 = vld [vmem:[%s3200_s0 + $0x10] sm:$0xff]  ;;  %v2757_v28 = vld [vmem:[%s3200_s0 + $0x18] sm:$0xff] }
  0x11   :  { %s2619_s23 = smov 112   ;;  %v96_v29 = vpack.c.bf16 %v2757_v28, %v2752_v27  ;;  %v283_v52 = vld [vmem:[#allocation5 + $0x4] sm:$0xf]  ;;  %vm287_vm3 = vcmask 1043456   ;;  %s2620_s0 = smov 48   ;;  %vm987_vm4 = vcmask 523264  }
  0x12   :  { %v2768_v53 = vsel %vm287_vm3, %v283_v52, 0  ;;  %s2621_s29 = smov 72   ;;  %s2622_s30 = smov 104  }
  0x13   :  { %131 = vmatpush.bf16.msra.mxu0 %v2320_v1  ;;  %s2623_s5 = smov 40  }
  0x16   :  { %2174 = vmatmul.msk.bf16.vlgmr.msra.gmra.mxu0 %vm117_vm0, %v95_v4 }
  0x26   :  { %2175 = vmatmul.msk.bf16.gmra.mxu0 %vm117_vm0, %v96_v29 }
  0x93   :  { %v133_v5 = vpop.f32.mrf.mxu0 }
  0x94   :  { %v134_v8 = vadd.f32 %v2719_v6, %v133_v5 }
  0x9b   :  { %v135_v7 = vpop.f32.mrf.mxu0 }
  0x9c   :  { %v136_v9 = vadd.f32 %v2719_v6, %v135_v7 }
  0x9e   :  { %v2723_v10 = vpack.c.bf16 %v136_v9, %v134_v8 }
  0xa0   :  { %259 = vrot.lane.b32.xlu2 %v2723_v10, %s2614_s18  ;;  %216 = vrot.lane.b32.xlu0 %v2723_v10, %s2615_s19 }
  0xa3   :  { %v138_v8 = vpop.f32.mrf.mxu0 }
  0xa8   :  { %145 = vrot.lane.b32.xlu2 %v2723_v10, %s2616_s20  ;;  %214 = vrot.lane.b32.xlu0 %v2723_v10, %s2617_s21 }
  0xab   :  { %v140_v9 = vpop.f32.mrf.mxu0 }
  0xb0   :  { %327 = vrot.lane.b32.xlu0 %v2723_v10, %s2618_s22 }
  0xfa   :  { %v260_v11 = vpop.permute.xlu2 %259 }
  0xfb   :  { %272 = vmatpush.bf16.msra.mxu2 %v260_v11  ;;  %v139_v11 = vadd.f32 %v2719_v6, %v138_v8 }
 0x102   :  { %v146_v12 = vpop.permute.xlu2 %145 }
 0x103   :  { %v152_v13 = vsel %vm147_vm1, %v146_v12, 0  ;;  %v141_v12 = vadd.f32 %v2719_v6, %v140_v9 }
 0x104   :  { %161 = vmatpush.bf16.xpose.msra.mxu1 %v152_v13 }
 0x105   :  { %v2782_v13 = vpack.c.bf16 %v141_v12, %v139_v11 }
 0x10b   :  { %2176 = vmatmul.msk.bf16.vlgmr.msra.gmra.mxu1 %vm147_vm1, %v2723_v10 }
 0x10c   :  { %298 = vmatpush.bf16.msrb.mxu1 %v2768_v53 }
 0x112   :  { %v217_v14 = vpop.permute.xlu0 %216 }
 0x113   :  { %v222_v15 = vsel %vm147_vm1, %v217_v14, 0  ;;  %v213_v14 = vld [vmem:[#allocation5] sm:$0xf] }
 0x114   :  { %231 = vmatpush.bf16.xpose.msra.mxu3 %v222_v15  ;;  %v309_v15 = vsel %vm287_vm3, %v213_v14, 0 }
 0x11a   :  { %v215_v16 = vpop.permute.xlu0 %214 }
 0x11b   :  { %2178 = vmatmul.msk.bf16.vlgmr.msra.gmra.mxu3 %vm147_vm1, %v215_v16 }
 0x11c   :  { %318 = vmatpush.bf16.msrb.mxu3 %v309_v15 }
 0x122   :  { %v328_v17 = vpop.permute.xlu0 %327 }
 0x123   :  { %v333_v18 = vsel %vm147_vm1, %v328_v17, 0 }
 0x124   :  { %342 = vmatpush.bf16.xpose.msrb.mxu2 %v333_v18 }
 0x188   :  { %v163_v19 = vpop.f32.mrf.mxu1 }
 0x189   :  { %v169_v20 = vsel %vm168_vm2, %v163_v19, -inf }
 0x18a   :  { %170 = vmax.xlane.f32.xlu2 %v169_v20 }
 0x190   :  { %v165_v21 = vpop.f32.mrf.mxu1 }
 0x191   :  { %v172_v22 = vsel %vm168_vm2, %v165_v21, -inf }
 0x192   :  { %173 = vmax.xlane.f32.xlu0 %v172_v22 }
 0x19e   :  { %v233_v23 = vpop.f32.mrf.mxu3 }
 0x19f   :  { %v238_v24 = vsel %vm168_vm2, %v233_v23, -inf }
 0x1a0   :  { %239 = vmax.xlane.f32.xlu1 %v238_v24 }
 0x1a6   :  { %v235_v25 = vpop.f32.mrf.mxu3 }
 0x1a7   :  { %v241_v26 = vsel %vm168_vm2, %v235_v25, -inf }
 0x1a8   :  { %242 = vmax.xlane.f32.xlu1 %v241_v26 }
 0x1c1   :  { %325 = vrot.lane.b32.xlu1 %v2723_v10, %s2619_s23 }
 0x1c9   :  { %190 = vrot.lane.b32.xlu1 %v2723_v10, %s2610_s25 }
 0x1fd   :  { %v171_v42 = vpop.xlane.xlu2 %170 }
 0x1fe   :  { %v175_v44 = vsub.f32 %v163_v19, %v171_v42 }
 0x200   :  { %v177_v46 = vmul.f32 1.442695, %v175_v44 }
 0x205   :  { %v174_v41 = vpop.xlane.xlu0 %173 }
 0x206   :  { %v176_v43 = vsub.f32 %v165_v21, %v174_v41 }
 0x208   :  { %v179_v45 = vmul.f32 1.442695, %v176_v43 }
 0x213   :  { %v240_v30 = vpop.xlane.xlu1 %239 }
 0x214   :  { %v244_v31 = vsub.f32 %v233_v23, %v240_v30 }
 0x216   :  { %v246_v32 = vmul.f32 1.442695, %v244_v31 }
 0x218   :  { %2365 = vpow2.f32 %v246_v32 }
 0x21b   :  { %v243_v33 = vpop.xlane.xlu1 %242 }
 0x21c   :  { %v245_v34 = vsub.f32 %v235_v25, %v243_v33 }
 0x21e   :  { %v2366_v35 = vpop.eup %2365  ;;  %v248_v36 = vmul.f32 1.442695, %v245_v34 }
 0x21f   :  { %v250_v37 = vsel %vm168_vm2, %v2366_v35, 0.0 }
 0x220   :  { %2367 = vpow2.f32 %v248_v36  ;;  %251 = vadd.xlane.f32.xlu0 %v250_v37 }
 0x221   :  { %2369 = vpow2.f32 %v179_v45 }
 0x222   :  { %2371 = vpow2.f32 %v177_v46 }
 0x226   :  { %v2368_v38 = vpop.eup %2367 }
 0x227   :  { %v253_v39 = vsel %vm168_vm2, %v2368_v38, 0.0  ;;  %v258_v40 = vpack.c.bf16 %v2368_v38, %v2366_v35  ;;  %v2370_v48 = vpop.eup %2369 }
 0x228   :  { %254 = vadd.xlane.f32.xlu0 %v253_v39  ;;  %v2372_v50 = vpop.eup %2371  ;;  %v184_v7 = vsel %vm168_vm2, %v2370_v48, 0.0 }
 0x229   :  { %2179 = vmatmul.msk.bf16.vlgmr.msra.gmra.mxu2 %vm168_vm2, %v258_v40  ;;  %v189_v51 = vpack.c.bf16 %v2370_v48, %v2372_v50  ;;  %v181_v4 = vsel %vm168_vm2, %v2372_v50, 0.0  ;;  %v394_v40 = vld [vmem:[#allocation5 + $0x8] sm:$0xf] }
 0x22a   :  { %v399_v41 = vsel %vm287_vm3, %v394_v40, 0 }
 0x22b   :  { %408 = vmatpush.bf16.msra.mxu1 %v399_v41 }
 0x233   :  { %v326_v47 = vpop.permute.xlu1 %325 }
 0x239   :  { %2182 = vmatmul.msk.bf16.vlgmr.msrb.gmra.mxu2 %vm147_vm1, %v326_v47 }
 0x23b   :  { %v191_v49 = vpop.permute.xlu1 %190 }
 0x23c   :  { %203 = vmatpush.bf16.msrb.mxu0 %v191_v49 }
 0x23f   :  { %2177 = vmatmul.msk.bf16.vlgmr.msrb.gmra.mxu0 %vm168_vm2, %v189_v51 }
 0x293   :  { %v252_v54 = vpop.xlane.xlu0 %251 }
 0x294   :  { %2373 = vrcp.f32 %v252_v54 }
 0x29a   :  { %v2374_v57 = vpop.eup %2373 }
 0x29b   :  { %v255_v55 = vpop.xlane.xlu0 %254 }
 0x29c   :  { %2375 = vrcp.f32 %v255_v55 }
 0x2a2   :  { %v2376_v58 = vpop.eup %2375 }
 0x2ac   :  { %v274_v56 = vpop.f32.mrf.mxu2 }
 0x2ad   :  { %v279_v60 = vmul.f32 %v2374_v57, %v274_v56 }
 0x2b4   :  { %v276_v59 = vpop.f32.mrf.mxu2 }
 0x2b5   :  { %v280_v61 = vmul.f32 %v2376_v58, %v276_v59 }
 0x2b7   :  { %v281_v62 = vpack.c.bf16 %v280_v61, %v279_v60 }
 0x2b9   :  { %2180 = vmatmul.msk.bf16.vlgmr.msrb.gmra.mxu1 %vm147_vm1, %v281_v62 }
 0x2bc   :  { %v344_v63 = vpop.f32.mrf.mxu2  ;;  %v205_v24 = vpop.f32.mrf.mxu0 }
 0x2bd   :  { %v349_v0 = vsel %vm168_vm2, %v344_v63, -inf }
 0x2be   :  { %350 = vmax.xlane.f32.xlu1 %v349_v0 }
 0x2c4   :  { %v346_v1 = vpop.f32.mrf.mxu2  ;;  %v207_v34 = vpop.f32.mrf.mxu0 }
 0x2c5   :  { %v352_v5 = vsel %vm168_vm2, %v346_v1, -inf }
 0x2c6   :  { %182 = vadd.xlane.f32.xlu1 %v181_v4  ;;  %353 = vmax.xlane.f32.xlu2 %v352_v5 }
 0x2ce   :  { %185 = vadd.xlane.f32.xlu1 %v184_v7 }
 0x2de   :  { %370 = vrot.lane.b32.xlu2 %v2723_v10, %s2620_s0 }
 0x2e7   :  { %419 = vrot.lane.b32.xlu1 %v2723_v10, %s2621_s29 }
 0x2ef   :  { %554 = vrot.lane.b32.xlu1 %v2782_v13, %s2610_s25 }
 0x331   :  { %v351_v16 = vpop.xlane.xlu1 %350 }
 0x332   :  { %v355_v17 = vsub.f32 %v344_v63, %v351_v16 }
 0x334   :  { %v357_v18 = vmul.f32 1.442695, %v355_v17 }
 0x336   :  { %2377 = vpow2.f32 %v357_v18  ;;  %v2803_v56 = vpop.f32.mrf.mxu1 }
 0x339   :  { %v183_v19 = vpop.xlane.xlu1 %182  ;;  %v354_v20 = vpop.xlane.xlu2 %353 }
 0x33a   :  { %v356_v21 = vsub.f32 %v346_v1, %v354_v20 }
 0x33c   :  { %v2378_v22 = vpop.eup %2377  ;;  %v359_v23 = vmul.f32 1.442695, %v356_v21 }
 0x33d   :  { %v361_v6 = vsel %vm168_vm2, %v2378_v22, 0.0 }
 0x33e   :  { %2379 = vpow2.f32 %v359_v23  ;;  %362 = vadd.xlane.f32.xlu0 %v361_v6  ;;  %v2807_v58 = vpop.f32.mrf.mxu1 }
 0x33f   :  { %2381 = vrcp.f32 %v183_v19 }
 0x341   :  { %v371_v25 = vpop.permute.xlu2 %370  ;;  %v186_v26 = vpop.xlane.xlu1 %185 }
 0x342   :  { %2383 = vrcp.f32 %v186_v26  ;;  %383 = vmatpush.bf16.msra.mxu0 %v371_v25 }
 0x344   :  { %v2380_v29 = vpop.eup %2379 }
 0x345   :  { %v369_v30 = vpack.c.bf16 %v2380_v29, %v2378_v22  ;;  %v364_v31 = vsel %vm168_vm2, %v2380_v29, 0.0  ;;  %v2382_v32 = vpop.eup %2381 }
 0x346   :  { %365 = vadd.xlane.f32.xlu2 %v364_v31  ;;  %v210_v35 = vmul.f32 %v2382_v32, %v205_v24 }
 0x347   :  { %2183 = vmatmul.msk.bf16.vlgmr.msra.gmra.mxu0 %vm168_vm2, %v369_v30 }
 0x348   :  { %v2384_v33 = vpop.eup %2383 }
 0x349   :  { %v211_v36 = vmul.f32 %v2384_v33, %v207_v34 }
 0x34b   :  { %v212_v37 = vpack.c.bf16 %v211_v36, %v210_v35 }
 0x34d   :  { %2181 = vmatmul.msk.bf16.vlgmr.msrb.gmra.mxu3 %vm147_vm1, %v212_v37 }
 0x352   :  { %511 = vrot.lane.b32.xlu0 %v2782_v13, %s2616_s20 }
 0x359   :  { %v420_v38 = vpop.permute.xlu1 %419 }
 0x35a   :  { %v425_v39 = vsel %vm147_vm1, %v420_v38, 0  ;;  %417 = vrot.lane.b32.xlu0 %v2723_v10, %s2622_s30 }
 0x35b   :  { %434 = vmatpush.bf16.xpose.msra.mxu3 %v425_v39  ;;  %v486_v39 = vld [vmem:[#allocation5 + $0xc] sm:$0xf] }
 0x35c   :  { %v2845_v40 = vsel %vm287_vm3, %v486_v39, 0 }
 0x35d   :  { %500 = vmatpush.bf16.msrb.mxu0 %v2845_v40 }
 0x361   :  { %v555_v42 = vpop.permute.xlu1 %554 }
 0x363   :  { %567 = vmatpush.bf16.msrb.mxu3 %v555_v42 }
 0x3b1   :  { %v363_v43 = vpop.xlane.xlu0 %362 }
 0x3b2   :  { %2385 = vrcp.f32 %v363_v43 }
 0x3b8   :  { %v2386_v48 = vpop.eup %2385 }
 0x3b9   :  { %v366_v44 = vpop.xlane.xlu2 %365 }
 0x3ba   :  { %2387 = vrcp.f32 %v366_v44 }
 0x3c0   :  { %v2388_v49 = vpop.eup %2387 }
 0x3c4   :  { %v385_v45 = vpop.f32.mrf.mxu0  ;;  %v512_v46 = vpop.permute.xlu0 %511 }
 0x3c5   :  { %v517_v47 = vsel %vm147_vm1, %v512_v46, 0  ;;  %v390_v52 = vmul.f32 %v2386_v48, %v385_v45 }
 0x3c6   :  { %526 = vmatpush.bf16.xpose.msrb.mxu1 %v517_v47 }
 0x3cc   :  { %v387_v50 = vpop.f32.mrf.mxu0  ;;  %v418_v51 = vpop.permute.xlu0 %417 }
 0x3cd   :  { %v391_v54 = vmul.f32 %v2388_v49, %v387_v50  ;;  %2185 = vmatmul.msk.bf16.vlgmr.msra.gmra.mxu3 %vm147_vm1, %v418_v51 }
 0x3ce   :  { %672 = vmatpush.bf16.msra.mxu3 %v309_v15 }
 0x3cf   :  { %v392_v55 = vpack.c.bf16 %v391_v54, %v390_v52 }
 0x3d0   :  { %v2805_v57 = vpop.f32.mrf.mxu3 }
 0x3d1   :  { %2184 = vmatmul.msk.bf16.vlgmr.msra.gmra.mxu1 %vm147_vm1, %v392_v55 }
 0x3d2   :  { %655 = vmatpush.bf16.msra.mxu1 %v2768_v53 }
 0x3d8   :  { %v2809_v59 = vpop.f32.mrf.mxu3 }
 0x3e1   :  { %2188 = vmatmul.msk.bf16.vlgmr.msrb.gmra.mxu1 %vm147_vm1, %v2782_v13 }
 0x3e2   :  { %757 = vmatpush.bf16.msrb.mxu1 %v399_v41 }
 0x44e   :  { %v2811_v60 = vpop.f32.mrf.mxu1 }
 0x450   :  { %v436_v61 = vpop.f32.mrf.mxu3 }
 0x451   :  { %v441_v7 = vsel %vm168_vm2, %v436_v61, -inf }
 0x456   :  { %v2813_v62 = vpop.f32.mrf.mxu1 }
 0x458   :  { %v438_v63 = vpop.f32.mrf.mxu3 }
 0x459   :  { %v444_v53 = vsel %vm168_vm2, %v438_v63, -inf }
 0x45a   :  { %445 = vmax.xlane.f32.xlu1 %v444_v53 }
 0x45e   :  { %v528_v0 = vpop.f32.mrf.mxu1 }
 0x45f   :  { %v533_v1 = vsel %vm168_vm2, %v528_v0, -inf }
 0x460   :  { %534 = vmax.xlane.f32.xlu0 %v533_v1 }
 0x466   :  { %v530_v4 = vpop.f32.mrf.mxu1 }
 0x467   :  { %v536_v5 = vsel %vm168_vm2, %v530_v4, -inf }
 0x468   :  { %537 = vmax.xlane.f32.xlu2 %v536_v5 }
 0x470   :  { %442 = vmax.xlane.f32.xlu2 %v441_v7 }
 0x473   :  { %681 = vrot.lane.b32.xlu1 %v2782_v13, %s2618_s22 }
 0x488   :  { %462 = vrot.lane.b32.xlu2 %v2723_v10, %s2623_s5 }
 0x490   :  { %579 = vrot.lane.b32.xlu2 %v2782_v13, %s2615_s19 }
 0x498   :  { %768 = vrot.lane.b32.xlu2 %v2782_v13, %s2621_s29 }
 0x4a0   :  { %766 = vrot.lane.b32.xlu2 %v2782_v13, %s2622_s30 }
 0x4a8   :  { %679 = vrot.lane.b32.xlu2 %v2782_v13, %s2619_s23 }
 0x4cd   :  { %v446_v8 = vpop.xlane.xlu1 %445 }
 0x4ce   :  { %v448_v9 = vsub.f32 %v438_v63, %v446_v8 }
 0x4d0   :  { %v451_v11 = vmul.f32 1.442695, %v448_v9 }
 0x4d2   :  { %2389 = vpow2.f32 %v451_v11 }
 0x4d3   :  { %v535_v12 = vpop.xlane.xlu0 %534 }
 0x4d4   :  { %v539_v14 = vsub.f32 %v528_v0, %v535_v12 }
 0x4d6   :  { %v541_v15 = vmul.f32 1.442695, %v539_v14 }
 0x4d8   :  { %v2390_v10 = vpop.eup %2389  ;;  %2391 = vpow2.f32 %v541_v15 }
 0x4d9   :  { %v456_v16 = vsel %vm168_vm2, %v2390_v10, 0.0 }
 0x4da   :  { %457 = vadd.xlane.f32.xlu2 %v456_v16 }
 0x4db   :  { %v538_v17 = vpop.xlane.xlu2 %537 }
 0x4dc   :  { %v540_v18 = vsub.f32 %v530_v4, %v538_v17 }
 0x4de   :  { %v2392_v19 = vpop.eup %2391  ;;  %v543_v20 = vmul.f32 1.442695, %v540_v18 }
 0x4df   :  { %v545_v21 = vsel %vm168_vm2, %v2392_v19, 0.0 }
 0x4e0   :  { %2393 = vpow2.f32 %v543_v20  ;;  %546 = vadd.xlane.f32.xlu0 %v545_v21 }
 0x4e3   :  { %v443_v22 = vpop.xlane.xlu2 %442 }
 0x4e4   :  { %v447_v23 = vsub.f32 %v436_v61, %v443_v22 }
 0x4e5   :  { %v682_v32 = vpop.permute.xlu1 %681 }
 0x4e6   :  { %v2394_v6 = vpop.eup %2393  ;;  %v449_v24 = vmul.f32 1.442695, %v447_v23  ;;  %v687_v35 = vsel %vm147_vm1, %v682_v32, 0 }
 0x4e7   :  { %v553_v25 = vpack.c.bf16 %v2394_v6, %v2392_v19  ;;  %v548_v26 = vsel %vm168_vm2, %v2394_v6, 0.0 }
 0x4e8   :  { %2395 = vpow2.f32 %v449_v24  ;;  %549 = vadd.xlane.f32.xlu0 %v548_v26 }
 0x4e9   :  { %2189 = vmatmul.msk.bf16.vlgmr.msrb.gmra.mxu3 %vm168_vm2, %v553_v25 }
 0x4eb   :  { %v463_v29 = vpop.permute.xlu2 %462 }
 0x4ec   :  { %475 = vmatpush.bf16.msra.mxu2 %v463_v29 }
 0x4ee   :  { %v2396_v30 = vpop.eup %2395 }
 0x4ef   :  { %v461_v31 = vpack.c.bf16 %v2390_v10, %v2396_v30  ;;  %v453_v38 = vsel %vm168_vm2, %v2396_v30, 0.0 }
 0x4f1   :  { %2186 = vmatmul.msk.bf16.vlgmr.msra.gmra.mxu2 %vm168_vm2, %v461_v31 }
 0x4f2   :  { %622 = vrot.lane.b32.xlu2 %v2782_v13, %s2614_s18 }
 0x4f3   :  { %v580_v33 = vpop.permute.xlu2 %579 }
 0x4f4   :  { %v585_v34 = vsel %vm147_vm1, %v580_v33, 0 }
 0x4f5   :  { %594 = vmatpush.bf16.xpose.msrb.mxu2 %v585_v34 }
 0x4fb   :  { %v769_v36 = vpop.permute.xlu2 %768 }
 0x4fc   :  { %v774_v37 = vsel %vm147_vm1, %v769_v36, 0  ;;  %577 = vrot.lane.b32.xlu0 %v2782_v13, %s2617_s21 }
 0x4fd   :  { %696 = vmatpush.bf16.xpose.msra.mxu2 %v687_v35  ;;  %783 = vmatpush.bf16.xpose.msrb.mxu3 %v774_v37 }
 0x503   :  { %v767_v41 = vpop.permute.xlu2 %766 }
 0x50b   :  { %v680_v42 = vpop.permute.xlu2 %679 }
 0x526   :  { %454 = vadd.xlane.f32.xlu0 %v453_v38 }
 0x54d   :  { %v458_v43 = vpop.xlane.xlu2 %457 }
 0x553   :  { %v547_v45 = vpop.xlane.xlu0 %546 }
 0x554   :  { %2397 = vrcp.f32 %v547_v45 }
 0x555   :  { %v623_v44 = vpop.permute.xlu2 %622 }
 0x556   :  { %635 = vmatpush.bf16.msra.mxu0 %v623_v44 }
 0x55a   :  { %v2398_v49 = vpop.eup %2397 }
 0x55b   :  { %v550_v46 = vpop.xlane.xlu0 %549 }
 0x55c   :  { %2399 = vrcp.f32 %v550_v46 }
 0x55d   :  { %2401 = vrcp.f32 %v458_v43 }
 0x562   :  { %v2400_v50 = vpop.eup %2399 }
 0x563   :  { %v2402_v0 = vpop.eup %2401 }
 0x56c   :  { %v569_v47 = vpop.f32.mrf.mxu3 }
 0x56d   :  { %v574_v52 = vmul.f32 %v2398_v49, %v569_v47 }
 0x56e   :  { %v578_v48 = vpop.permute.xlu0 %577 }
 0x56f   :  { %2190 = vmatmul.msk.bf16.vlgmr.msrb.gmra.mxu2 %vm147_vm1, %v578_v48 }
 0x574   :  { %v571_v51 = vpop.f32.mrf.mxu3  ;;  %v477_v61 = vpop.f32.mrf.mxu2 }
 0x575   :  { %v575_v54 = vmul.f32 %v2400_v50, %v571_v51 }
 0x577   :  { %v576_v55 = vpack.c.bf16 %v575_v54, %v574_v52 }
 0x579   :  { %2193 = vmatmul.msk.bf16.vlgmr.msra.gmra.mxu3 %vm147_vm1, %v576_v55 }
 0x57c   :  { %v479_v53 = vpop.f32.mrf.mxu2 }
 0x57d   :  { %v483_v4 = vmul.f32 %v2402_v0, %v479_v53 }
 0x57f   :  { %2194 = vmatmul.msk.bf16.vlgmr.msra.gmra.mxu2 %vm147_vm1, %v680_v42 }
 0x589   :  { %2197 = vmatmul.msk.bf16.vlgmr.msrb.gmra.mxu3 %vm147_vm1, %v767_v41 }
 0x599   :  { %v455_v63 = vpop.xlane.xlu0 %454 }
 0x59a   :  { %2403 = vrcp.f32 %v455_v63 }
 0x5a0   :  { %v2404_v1 = vpop.eup %2403 }
 0x5a1   :  { %v482_v5 = vmul.f32 %v2404_v1, %v477_v61 }
 0x5a3   :  { %v484_v7 = vpack.c.bf16 %v483_v4, %v482_v5 }
 0x5a5   :  { %2187 = vmatmul.msk.bf16.vlgmr.msrb.gmra.mxu0 %vm147_vm1, %v484_v7 }
 0x5f2   :  { %v596_v8 = vpop.f32.mrf.mxu2 }
 0x5f3   :  { %v601_v9 = vsel %vm168_vm2, %v596_v8, -inf }
 0x5f4   :  { %602 = vmax.xlane.f32.xlu1 %v601_v9 }
 0x5fa   :  { %v598_v11 = vpop.f32.mrf.mxu2 }
 0x5fb   :  { %v604_v12 = vsel %vm168_vm2, %v598_v11, -inf }
 0x5fc   :  { %v2855_v14 = vpop.f32.mrf.mxu3  ;;  %605 = vmax.xlane.f32.xlu0 %v604_v12 }
 0x602   :  { %v698_v15 = vpop.f32.mrf.mxu2 }
 0x603   :  { %v703_v10 = vsel %vm168_vm2, %v698_v15, -inf }
 0x604   :  { %v2858_v16 = vpop.f32.mrf.mxu3  ;;  %704 = vmax.xlane.f32.xlu0 %v703_v10 }
 0x60a   :  { %v700_v17 = vpop.f32.mrf.mxu2 }
 0x60b   :  { %v706_v18 = vsel %vm168_vm2, %v700_v17, -inf }
 0x60c   :  { %v785_v19 = vpop.f32.mrf.mxu3  ;;  %707 = vmax.xlane.f32.xlu1 %v706_v18 }
 0x60d   :  { %v790_v20 = vsel %vm168_vm2, %v785_v19, -inf }
 0x60e   :  { %791 = vmax.xlane.f32.xlu0 %v790_v20 }
 0x614   :  { %v787_v21 = vpop.f32.mrf.mxu3 }
 0x615   :  { %v793_v22 = vsel %vm168_vm2, %v787_v21, -inf }
 0x616   :  { %794 = vmax.xlane.f32.xlu1 %v793_v22 }
 0x622   :  { %811 = vrot.lane.b32.xlu0 %v2782_v13, %s2623_s5  ;;  %v502_v1 = vpop.f32.mrf.mxu0 }
 0x62a   :  { %v504_v4 = vpop.f32.mrf.mxu0 }
 0x62f   :  { %724 = vrot.lane.b32.xlu1 %v2782_v13, %s2620_s0 }
 0x667   :  { %v603_v23 = vpop.xlane.xlu1 %602 }
 0x668   :  { %v607_v6 = vsub.f32 %v596_v8, %v603_v23 }
 0x66a   :  { %v609_v24 = vmul.f32 1.442695, %v607_v6 }
 0x66c   :  { %2405 = vpow2.f32 %v609_v24 }
 0x66f   :  { %v606_v25 = vpop.xlane.xlu0 %605 }
 0x670   :  { %v608_v26 = vsub.f32 %v598_v11, %v606_v25 }
 0x672   :  { %v2406_v29 = vpop.eup %2405  ;;  %v611_v30 = vmul.f32 1.442695, %v608_v26 }
 0x673   :  { %v613_v31 = vsel %vm168_vm2, %v2406_v29, 0.0 }
 0x674   :  { %2407 = vpow2.f32 %v611_v30  ;;  %614 = vadd.xlane.f32.xlu2 %v613_v31 }
 0x677   :  { %v705_v32 = vpop.xlane.xlu0 %704 }
 0x678   :  { %v709_v33 = vsub.f32 %v698_v15, %v705_v32 }
 0x67a   :  { %v2408_v34 = vpop.eup %2407  ;;  %v711_v35 = vmul.f32 1.442695, %v709_v33 }
 0x67b   :  { %v621_v36 = vpack.c.bf16 %v2408_v34, %v2406_v29  ;;  %v616_v37 = vsel %vm168_vm2, %v2408_v34, 0.0 }
 0x67c   :  { %2409 = vpow2.f32 %v711_v35  ;;  %617 = vadd.xlane.f32.xlu0 %v616_v37 }
 0x67d   :  { %2191 = vmatmul.msk.bf16.vlgmr.msra.gmra.mxu0 %vm168_vm2, %v621_v36 }
 0x67f   :  { %v708_v13 = vpop.xlane.xlu1 %707 }
 0x680   :  { %v710_v38 = vsub.f32 %v700_v17, %v708_v13 }
 0x681   :  { %v792_v39 = vpop.xlane.xlu0 %791 }
 0x682   :  { %v2410_v41 = vpop.eup %2409  ;;  %v713_v42 = vmul.f32 1.442695, %v710_v38  ;;  %v796_v43 = vsub.f32 %v785_v19, %v792_v39 }
 0x683   :  { %v715_v44 = vsel %vm168_vm2, %v2410_v41, 0.0 }
 0x684   :  { %2411 = vpow2.f32 %v713_v42  ;;  %716 = vadd.xlane.f32.xlu1 %v715_v44  ;;  %v798_v45 = vmul.f32 1.442695, %v796_v43  ;;  %v323_v42 = vadd.f32 %v2809_v59, %v2807_v58 }
 0x686   :  { %2413 = vpow2.f32 %v798_v45  ;;  %v321_v45 = vadd.f32 %v2805_v57, %v2803_v56 }
 0x689   :  { %v795_v46 = vpop.xlane.xlu1 %794 }
 0x68a   :  { %v2412_v47 = vpop.eup %2411  ;;  %v797_v48 = vsub.f32 %v787_v21, %v795_v46  ;;  %v416_v46 = vadd.f32 %v2813_v62, %v323_v42  ;;  %v2361_v42 = vld [vmem:[%s3204_s4 + $0x1] ss:$0 sm:$0xff] }
 0x68b   :  { %v718_v49 = vsel %vm168_vm2, %v2412_v47, 0.0  ;;  %v723_v0 = vpack.c.bf16 %v2412_v47, %v2410_v41 }
 0x68c   :  { %v800_v50 = vmul.f32 1.442695, %v797_v48  ;;  %719 = vadd.xlane.f32.xlu2 %v718_v49  ;;  %v2414_v51 = vpop.eup %2413 }
 0x68d   :  { %v802_v52 = vsel %vm168_vm2, %v2414_v51, 0.0 }
 0x68e   :  { %2415 = vpow2.f32 %v800_v50  ;;  %v415_v50 = vadd.f32 %v2811_v60, %v321_v45 }
 0x690   :  { %v507_v58 = vadd.f32 %v502_v1, %v415_v50 }
 0x694   :  { %v2416_v54 = vpop.eup %2415  ;;  %803 = vadd.xlane.f32.xlu2 %v802_v52  ;;  %v812_v55 = vpop.permute.xlu0 %811 }
 0x695   :  { %v810_v61 = vpack.c.bf16 %v2416_v54, %v2414_v51  ;;  %824 = vmatpush.bf16.msrb.mxu2 %v812_v55  ;;  %v805_v63 = vsel %vm168_vm2, %v2416_v54, 0.0  ;;  %v508_v51 = vadd.f32 %v504_v4, %v416_v46 }
 0x696   :  { %806 = vadd.xlane.f32.xlu0 %v805_v63  ;;  %v2322_v63 = vld [vmem:[#allocation7] sm:$0xff] }
 0x698   :  { %2198 = vmatmul.msk.bf16.vlgmr.msrb.gmra.mxu2 %vm168_vm2, %v810_v61  ;;  %v2898_v61 = vld [vmem:[%s3201_s1] sm:$0xff] }
 0x6a1   :  { %v725_v53 = vpop.permute.xlu1 %724 }
 0x6a2   :  { %737 = vmatpush.bf16.msrb.mxu0 %v725_v53  ;;  %v2327_v53 = vld [vmem:[%s3208_s8 + $0x18] sm:$0xff] }
 0x6a3   :  { %998 = vmatpush.bf16.msra.mxu2 %v2327_v53 }
 0x6a5   :  { %2195 = vmatmul.msk.bf16.vlgmr.msrb.gmra.mxu0 %vm168_vm2, %v723_v0 }
 0x6a6   :  { %844 = vmatpush.bf16.msra.mxu0 %v2845_v40 }
 0x6e7   :  { %v615_v5 = vpop.xlane.xlu2 %614 }
 0x6e8   :  { %2417 = vrcp.f32 %v615_v5 }
 0x6ee   :  { %v2418_v9 = vpop.eup %2417 }
 0x6ef   :  { %v618_v7 = vpop.xlane.xlu0 %617 }
 0x6f0   :  { %2419 = vrcp.f32 %v618_v7 }
 0x6f6   :  { %v2420_v11 = vpop.eup %2419 }
 0x6f7   :  { %v717_v21 = vpop.xlane.xlu1 %716 }
 0x6fa   :  { %v637_v8 = vpop.f32.mrf.mxu0 }
 0x6fb   :  { %v642_v15 = vmul.f32 %v2418_v9, %v637_v8  ;;  %v2326_v9 = vld [vmem:[%s3208_s8 + $0x10] sm:$0xff] }
 0x6fc   :  { %999 = vmatpush.bf16.msra.mxu2 %v2326_v9 }
 0x6ff   :  { %v720_v18 = vpop.xlane.xlu2 %719 }
 0x702   :  { %v639_v12 = vpop.f32.mrf.mxu0 }
 0x703   :  { %v643_v10 = vmul.f32 %v2420_v11, %v639_v12  ;;  %v2325_v11 = vld [vmem:[%s3208_s8 + $0x8] sm:$0xff]  ;;  %v2324_v12 = vld [vmem:[%s3208_s8] sm:$0xff] }
 0x704   :  { %1000 = vmatpush.bf16.msra.mxu2 %v2325_v11 }
 0x705   :  { %v644_v17 = vpack.c.bf16 %v643_v10, %v642_v15 }
 0x707   :  { %2192 = vmatmul.msk.bf16.vlgmr.msra.gmra.mxu1 %vm147_vm1, %v644_v17  ;;  %v804_v19 = vpop.xlane.xlu2 %803 }
 0x708   :  { %2421 = vrcp.f32 %v804_v19  ;;  %1001 = vmatpush.bf16.msra.mxu2 %v2324_v12 }
 0x709   :  { %v807_v40 = vpop.xlane.xlu0 %806 }
 0x70a   :  { %2423 = vrcp.f32 %v807_v40 }
 0x70b   :  { %2425 = vrcp.f32 %v717_v21 }
 0x70c   :  { %2427 = vrcp.f32 %v720_v18 }
 0x70e   :  { %v2422_v22 = vpop.eup %2421 }
 0x710   :  { %v2424_v6 = vpop.eup %2423 }
 0x711   :  { %v2426_v30 = vpop.eup %2425 }
 0x712   :  { %v2428_v31 = vpop.eup %2427 }
 0x71b   :  { %v826_v20 = vpop.f32.mrf.mxu2 }
 0x71c   :  { %v831_v25 = vmul.f32 %v2422_v22, %v826_v20 }
 0x722   :  { %v739_v23 = vpop.f32.mrf.mxu0 }
 0x723   :  { %v828_v24 = vpop.f32.mrf.mxu2  ;;  %v744_v33 = vmul.f32 %v2426_v30, %v739_v23 }
 0x724   :  { %v832_v26 = vmul.f32 %v2424_v6, %v828_v24 }
 0x726   :  { %v833_v29 = vpack.c.bf16 %v832_v26, %v831_v25 }
 0x728   :  { %2199 = vmatmul.msk.bf16.vlgmr.msra.gmra.mxu0 %vm147_vm1, %v833_v29 }
 0x72a   :  { %v741_v32 = vpop.f32.mrf.mxu0 }
 0x72b   :  { %v745_v34 = vmul.f32 %v2428_v31, %v741_v32 }
 0x72d   :  { %v746_v35 = vpack.c.bf16 %v745_v34, %v744_v33  ;;  %v2329_v33 = vld [vmem:[#allocation2 + $0x18] sm:$0xff]  ;;  %v2328_v34 = vld [vmem:[#allocation2 + $0x10] sm:$0xff] }
 0x72f   :  { %2196 = vmatmul.msk.bf16.vlgmr.msrb.gmra.mxu1 %vm147_vm1, %v746_v35 }
 0x784   :  { %v657_v36 = vpop.f32.mrf.mxu1 }
 0x785   :  { %v675_v39 = vadd.f32 %v2855_v14, %v657_v36  ;;  %v2360_v14 = vld [vmem:[%s3206_s6] ss:$0 sm:$0xff] }
 0x786   :  { %v858_v54 = vadd.f32 %v2360_v14, %v508_v51  ;;  %v857_v56 = vadd.f32 %v2360_v14, %v507_v58 }
 0x788   :  { %v862_v62 = vadd.f32 %v858_v54, %v2711_v3  ;;  %v861_v60 = vadd.f32 %v857_v56, %v2706_v2  ;;  %v2912_v2 = vld [vmem:[%s3201_s1 + $0x10] sm:$0xff]  ;;  %v2919_v3 = vld [vmem:[%s3201_s1 + $0x18] sm:$0xff] }
 0x78c   :  { %v659_v37 = vpop.f32.mrf.mxu1 }
 0x78d   :  { %v677_v43 = vadd.f32 %v2858_v16, %v659_v37 }
 0x7a5   :  { %v846_v13 = vpop.f32.mrf.mxu0 }
 0x7ac   :  { %v759_v38 = vpop.f32.mrf.mxu1 }
 0x7ad   :  { %v764_v41 = vadd.f32 %v759_v38, %v675_v39  ;;  %v848_v49 = vpop.f32.mrf.mxu0 }
 0x7af   :  { %v851_v47 = vadd.f32 %v846_v13, %v764_v41 }
 0x7b1   :  { %v859_v59 = vadd.f32 %v2360_v14, %v851_v47 }
 0x7b3   :  { %v863_v57 = vadd.f32 %v859_v59, %v2752_v27  ;;  %v2323_v27 = vld [vmem:[#allocation7 + $0x8] sm:$0xff] }
 0x7b4   :  { %v761_v44 = vpop.f32.mrf.mxu1  ;;  %936 = vmatpush.bf16.msra.mxu3 %v2323_v27 }
 0x7b5   :  { %v765_v48 = vadd.f32 %v761_v44, %v677_v43 }
 0x7b7   :  { %v852_v52 = vadd.f32 %v848_v49, %v765_v48 }
 0x7b8   :  { %937 = vmatpush.bf16.msra.mxu3 %v2322_v63 }
 0x7b9   :  { %v860_v16 = vadd.f32 %v2360_v14, %v852_v52 }
 0x7bb   :  { %v864_v55 = vadd.f32 %v860_v16, %v2757_v28  ;;  %v2905_v28 = vld [vmem:[%s3201_s1 + $0x8] sm:$0xff] }
 0x7bd   :  { %889 = vmatpush.msra.mxu1 %v864_v55 }
 0x7bf   :  { %890 = vmatpush.msra.mxu1 %v863_v57 }
 0x7c1   :  { %891 = vmatpush.msra.mxu1 %v862_v62 }
 0x7c3   :  { %892 = vmatpush.msra.mxu1 %v861_v60 }
 0x7c4   :  { %2200 = vmatmul.msk.f32.vlgmr.msra.gmra.mxu1 %vm117_vm0, %v2898_v61 }
 0x7cc   :  { %2201 = vmatmul.msk.f32.gmra.mxu1 %vm117_vm0, %v2905_v28 }
 0x7d4   :  { %2202 = vmatmul.msk.f32.gmra.mxu1 %vm117_vm0, %v2912_v2 }
 0x7dc   :  { %2203 = vmatmul.msk.f32.gmra.mxu1 %vm117_vm0, %v2919_v3 }
 0x841   :  { %v894_v0 = vpop.f32.mrf.mxu1 }
 0x849   :  { %v897_v1 = vpop.f32.mrf.mxu1 }
 0x84a   :  { %v906_v4 = vpack.c.bf16 %v897_v1, %v894_v0 }
 0x84c   :  { %2212 = vmatmul.msk.bf16.vlgmr.msra.gmra.mxu3 %vm117_vm0, %v906_v4 }
 0x851   :  { %v900_v5 = vpop.f32.mrf.mxu1 }
 0x859   :  { %v903_v7 = vpop.f32.mrf.mxu1 }
 0x85a   :  { %v907_v8 = vpack.c.bf16 %v903_v7, %v900_v5 }
 0x85c   :  { %2213 = vmatmul.msk.bf16.gmra.mxu3 %vm117_vm0, %v907_v8 }
 0x8cf   :  { %v939_v15 = vpop.f32.mrf.mxu3 }
 0x8d0   :  { %v949_v17 = vmax.f32 %v939_v15, 0.0 }
 0x8d7   :  { %v941_v10 = vpop.f32.mrf.mxu3 }
 0x8d8   :  { %v950_v18 = vmax.f32 %v941_v10, 0.0 }
 0x8da   :  { %v953_v19 = vpack.c.bf16 %v950_v18, %v949_v17 }
 0x8dc   :  { %2230 = vmatmul.msk.bf16.vlgmr.msra.gmra.mxu2 %vm987_vm4, %v953_v19 }
 0x8df   :  { %v944_v40 = vpop.f32.mrf.mxu3 }
 0x8e0   :  { %v951_v21 = vmax.f32 %v944_v40, 0.0 }
 0x8e7   :  { %v946_v20 = vpop.f32.mrf.mxu3 }
 0x8e8   :  { %v952_v22 = vmax.f32 %v946_v20, 0.0 }
 0x8ea   :  { %v954_v23 = vpack.c.bf16 %v952_v22, %v951_v21 }
 0x8ec   :  { %2231 = vmatmul.msk.bf16.gmra.mxu2 %vm987_vm4, %v954_v23 }
 0x95f   :  { %v1003_v6 = vpop.f32.mrf.mxu2 }
 0x960   :  { %v1013_v32 = vadd.f32 %v1003_v6, %v894_v0 }
 0x967   :  { %v1005_v24 = vpop.f32.mrf.mxu2 }
 0x968   :  { %v1014_v31 = vadd.f32 %v1005_v24, %v897_v1 }
 0x96f   :  { %v1008_v25 = vpop.f32.mrf.mxu2 }
 0x970   :  { %v1015_v30 = vadd.f32 %v1008_v25, %v900_v5 }
 0x977   :  { %v1010_v26 = vpop.f32.mrf.mxu2 }
 0x978   :  { %v1016_v29 = vadd.f32 %v1010_v26, %v903_v7 }
 0x97a   :  { %1029 = vmatpush.msrb.mxu0 %v1016_v29  ;;  %2336 = vmatpush.msrb.mxu1 %v1016_v29 }
 0x97c   :  { %1030 = vmatpush.msrb.mxu0 %v1015_v30  ;;  %2337 = vmatpush.msrb.mxu1 %v1015_v30 }
 0x97e   :  { %1031 = vmatpush.msrb.mxu0 %v1014_v31  ;;  %2338 = vmatpush.msrb.mxu1 %v1014_v31 }
 0x980   :  { %1032 = vmatpush.msrb.mxu0 %v1013_v32  ;;  %2339 = vmatpush.msrb.mxu1 %v1013_v32 }
 0x981   :  { %2232 = vmatmul.msk.f32.vlgmr.msrb.gmra.mxu0 %vm117_vm0, %v2898_v61  ;;  %2235 = vmatmul.msk.f32.vlgmr.msrb.gmra.mxu1 %vm117_vm0, %v2919_v3 }
 0x982   :  { %1082 = vmatpush.bf16.msra.mxu1 %v2329_v33 }
 0x986   :  { %1083 = vmatpush.bf16.msra.mxu1 %v2328_v34 }
 0x989   :  { %2233 = vmatmul.msk.f32.gmra.mxu0 %vm117_vm0, %v2905_v28 }
 0x991   :  { %2234 = vmatmul.msk.f32.gmra.mxu0 %vm117_vm0, %v2912_v2 }
 0x9fe   :  { %v2947_v35 = vpop.f32.mrf.mxu0  ;;  %v2956_v38 = vpop.f32.mrf.mxu1 }
 0xa06   :  { %v2949_v36 = vpop.f32.mrf.mxu0 }
 0xa07   :  { %v1046_v37 = vpack.c.bf16 %v2949_v36, %v2947_v35 }
 0xa09   :  { %2245 = vmatmul.msk.bf16.vlgmr.msra.gmra.mxu1 %vm117_vm0, %v1046_v37 }
 0xa0e   :  { %v2954_v13 = vpop.f32.mrf.mxu0 }
 0xa0f   :  { %v1047_v39 = vpack.c.bf16 %v2956_v38, %v2954_v13 }
 0xa19   :  { %2246 = vmatmul.msk.bf16.gmra.mxu1 %vm117_vm0, %v1047_v39 }
 0xa86   :  { %v1085_v41 = vpop.f32.mrf.mxu1 }
 0xa87   :  { %v1086_v44 = vadd.f32 %v2361_v42, %v1085_v41 }
 0xa8e   :  { %v1087_v43 = vpop.f32.mrf.mxu1 }
 0xa8f   :  { %v1088_v45 = vadd.f32 %v2361_v42, %v1087_v43 }
 0xa91   :  { %v2964_v46 = vpack.c.bf16 %v1088_v45, %v1086_v44 }
 0xa93   :  { %1277 = vrot.lane.b32.xlu1 %v2964_v46, %s2618_s22  ;;  %1165 = vrot.lane.b32.xlu0 %v2964_v46, %s2617_s21 }
 0xa94   :  { %1167 = vrot.lane.b32.xlu2 %v2964_v46, %s2615_s19 }
 0xa96   :  { %v1090_v16 = vpop.f32.mrf.mxu1 }
 0xa97   :  { %v1091_v7 = vadd.f32 %v2361_v42, %v1090_v16 }
 0xa9b   :  { %1097 = vrot.lane.b32.xlu0 %v2964_v46, %s2616_s20 }
 0xa9c   :  { %1275 = vrot.lane.b32.xlu2 %v2964_v46, %s2619_s23 }
 0xa9e   :  { %v1092_v54 = vpop.f32.mrf.mxu1 }
 0xa9f   :  { %v1093_v8 = vadd.f32 %v2361_v42, %v1092_v54 }
 0xaa1   :  { %v2995_v9 = vpack.c.bf16 %v1093_v8, %v1091_v7 }
 0xaa3   :  { %1210 = vrot.lane.b32.xlu0 %v2964_v46, %s2614_s18 }
 0xaee   :  { %v1168_v47 = vpop.permute.xlu2 %1167 }
 0xaef   :  { %v1173_v48 = vsel %vm147_vm1, %v1168_v47, 0 }
 0xaf0   :  { %1182 = vmatpush.bf16.xpose.msra.mxu0 %v1173_v48 }
 0xaf6   :  { %v1276_v51 = vpop.permute.xlu2 %1275 }
 0xb05   :  { %v1278_v49 = vpop.permute.xlu1 %1277  ;;  %v1166_v50 = vpop.permute.xlu0 %1165 }
 0xb06   :  { %v1283_v14 = vsel %vm147_vm1, %v1278_v49, 0  ;;  %2249 = vmatmul.msk.bf16.vlgmr.msra.gmra.mxu0 %vm147_vm1, %v1166_v50 }
 0xb07   :  { %1292 = vmatpush.bf16.xpose.msrb.mxu1 %v1283_v14 }
 0xb0d   :  { %v1098_v52 = vpop.permute.xlu0 %1097 }
 0xb0e   :  { %v1103_v58 = vsel %vm147_vm1, %v1098_v52, 0  ;;  %2253 = vmatmul.msk.bf16.vlgmr.msrb.gmra.mxu1 %vm147_vm1, %v1276_v51  ;;  %v1234_v52 = vld [vmem:[#allocation5 + $0x14] sm:$0xf] }
 0xb0f   :  { %1112 = vmatpush.bf16.xpose.msrb.mxu3 %v1103_v58  ;;  %v1239_v58 = vsel %vm287_vm3, %v1234_v52, 0 }
 0xb15   :  { %v1211_v59 = vpop.permute.xlu0 %1210 }
 0xb16   :  { %2247 = vmatmul.msk.bf16.vlgmr.msrb.gmra.mxu3 %vm147_vm1, %v2964_v46 }
 0xb17   :  { %1223 = vmatpush.bf16.msra.mxu3 %v1211_v59  ;;  %v1344_v59 = vld [vmem:[#allocation5 + $0x18] sm:$0xf] }
 0xb18   :  { %v1349_v16 = vsel %vm287_vm3, %v1344_v59, 0 }
 0xb83   :  { %v1184_v55 = vpop.f32.mrf.mxu0 }
 0xb84   :  { %v1189_v56 = vsel %vm168_vm2, %v1184_v55, -inf }
 0xb85   :  { %1190 = vmax.xlane.f32.xlu2 %v1189_v56 }
 0xb8b   :  { %v1186_v57 = vpop.f32.mrf.mxu0  ;;  %v1294_v62 = vpop.f32.mrf.mxu1 }
 0xb8c   :  { %v1192_v60 = vsel %vm168_vm2, %v1186_v57, -inf  ;;  %v1299_v27 = vsel %vm168_vm2, %v1294_v62, -inf }
 0xb8d   :  { %1193 = vmax.xlane.f32.xlu1 %v1192_v60  ;;  %1300 = vmax.xlane.f32.xlu0 %v1299_v27 }
 0xb93   :  { %v1296_v63 = vpop.f32.mrf.mxu1 }
 0xb94   :  { %v1302_v53 = vsel %vm168_vm2, %v1296_v63, -inf }
 0xb95   :  { %1303 = vmax.xlane.f32.xlu2 %v1302_v53 }
 0xb99   :  { %v1114_v0 = vpop.f32.mrf.mxu3 }
 0xb9a   :  { %v1119_v1 = vsel %vm168_vm2, %v1114_v0, -inf }
 0xb9d   :  { %1120 = vmax.xlane.f32.xlu2 %v1119_v1 }
 0xba1   :  { %v1116_v4 = vpop.f32.mrf.mxu3 }
 0xba2   :  { %v1122_v5 = vsel %vm168_vm2, %v1116_v4, -inf }
 0xba3   :  { %1123 = vmax.xlane.f32.xlu0 %v1122_v5 }
 0xba6   :  { %1320 = vrot.lane.b32.xlu1 %v2964_v46, %s2620_s0 }
 0xbb5   :  { %1140 = vrot.lane.b32.xlu2 %v2964_v46, %s2610_s25 }
 0xbbd   :  { %1461 = vrot.lane.b32.xlu2 %v2995_v9, %s2616_s20  ;;  %s2152_s20 = sshll.u32 %s3211_s11, 4  ;;  %s2153_s20 = int_to_ptr.hbm [resolvable:$true] %s2152_s20 }
 0xbf8   :  { %v1191_v11 = vpop.xlane.xlu2 %1190 }
 0xbf9   :  { %v1195_v12 = vsub.f32 %v1184_v55, %v1191_v11  ;;  %v1164_v55 = vld [vmem:[#allocation5 + $0x10] sm:$0xf] }
 0xbfa   :  { %v1259_v56 = vsel %vm287_vm3, %v1164_v55, 0 }
 0xbfb   :  { %v1197_v15 = vmul.f32 1.442695, %v1195_v12  ;;  %1268 = vmatpush.bf16.msrb.mxu0 %v1259_v56 }
 0xbfd   :  { %2429 = vpow2.f32 %v1197_v15 }
 0xc00   :  { %v1194_v10 = vpop.xlane.xlu1 %1193  ;;  %v1301_v17 = vpop.xlane.xlu0 %1300 }
 0xc01   :  { %v1196_v18 = vsub.f32 %v1186_v57, %v1194_v10  ;;  %v1305_v19 = vsub.f32 %v1294_v62, %v1301_v17 }
 0xc03   :  { %v2430_v40 = vpop.eup %2429  ;;  %v1199_v20 = vmul.f32 1.442695, %v1196_v18  ;;  %v1307_v21 = vmul.f32 1.442695, %v1305_v19 }
 0xc04   :  { %v1201_v22 = vsel %vm168_vm2, %v2430_v40, 0.0 }
 0xc05   :  { %2431 = vpow2.f32 %v1199_v20  ;;  %1202 = vadd.xlane.f32.xlu0 %v1201_v22 }
 0xc06   :  { %2433 = vpow2.f32 %v1307_v21 }
 0xc08   :  { %v1304_v23 = vpop.xlane.xlu2 %1303 }
 0xc09   :  { %v1306_v6 = vsub.f32 %v1296_v63, %v1304_v23 }
 0xc0b   :  { %v2432_v24 = vpop.eup %2431  ;;  %v1309_v25 = vmul.f32 1.442695, %v1306_v6 }
 0xc0c   :  { %v2434_v26 = vpop.eup %2433  ;;  %v1209_v29 = vpack.c.bf16 %v2432_v24, %v2430_v40  ;;  %v1204_v30 = vsel %vm168_vm2, %v2432_v24, 0.0 }
 0xc0d   :  { %2435 = vpow2.f32 %v1309_v25  ;;  %1205 = vadd.xlane.f32.xlu1 %v1204_v30  ;;  %v1311_v31 = vsel %vm168_vm2, %v2434_v26, 0.0 }
 0xc0e   :  { %1312 = vadd.xlane.f32.xlu0 %v1311_v31  ;;  %2250 = vmatmul.msk.bf16.vlgmr.msra.gmra.mxu3 %vm168_vm2, %v1209_v29 }
 0xc10   :  { %v1121_v32 = vpop.xlane.xlu2 %1120 }
 0xc11   :  { %v1125_v33 = vsub.f32 %v1114_v0, %v1121_v32 }
 0xc13   :  { %v2436_v34 = vpop.eup %2435  ;;  %v1127_v37 = vmul.f32 1.442695, %v1125_v33 }
 0xc14   :  { %v1314_v39 = vsel %vm168_vm2, %v2436_v34, 0.0  ;;  %v1319_v48 = vpack.c.bf16 %v2436_v34, %v2434_v26 }
 0xc15   :  { %2437 = vpow2.f32 %v1127_v37 }
 0xc16   :  { %1315 = vadd.xlane.f32.xlu0 %v1314_v39  ;;  %v1124_v41 = vpop.xlane.xlu0 %1123 }
 0xc17   :  { %v1126_v42 = vsub.f32 %v1116_v4, %v1124_v41 }
 0xc18   :  { %v1321_v43 = vpop.permute.xlu1 %1320  ;;  %v1141_v44 = vpop.permute.xlu2 %1140 }
 0xc19   :  { %v1129_v45 = vmul.f32 1.442695, %v1126_v42  ;;  %1153 = vmatpush.bf16.msrb.mxu2 %v1141_v44  ;;  %1333 = vmatpush.bf16.msrb.mxu3 %v1321_v43 }
 0xc1b   :  { %v2438_v47 = vpop.eup %2437  ;;  %2439 = vpow2.f32 %v1129_v45 }
 0xc1c   :  { %v1131_v49 = vsel %vm168_vm2, %v2438_v47, 0.0 }
 0xc1d   :  { %1248 = vmatpush.bf16.msra.mxu2 %v1239_v58 }
 0xc1e   :  { %1132 = vadd.xlane.f32.xlu0 %v1131_v49  ;;  %2254 = vmatmul.msk.bf16.vlgmr.msrb.gmra.mxu3 %vm168_vm2, %v1319_v48 }
 0xc20   :  { %v1462_v5 = vpop.permute.xlu2 %1461 }
 0xc21   :  { %v2440_v50 = vpop.eup %2439  ;;  %v1467_v11 = vsel %vm147_vm1, %v1462_v5, 0 }
 0xc22   :  { %v1139_v14 = vpack.c.bf16 %v2440_v50, %v2438_v47  ;;  %v1134_v51 = vsel %vm168_vm2, %v2440_v50, 0.0 }
 0xc23   :  { %1135 = vadd.xlane.f32.xlu2 %v1134_v51 }
 0xc24   :  { %2248 = vmatmul.msk.bf16.vlgmr.msrb.gmra.mxu2 %vm168_vm2, %v1139_v14 }
 0xc25   :  { %1358 = vmatpush.bf16.msrb.mxu2 %v1349_v16 }
 0xc26   :  { %1367 = vrot.lane.b32.xlu1 %v2964_v46, %s2622_s30 }
 0xc2e   :  { %1504 = vrot.lane.b32.xlu1 %v2995_v9, %s2610_s25  ;;  %s2625_s25 = smov [#allocation8]  }
 0xc32   :  { %1369 = vrot.lane.b32.xlu0 %v2964_v46, %s2621_s29 }
 0xc78   :  { %v1203_v54 = vpop.xlane.xlu0 %1202 }
 0xc79   :  { %2441 = vrcp.f32 %v1203_v54 }
 0xc7f   :  { %v2442_v63 = vpop.eup %2441 }
 0xc80   :  { %v1206_v62 = vpop.xlane.xlu1 %1205 }
 0xc81   :  { %v1313_v57 = vpop.xlane.xlu0 %1312  ;;  %2443 = vrcp.f32 %v1206_v62 }
 0xc82   :  { %2445 = vrcp.f32 %v1313_v57 }
 0xc87   :  { %v2444_v53 = vpop.eup %2443 }
 0xc88   :  { %v2446_v19 = vpop.eup %2445 }
 0xc89   :  { %v1316_v27 = vpop.xlane.xlu0 %1315 }
 0xc8a   :  { %2447 = vrcp.f32 %v1316_v27 }
 0xc90   :  { %v2448_v40 = vpop.eup %2447 }
 0xc91   :  { %v1225_v60 = vpop.f32.mrf.mxu3  ;;  %v1133_v7 = vpop.xlane.xlu0 %1132 }
 0xc92   :  { %v1230_v1 = vmul.f32 %v2442_v63, %v1225_v60  ;;  %2449 = vrcp.f32 %v1133_v7 }
 0xc96   :  { %v1136_v17 = vpop.xlane.xlu2 %1135 }
 0xc97   :  { %2451 = vrcp.f32 %v1136_v17 }
 0xc98   :  { %v1368_v21 = vpop.permute.xlu1 %1367  ;;  %v2450_v24 = vpop.eup %2449 }
 0xc99   :  { %v1227_v0 = vpop.f32.mrf.mxu3 }
 0xc9a   :  { %v1231_v4 = vmul.f32 %v2444_v53, %v1227_v0 }
 0xc9c   :  { %v1232_v8 = vpack.c.bf16 %v1231_v4, %v1230_v1 }
 0xc9d   :  { %v2452_v25 = vpop.eup %2451 }
 0xc9e   :  { %2251 = vmatmul.msk.bf16.vlgmr.msra.gmra.mxu2 %vm147_vm1, %v1232_v8 }
 0xc9f   :  { %1476 = vmatpush.bf16.xpose.msra.mxu2 %v1467_v11 }
 0xca0   :  { %v1505_v32 = vpop.permute.xlu1 %1504 }
 0xca1   :  { %v1335_v12 = vpop.f32.mrf.mxu3 }
 0xca2   :  { %v1340_v22 = vmul.f32 %v2446_v19, %v1335_v12 }
 0xca4   :  { %v1370_v15 = vpop.permute.xlu0 %1369 }
 0xca5   :  { %v1375_v10 = vsel %vm147_vm1, %v1370_v15, 0 }
 0xca6   :  { %1384 = vmatpush.bf16.xpose.msra.mxu0 %v1375_v10 }
 0xca7   :  { %v1155_v18 = vpop.f32.mrf.mxu2 }
 0xca8   :  { %v1160_v29 = vmul.f32 %v2450_v24, %v1155_v18 }
 0xca9   :  { %v1337_v20 = vpop.f32.mrf.mxu3 }
 0xcaa   :  { %v1341_v23 = vmul.f32 %v2448_v40, %v1337_v20 }
 0xcac   :  { %v1342_v6 = vpack.c.bf16 %v1341_v23, %v1340_v22 }
 0xcae   :  { %2255 = vmatmul.msk.bf16.vlgmr.msrb.gmra.mxu2 %vm147_vm1, %v1342_v6 }
 0xcaf   :  { %v1157_v26 = vpop.f32.mrf.mxu2  ;;  %1605 = vmatpush.bf16.msrb.mxu2 %v1239_v58 }
 0xcb0   :  { %v1161_v30 = vmul.f32 %v2452_v25, %v1157_v26 }
 0xcb2   :  { %v1162_v31 = vpack.c.bf16 %v1161_v30, %v1160_v29 }
 0xcb4   :  { %2252 = vmatmul.msk.bf16.vlgmr.msrb.gmra.mxu0 %vm147_vm1, %v1162_v31 }
 0xcb5   :  { %1517 = vmatpush.bf16.msrb.mxu0 %v1505_v32 }
 0xcbe   :  { %2259 = vmatmul.msk.bf16.vlgmr.msra.gmra.mxu2 %vm147_vm1, %v2995_v9 }
 0xcbf   :  { %1707 = vmatpush.bf16.msra.mxu2 %v1349_v16 }
 0xcc4   :  { %2256 = vmatmul.msk.bf16.vlgmr.msra.gmra.mxu0 %vm147_vm1, %v1368_v21 }
 0xcc5   :  { %1622 = vmatpush.bf16.msra.mxu0 %v1259_v56 }
 0xd21   :  { %v1250_v33 = vpop.f32.mrf.mxu2 }
 0xd29   :  { %v1252_v34 = vpop.f32.mrf.mxu2 }
 0xd31   :  { %v1270_v37 = vpop.f32.mrf.mxu0  ;;  %v1360_v39 = vpop.f32.mrf.mxu2 }
 0xd32   :  { %v1271_v41 = vadd.f32 %v1270_v37, %v1250_v33 }
 0xd34   :  { %v3025_v42 = vadd.f32 %v1360_v39, %v1271_v41 }
 0xd39   :  { %v1272_v43 = vpop.f32.mrf.mxu0  ;;  %v1362_v44 = vpop.f32.mrf.mxu2 }
 0xd3a   :  { %v1273_v45 = vadd.f32 %v1272_v43, %v1252_v34  ;;  %v1436_v43 = vld [vmem:[#allocation5 + $0x1c] sm:$0xf] }
 0xd3c   :  { %v3027_v47 = vadd.f32 %v1362_v44, %v1273_v45  ;;  %v3060_v44 = vsel %vm287_vm3, %v1436_v43, 0 }
 0xd3d   :  { %1450 = vmatpush.bf16.msra.mxu3 %v3060_v44 }
 0xd41   :  { %v1386_v48 = vpop.f32.mrf.mxu0  ;;  %v1478_v49 = vpop.f32.mrf.mxu2 }
 0xd42   :  { %v1483_v50 = vsel %vm168_vm2, %v1478_v49, -inf  ;;  %v1391_v59 = vsel %vm168_vm2, %v1386_v48, -inf }
 0xd43   :  { %1484 = vmax.xlane.f32.xlu0 %v1483_v50 }
 0xd49   :  { %v1388_v14 = vpop.f32.mrf.mxu0  ;;  %v1480_v51 = vpop.f32.mrf.mxu2 }
 0xd4a   :  { %v1486_v52 = vsel %vm168_vm2, %v1480_v51, -inf  ;;  %v1394_v58 = vsel %vm168_vm2, %v1388_v14, -inf }
 0xd4b   :  { %1487 = vmax.xlane.f32.xlu2 %v1486_v52  ;;  %1395 = vmax.xlane.f32.xlu1 %v1394_v58 }
 0xd53   :  { %1392 = vmax.xlane.f32.xlu2 %v1391_v59 }
 0xd57   :  { %1529 = vrot.lane.b32.xlu0 %v2995_v9, %s2615_s19 }
 0xd64   :  { %1527 = vrot.lane.b32.xlu1 %v2995_v9, %s2617_s21  ;;  %s2627_s21 = smov 8  }
 0xd6b   :  { %1412 = vrot.lane.b32.xlu2 %v2964_v46, %s2623_s5 }
 0xd6c   :  { %1631 = vrot.lane.b32.xlu1 %v2995_v9, %s2618_s22 }
 0xd74   :  { %1716 = vrot.lane.b32.xlu1 %v2995_v9, %s2622_s30 }
 0xdb6   :  { %v1485_v16 = vpop.xlane.xlu0 %1484 }
 0xdb7   :  { %v1489_v54 = vsub.f32 %v1478_v49, %v1485_v16 }
 0xdb9   :  { %v1491_v55 = vmul.f32 1.442695, %v1489_v54 }
 0xdbb   :  { %2453 = vpow2.f32 %v1491_v55 }
 0xdbe   :  { %v1488_v56 = vpop.xlane.xlu2 %1487  ;;  %v1396_v57 = vpop.xlane.xlu1 %1395 }
 0xdbf   :  { %v1490_v62 = vsub.f32 %v1480_v51, %v1488_v56  ;;  %v1398_v63 = vsub.f32 %v1388_v14, %v1396_v57 }
 0xdc1   :  { %v2454_v60 = vpop.eup %2453  ;;  %v1493_v27 = vmul.f32 1.442695, %v1490_v62  ;;  %v1401_v46 = vmul.f32 1.442695, %v1398_v63 }
 0xdc2   :  { %v1495_v53 = vsel %vm168_vm2, %v2454_v60, 0.0 }
 0xdc3   :  { %1496 = vadd.xlane.f32.xlu2 %v1495_v53  ;;  %2455 = vpow2.f32 %v1493_v27 }
 0xdc4   :  { %2457 = vpow2.f32 %v1401_v46 }
 0xdc6   :  { %v1393_v0 = vpop.xlane.xlu2 %1392 }
 0xdc7   :  { %v1397_v1 = vsub.f32 %v1386_v48, %v1393_v0 }
 0xdc9   :  { %v1399_v4 = vmul.f32 1.442695, %v1397_v1  ;;  %v2456_v5 = vpop.eup %2455  ;;  %v1530_v11 = vpop.permute.xlu0 %1529 }
 0xdca   :  { %v1503_v7 = vpack.c.bf16 %v2456_v5, %v2454_v60  ;;  %v1498_v8 = vsel %vm168_vm2, %v2456_v5, 0.0  ;;  %v1535_v15 = vsel %vm147_vm1, %v1530_v11, 0  ;;  %v2458_v10 = vpop.eup %2457 }
 0xdcb   :  { %2459 = vpow2.f32 %v1399_v4  ;;  %1499 = vadd.xlane.f32.xlu0 %v1498_v8  ;;  %v1406_v22 = vsel %vm168_vm2, %v2458_v10, 0.0 }
 0xdcc   :  { %2260 = vmatmul.msk.bf16.vlgmr.msrb.gmra.mxu0 %vm168_vm2, %v1503_v7 }
 0xdce   :  { %v1413_v12 = vpop.permute.xlu2 %1412 }
 0xdcf   :  { %1425 = vmatpush.bf16.msra.mxu1 %v1413_v12 }
 0xdd1   :  { %v2460_v17 = vpop.eup %2459 }
 0xdd2   :  { %v1411_v18 = vpack.c.bf16 %v2458_v10, %v2460_v17  ;;  %v1403_v19 = vsel %vm168_vm2, %v2460_v17, 0.0 }
 0xdd3   :  { %1544 = vmatpush.bf16.xpose.msrb.mxu1 %v1535_v15  ;;  %1404 = vadd.xlane.f32.xlu1 %v1403_v19 }
 0xdd4   :  { %2257 = vmatmul.msk.bf16.vlgmr.msra.gmra.mxu1 %vm168_vm2, %v1411_v18 }
 0xdd6   :  { %v1528_v40 = vpop.permute.xlu1 %1527 }
 0xddb   :  { %1629 = vrot.lane.b32.xlu2 %v2995_v9, %s2619_s23 }
 0xdde   :  { %v1632_v20 = vpop.permute.xlu1 %1631 }
 0xddf   :  { %v1637_v21 = vsel %vm147_vm1, %v1632_v20, 0  ;;  %1718 = vrot.lane.b32.xlu0 %v2995_v9, %s2621_s29 }
 0xde0   :  { %1646 = vmatpush.bf16.xpose.msra.mxu1 %v1637_v21 }
 0xde4   :  { %2261 = vmatmul.msk.bf16.vlgmr.msrb.gmra.mxu1 %vm147_vm1, %v1528_v40 }
 0xde6   :  { %v1717_v49 = vpop.permute.xlu1 %1716 }
 0xe04   :  { %1407 = vadd.xlane.f32.xlu2 %v1406_v22 }
 0xe36   :  { %v1497_v23 = vpop.xlane.xlu2 %1496 }
 0xe37   :  { %2461 = vrcp.f32 %v1497_v23 }
 0xe3d   :  { %v2462_v26 = vpop.eup %2461 }
 0xe3e   :  { %v1630_v6 = vpop.permute.xlu2 %1629  ;;  %v1500_v24 = vpop.xlane.xlu0 %1499 }
 0xe3f   :  { %2265 = vmatmul.msk.bf16.vlgmr.msra.gmra.mxu1 %vm147_vm1, %v1630_v6  ;;  %2463 = vrcp.f32 %v1500_v24 }
 0xe45   :  { %v2464_v30 = vpop.eup %2463 }
 0xe46   :  { %v1405_v51 = vpop.xlane.xlu1 %1404 }
 0xe47   :  { %2465 = vrcp.f32 %v1405_v51 }
 0xe49   :  { %v1519_v25 = vpop.f32.mrf.mxu0 }
 0xe4a   :  { %v1524_v33 = vmul.f32 %v2462_v26, %v1519_v25 }
 0xe4d   :  { %v2466_v58 = vpop.eup %2465 }
 0xe51   :  { %v1427_v29 = vpop.f32.mrf.mxu1  ;;  %v1521_v31 = vpop.f32.mrf.mxu0 }
 0xe52   :  { %v1719_v32 = vpop.permute.xlu0 %1718  ;;  %v1525_v34 = vmul.f32 %v2464_v30, %v1521_v31  ;;  %v1432_v16 = vmul.f32 %v2466_v58, %v1427_v29 }
 0xe53   :  { %v1724_v37 = vsel %vm147_vm1, %v1719_v32, 0 }
 0xe54   :  { %1733 = vmatpush.bf16.xpose.msrb.mxu0 %v1724_v37  ;;  %v1526_v39 = vpack.c.bf16 %v1525_v34, %v1524_v33 }
 0xe56   :  { %2264 = vmatmul.msk.bf16.vlgmr.msra.gmra.mxu0 %vm147_vm1, %v1526_v39 }
 0xe59   :  { %v1429_v41 = vpop.f32.mrf.mxu1 }
 0xe61   :  { %v1546_v45 = vpop.f32.mrf.mxu1 }
 0xe62   :  { %v1551_v48 = vsel %vm168_vm2, %v1546_v45, -inf }
 0xe63   :  { %1552 = vmax.xlane.f32.xlu0 %v1551_v48 }
 0xe66   :  { %2268 = vmatmul.msk.bf16.vlgmr.msrb.gmra.mxu0 %vm147_vm1, %v1717_v49 }
 0xe69   :  { %v1548_v50 = vpop.f32.mrf.mxu1 }
 0xe6a   :  { %v1554_v14 = vsel %vm168_vm2, %v1548_v50, -inf }
 0xe6b   :  { %1555 = vmax.xlane.f32.xlu1 %v1554_v14 }
 0xe77   :  { %v1408_v52 = vpop.xlane.xlu2 %1407 }
 0xe78   :  { %2467 = vrcp.f32 %v1408_v52 }
 0xe7e   :  { %v2468_v59 = vpop.eup %2467 }
 0xe7f   :  { %v1433_v54 = vmul.f32 %v2468_v59, %v1429_v41 }
 0xe81   :  { %v1434_v55 = vpack.c.bf16 %v1433_v54, %v1432_v16 }
 0xe83   :  { %2258 = vmatmul.msk.bf16.vlgmr.msra.gmra.mxu3 %vm147_vm1, %v1434_v55 }
 0xe84   :  { %1572 = vrot.lane.b32.xlu1 %v2995_v9, %s2614_s18 }
 0xebc   :  { %v1648_v56 = vpop.f32.mrf.mxu1 }
 0xebd   :  { %v1653_v57 = vsel %vm168_vm2, %v1648_v56, -inf }
 0xebe   :  { %1654 = vmax.xlane.f32.xlu2 %v1653_v57 }
 0xec4   :  { %v1650_v62 = vpop.f32.mrf.mxu1 }
 0xec5   :  { %v1656_v60 = vsel %vm168_vm2, %v1650_v62, -inf }
 0xec6   :  { %1657 = vmax.xlane.f32.xlu0 %v1656_v60 }
 0xed3   :  { %v3071_v27 = vpop.f32.mrf.mxu0 }
 0xed6   :  { %v1553_v63 = vpop.xlane.xlu0 %1552 }
 0xed7   :  { %v1557_v53 = vsub.f32 %v1546_v45, %v1553_v63 }
 0xed9   :  { %v1559_v46 = vmul.f32 1.442695, %v1557_v53 }
 0xedb   :  { %2469 = vpow2.f32 %v1559_v46  ;;  %v3073_v0 = vpop.f32.mrf.mxu0 }
 0xede   :  { %v1556_v5 = vpop.xlane.xlu1 %1555 }
 0xedf   :  { %v1558_v11 = vsub.f32 %v1548_v50, %v1556_v5 }
 0xee1   :  { %v2470_v1 = vpop.eup %2469  ;;  %v1561_v12 = vmul.f32 1.442695, %v1558_v11 }
 0xee2   :  { %v1563_v4 = vsel %vm168_vm2, %v2470_v1, 0.0 }
 0xee3   :  { %1564 = vadd.xlane.f32.xlu1 %v1563_v4  ;;  %v1735_v7 = vpop.f32.mrf.mxu0  ;;  %2471 = vpow2.f32 %v1561_v12 }
 0xee4   :  { %v1740_v8 = vsel %vm168_vm2, %v1735_v7, -inf }
 0xee5   :  { %1741 = vmax.xlane.f32.xlu2 %v1740_v8 }
 0xee9   :  { %v2472_v17 = vpop.eup %2471 }
 0xeea   :  { %v1571_v19 = vpack.c.bf16 %v2472_v17, %v2470_v1  ;;  %v1566_v21 = vsel %vm168_vm2, %v2472_v17, 0.0 }
 0xeeb   :  { %v1737_v15 = vpop.f32.mrf.mxu0 }
 0xeec   :  { %v1743_v10 = vsel %vm168_vm2, %v1737_v15, -inf }
 0xeed   :  { %1744 = vmax.xlane.f32.xlu0 %v1743_v10 }
 0xef6   :  { %v1573_v18 = vpop.permute.xlu1 %1572 }
 0xef7   :  { %1585 = vmatpush.bf16.msrb.mxu3 %v1573_v18 }
 0xefa   :  { %2262 = vmatmul.msk.bf16.vlgmr.msrb.gmra.mxu3 %vm168_vm2, %v1571_v19 }
 0xefd   :  { %1674 = vrot.lane.b32.xlu2 %v2995_v9, %s2620_s0 }
 0xf01   :  { %1761 = vrot.lane.b32.xlu0 %v2995_v9, %s2623_s5 }
 0xf06   :  { %v1452_v40 = vpop.f32.mrf.mxu3 }
 0xf07   :  { %v3084_v20 = vadd.f32 %v1452_v40, %v3025_v42 }
 0xf0e   :  { %v1454_v52 = vpop.f32.mrf.mxu3 }
 0xf2b   :  { %1567 = vadd.xlane.f32.xlu0 %v1566_v21 }
 0xf31   :  { %v1655_v22 = vpop.xlane.xlu2 %1654 }
 0xf32   :  { %v1659_v23 = vsub.f32 %v1648_v56, %v1655_v22 }
 0xf34   :  { %v1661_v6 = vmul.f32 1.442695, %v1659_v23 }
 0xf36   :  { %2473 = vpow2.f32 %v1661_v6 }
 0xf39   :  { %v1658_v24 = vpop.xlane.xlu0 %1657 }
 0xf3a   :  { %v1660_v25 = vsub.f32 %v1650_v62, %v1658_v24 }
 0xf3c   :  { %v2474_v26 = vpop.eup %2473  ;;  %v1663_v29 = vmul.f32 1.442695, %v1660_v25 }
 0xf3d   :  { %v1665_v30 = vsel %vm168_vm2, %v2474_v26, 0.0 }
 0xf3e   :  { %2475 = vpow2.f32 %v1663_v29  ;;  %1666 = vadd.xlane.f32.xlu2 %v1665_v30 }
 0xf44   :  { %v2476_v9 = vpop.eup %2475 }
 0xf45   :  { %v1668_v31 = vsel %vm168_vm2, %v2476_v9, 0.0  ;;  %v1673_v41 = vpack.c.bf16 %v2476_v9, %v2474_v26 }
 0xf46   :  { %1669 = vadd.xlane.f32.xlu1 %v1668_v31 }
 0xf56   :  { %v1565_v58 = vpop.xlane.xlu1 %1564 }
 0xf58   :  { %v1742_v42 = vpop.xlane.xlu2 %1741 }
 0xf59   :  { %v1746_v32 = vsub.f32 %v1735_v7, %v1742_v42 }
 0xf5b   :  { %v1748_v33 = vmul.f32 1.442695, %v1746_v32  ;;  %v2362_v32 = vld [vmem:[%s3206_s6 + $0x1] ss:$0 sm:$0xff]  ;;  %s2150_s6 = sshll.u32 %s2625_s25, 4  ;;  %s2151_s6 = int_to_ptr.vmem [resolvable:$true] %s2150_s6 }
 0xf5d   :  { %2477 = vpow2.f32 %v1748_v33  ;;  %v1458_v33 = vadd.f32 %v1454_v52, %v3027_v47 }
 0xf60   :  { %v1745_v34 = vpop.xlane.xlu0 %1744  ;;  %v1675_v37 = vpop.permute.xlu2 %1674 }
 0xf61   :  { %v1747_v39 = vsub.f32 %v1737_v15, %v1745_v34  ;;  %1687 = vmatpush.bf16.msra.mxu3 %v1675_v37 }
 0xf63   :  { %v2478_v43 = vpop.eup %2477  ;;  %v1750_v45 = vmul.f32 1.442695, %v1747_v39 }
 0xf64   :  { %2266 = vmatmul.msk.bf16.vlgmr.msra.gmra.mxu3 %vm168_vm2, %v1673_v41  ;;  %v1752_v48 = vsel %vm168_vm2, %v2478_v43, 0.0  ;;  %v1809_v41 = vadd.f32 %v2362_v32, %v1458_v33 }
 0xf65   :  { %1794 = vmatpush.bf16.msrb.mxu3 %v3060_v44  ;;  %2479 = vpow2.f32 %v1750_v45  ;;  %1753 = vadd.xlane.f32.xlu1 %v1752_v48 }
 0xf66   :  { %2481 = vrcp.f32 %v1565_v58  ;;  %v1813_v45 = vadd.f32 %v1809_v41, %v2949_v36 }
 0xf6b   :  { %v2480_v49 = vpop.eup %2479 }
 0xf6c   :  { %v1755_v50 = vsel %vm168_vm2, %v2480_v49, 0.0  ;;  %v1760_v51 = vpack.c.bf16 %v2480_v49, %v2478_v43  ;;  %v2482_v16 = vpop.eup %2481  ;;  %v2333_v49 = vld [vmem:[%s3208_s8 + $0x28] sm:$0xff] }
 0xf6d   :  { %1756 = vadd.xlane.f32.xlu2 %v1755_v50  ;;  %v2332_v50 = vld [vmem:[%s3208_s8 + $0x20] sm:$0xff] }
 0xf73   :  { %v1762_v14 = vpop.permute.xlu0 %1761 }
 0xf74   :  { %1774 = vmatpush.bf16.msrb.mxu1 %v1762_v14 }
 0xf77   :  { %2269 = vmatmul.msk.bf16.vlgmr.msrb.gmra.mxu1 %vm168_vm2, %v1760_v51 }
 0xf7d   :  { %v1587_v44 = vpop.f32.mrf.mxu3 }
 0xf7e   :  { %v1592_v56 = vmul.f32 %v2482_v16, %v1587_v44 }
 0xf85   :  { %v1589_v55 = vpop.f32.mrf.mxu3 }
 0xf9e   :  { %v1568_v59 = vpop.xlane.xlu0 %1567 }
 0xf9f   :  { %2483 = vrcp.f32 %v1568_v59 }
 0xfa5   :  { %v2484_v54 = vpop.eup %2483 }
 0xfa6   :  { %v1593_v57 = vmul.f32 %v2484_v54, %v1589_v55 }
 0xfa8   :  { %v1594_v62 = vpack.c.bf16 %v1593_v57, %v1592_v56 }
 0xfaa   :  { %2263 = vmatmul.msk.bf16.vlgmr.msrb.gmra.mxu2 %vm147_vm1, %v1594_v62 }
 0xfb1   :  { %v1667_v60 = vpop.xlane.xlu2 %1666 }
 0xfb2   :  { %2485 = vrcp.f32 %v1667_v60 }
 0xfb8   :  { %v2486_v46 = vpop.eup %2485 }
 0xfb9   :  { %v1670_v63 = vpop.xlane.xlu1 %1669 }
 0xfba   :  { %2487 = vrcp.f32 %v1670_v63 }
 0xfc0   :  { %v2488_v1 = vpop.eup %2487 }
 0xfd8   :  { %v1754_v8 = vpop.xlane.xlu1 %1753 }
 0xfd9   :  { %2489 = vrcp.f32 %v1754_v8  ;;  %v2505_v8 = vld [vmem:[%s3201_s1 + $0x10] sm:$0xff] }
 0xfdf   :  { %v2490_v10 = vpop.eup %2489 }
 0xfe0   :  { %v1757_v12 = vpop.xlane.xlu2 %1756 }
 0xfe1   :  { %2491 = vrcp.f32 %v1757_v12 }
 0xfe7   :  { %v1689_v53 = vpop.f32.mrf.mxu3  ;;  %v2492_v17 = vpop.eup %2491 }
 0xfe8   :  { %v1694_v5 = vmul.f32 %v2486_v46, %v1689_v53 }
 0xfef   :  { %v1691_v4 = vpop.f32.mrf.mxu3 }
 0xff0   :  { %v1695_v7 = vmul.f32 %v2488_v1, %v1691_v4 }
 0xff2   :  { %v1696_v11 = vpack.c.bf16 %v1695_v7, %v1694_v5  ;;  %v2503_v5 = vld [vmem:[%s3201_s1] sm:$0xff]  ;;  %v2504_v7 = vld [vmem:[%s3201_s1 + $0x8] sm:$0xff] }
 0xff4   :  { %2267 = vmatmul.msk.bf16.vlgmr.msra.gmra.mxu2 %vm147_vm1, %v1696_v11  ;;  %v1776_v15 = vpop.f32.mrf.mxu1  ;;  %v2506_v11 = vld [vmem:[%s3201_s1 + $0x18] sm:$0xff] }
 0xff5   :  { %v1781_v19 = vmul.f32 %v2490_v10, %v1776_v15 }
 0xffc   :  { %v1778_v18 = vpop.f32.mrf.mxu1 }
 0xffd   :  { %v1782_v40 = vmul.f32 %v2492_v17, %v1778_v18 }
 0xfff   :  { %v1783_v21 = vpack.c.bf16 %v1782_v40, %v1781_v19 }
0x1001   :  { %2270 = vmatmul.msk.bf16.vlgmr.msrb.gmra.mxu3 %vm147_vm1, %v1783_v21 }
0x102d   :  { %v1607_v22 = vpop.f32.mrf.mxu2 }
0x102e   :  { %v1625_v25 = vadd.f32 %v3071_v27, %v1607_v22  ;;  %v1808_v27 = vadd.f32 %v2362_v32, %v3084_v20  ;;  %v2624_v22 = vmov 32.0  }
0x102f   :  { %2493 = vrcp.f32 %v2624_v22 }
0x1030   :  { %v1812_v48 = vadd.f32 %v1808_v27, %v2947_v35  ;;  %v2335_v35 = vld [vmem:[%s3208_s8 + $0x38] sm:$0xff] }
0x1031   :  { %1938 = vmatpush.bf16.msra.mxu1 %v2335_v35 }
0x1035   :  { %v1609_v23 = vpop.f32.mrf.mxu2 }
0x1036   :  { %v1627_v29 = vadd.f32 %v3073_v0, %v1609_v23  ;;  %v2494_v23 = vpop.eup %2493 }
0x1037   :  { %vm2003_vm5 = vweird.f32 %v2494_v23 }
0x1077   :  { %v1709_v6 = vpop.f32.mrf.mxu2 }
0x1078   :  { %v1714_v30 = vadd.f32 %v1709_v6, %v1625_v25  ;;  %v1999_v6 = vmul.f32 32.0, %v2494_v23 }
0x107f   :  { %v1711_v26 = vpop.f32.mrf.mxu2 }
0x1080   :  { %v1715_v9 = vadd.f32 %v1711_v26, %v1627_v29 }
0x1084   :  { %v1796_v24 = vpop.f32.mrf.mxu3 }
0x1085   :  { %v1801_v31 = vadd.f32 %v1796_v24, %v1714_v30  ;;  %v2000_v24 = vsub.f32 1.0, %v1999_v6 }
0x1087   :  { %v1810_v37 = vadd.f32 %v2362_v32, %v1801_v31  ;;  %v2001_v25 = vmul.f32 %v2494_v23, %v2000_v24 }
0x1089   :  { %v1814_v0 = vadd.f32 %v1810_v37, %v2954_v13  ;;  %v2331_v13 = vld [vmem:[#allocation7 + $0x18] sm:$0xff]  ;;  %v2002_v26 = vadd.f32 %v2494_v23, %v2001_v25 }
0x108a   :  { %1876 = vmatpush.bf16.msra.mxu0 %v2331_v13 }
0x108b   :  { %v2004_v29 = vsel %vm2003_vm5, %v2494_v23, %v2002_v26  ;;  %v2363_v23 = vld [vmem:[%s3209_s9] ss:$0 sm:$0xff] }
0x108c   :  { %v1798_v42 = vpop.f32.mrf.mxu3  ;;  %v2364_v26 = vld [vmem:[%s3210_s10] ss:$0 sm:$0xff] }
0x108d   :  { %v1802_v34 = vadd.f32 %v1798_v42, %v1715_v9 }
0x108f   :  { %v1811_v39 = vadd.f32 %v2362_v32, %v1802_v34 }
0x1091   :  { %v1815_v43 = vadd.f32 %v1811_v39, %v2956_v38  ;;  %v2330_v38 = vld [vmem:[#allocation7 + $0x10] sm:$0xff] }
0x1092   :  { %1877 = vmatpush.bf16.msra.mxu0 %v2330_v38 }
0x1093   :  { %1828 = vmatpush.msrb.mxu2 %v1815_v43 }
0x1095   :  { %1829 = vmatpush.msrb.mxu2 %v1814_v0 }
0x1097   :  { %1830 = vmatpush.msrb.mxu2 %v1813_v45 }
0x1099   :  { %1831 = vmatpush.msrb.mxu2 %v1812_v48 }
0x109a   :  { %2272 = vmatmul.msk.f32.vlgmr.msrb.gmra.mxu2 %vm117_vm0, %v2898_v61 }
0x10a2   :  { %2273 = vmatmul.msk.f32.gmra.mxu2 %vm117_vm0, %v2905_v28 }
0x10aa   :  { %2274 = vmatmul.msk.f32.gmra.mxu2 %vm117_vm0, %v2912_v2 }
0x10b2   :  { %2275 = vmatmul.msk.f32.gmra.mxu2 %vm117_vm0, %v2919_v3  ;;  %v2334_v3 = vld [vmem:[%s3208_s8 + $0x30] sm:$0xff] }
0x10b3   :  { %1939 = vmatpush.bf16.msra.mxu1 %v2334_v3 }
0x10b7   :  { %1940 = vmatpush.bf16.msra.mxu1 %v2333_v49 }
0x10bb   :  { %1941 = vmatpush.bf16.msra.mxu1 %v2332_v50 }
0x111d   :  { %v1833_v36 = vpop.f32.mrf.mxu2 }
0x1125   :  { %v1836_v61 = vpop.f32.mrf.mxu2 }
0x1126   :  { %v1845_v47 = vpack.c.bf16 %v1836_v61, %v1833_v36 }
0x1128   :  { %2284 = vmatmul.msk.bf16.vlgmr.msra.gmra.mxu0 %vm117_vm0, %v1845_v47 }
0x112d   :  { %v1839_v28 = vpop.f32.mrf.mxu2 }
0x1135   :  { %v1842_v20 = vpop.f32.mrf.mxu2 }
0x1136   :  { %v1846_v2 = vpack.c.bf16 %v1842_v20, %v1839_v28 }
0x1138   :  { %2285 = vmatmul.msk.bf16.gmra.mxu0 %vm117_vm0, %v1846_v2 }
0x11a5   :  { %v1879_v14 = vpop.f32.mrf.mxu0 }
0x11a6   :  { %v1889_v52 = vmax.f32 %v1879_v14, 0.0 }
0x11ad   :  { %v1881_v51 = vpop.f32.mrf.mxu0 }
0x11ae   :  { %v1890_v58 = vmax.f32 %v1881_v51, 0.0 }
0x11b0   :  { %v1893_v44 = vpack.c.bf16 %v1890_v58, %v1889_v52 }
0x11b2   :  { %2310 = vmatmul.msk.bf16.vlgmr.msra.gmra.mxu1 %vm987_vm4, %v1893_v44 }
0x11b5   :  { %v1884_v59 = vpop.f32.mrf.mxu0 }
0x11b6   :  { %v1891_v54 = vmax.f32 %v1884_v59, 0.0 }
0x11bd   :  { %v1886_v16 = vpop.f32.mrf.mxu0 }
0x11be   :  { %v1892_v55 = vmax.f32 %v1886_v16, 0.0 }
0x11c0   :  { %v1894_v56 = vpack.c.bf16 %v1892_v55, %v1891_v54 }
0x11c2   :  { %2311 = vmatmul.msk.bf16.gmra.mxu1 %vm987_vm4, %v1894_v56 }
0x122f   :  { %v1943_v57 = vpop.f32.mrf.mxu1 }
0x1230   :  { %v1953_v4 = vadd.f32 %v1943_v57, %v1833_v36 }
0x1237   :  { %v1945_v62 = vpop.f32.mrf.mxu1 }
0x1238   :  { %v1954_v1 = vadd.f32 %v1945_v62, %v1836_v61 }
0x123f   :  { %v1948_v60 = vpop.f32.mrf.mxu1 }
0x1240   :  { %v1955_v46 = vadd.f32 %v1948_v60, %v1839_v28 }
0x1247   :  { %v1950_v63 = vpop.f32.mrf.mxu1 }
0x1248   :  { %v1956_v53 = vadd.f32 %v1950_v63, %v1842_v20 }
0x124a   :  { %1969 = vmatpush.msra.mxu3 %v1956_v53 }
0x124c   :  { %1970 = vmatpush.msra.mxu3 %v1955_v46 }
0x124e   :  { %1971 = vmatpush.msra.mxu3 %v1954_v1 }
0x1250   :  { %1972 = vmatpush.msra.mxu3 %v1953_v4 }
0x1251   :  { %2312 = vmatmul.msk.f32.vlgmr.msra.gmra.mxu3 %vm117_vm0, %v2503_v5 }
0x1259   :  { %2313 = vmatmul.msk.f32.gmra.mxu3 %vm117_vm0, %v2504_v7 }
0x1261   :  { %2314 = vmatmul.msk.f32.gmra.mxu3 %vm117_vm0, %v2505_v8 }
0x1269   :  { %2315 = vmatmul.msk.f32.gmra.mxu3 %vm117_vm0, %v2506_v11 }
0x12d4   :  { %v1974_v12 = vpop.f32.mrf.mxu3 }
0x12d5   :  { %v1986_v21 = vsel %vm117_vm0, %v1974_v12, 0.0 }
0x12dc   :  { %v1977_v15 = vpop.f32.mrf.mxu3 }
0x12dd   :  { %v1989_v10 = vsel %vm117_vm0, %v1977_v15, 0.0 }
0x12de   :  { %1990 = vadd.xlane.f32.xlu2 %v1989_v10 }
0x12e4   :  { %v1980_v17 = vpop.f32.mrf.mxu3 }
0x12e5   :  { %v1992_v18 = vsel %vm117_vm0, %v1980_v17, 0.0 }
0x12e6   :  { %1993 = vadd.xlane.f32.xlu1 %v1992_v18 }
0x12ec   :  { %v1983_v19 = vpop.f32.mrf.mxu3 }
0x12ed   :  { %v1995_v40 = vsel %vm117_vm0, %v1983_v19, 0.0 }
0x12ee   :  { %1996 = vadd.xlane.f32.xlu0 %v1995_v40 }
0x12f6   :  { %1987 = vadd.xlane.f32.xlu0 %v1986_v21 }
0x1351   :  { %v1991_v30 = vpop.xlane.xlu2 %1990 }
0x1352   :  { %v2006_v9 = vmul.f32 %v2004_v29, %v1991_v30 }
0x1354   :  { %v3152_v31 = vsub.f32 %v1977_v15, %v2006_v9 }
0x1356   :  { %v2014_v42 = vmul.f32 %v3152_v31, %v3152_v31 }
0x1358   :  { %v2020_v32 = vsel %vm117_vm0, %v2014_v42, 0.0 }
0x1359   :  { %v1994_v33 = vpop.xlane.xlu1 %1993  ;;  %2021 = vadd.xlane.f32.xlu0 %v2020_v32 }
0x135a   :  { %v2007_v34 = vmul.f32 %v2004_v29, %v1994_v33 }
0x135c   :  { %v3157_v37 = vsub.f32 %v1980_v17, %v2007_v34 }
0x135e   :  { %v2015_v39 = vmul.f32 %v3157_v37, %v3157_v37 }
0x1360   :  { %v2023_v41 = vsel %vm117_vm0, %v2015_v39, 0.0 }
0x1361   :  { %2024 = vadd.xlane.f32.xlu2 %v2023_v41  ;;  %v1997_v43 = vpop.xlane.xlu0 %1996 }
0x1362   :  { %v2008_v27 = vmul.f32 %v2004_v29, %v1997_v43  ;;  %v2097_v43 = vld [vmem:[%s3202_s2] sm:$0xff] }
0x1364   :  { %v2012_v0 = vsub.f32 %v1983_v19, %v2008_v27  ;;  %v2098_v27 = vld [vmem:[%s3202_s2 + $0x8] sm:$0xff] }
0x1366   :  { %v2016_v45 = vmul.f32 %v2012_v0, %v2012_v0 }
0x1368   :  { %v2026_v48 = vsel %vm117_vm0, %v2016_v45, 0.0  ;;  %v2100_v45 = vld [vmem:[%s3202_s2 + $0x18] sm:$0xff] }
0x1369   :  { %2027 = vadd.xlane.f32.xlu1 %v2026_v48  ;;  %v1988_v13 = vpop.xlane.xlu0 %1987 }
0x136a   :  { %v2005_v38 = vmul.f32 %v2004_v29, %v1988_v13 }
0x136c   :  { %v3163_v35 = vsub.f32 %v1974_v12, %v2005_v38 }
0x136e   :  { %v2013_v36 = vmul.f32 %v3163_v35, %v3163_v35 }
0x1370   :  { %v2017_v61 = vsel %vm117_vm0, %v2013_v36, 0.0 }
0x1371   :  { %2018 = vadd.xlane.f32.xlu1 %v2017_v61 }
0x13cc   :  { %v2022_v47 = vpop.xlane.xlu0 %2021 }
0x13cd   :  { %v2030_v28 = vmul.f32 %v2022_v47, %v2004_v29 }
0x13cf   :  { %v2034_v20 = vadd.f32 1e-05, %v2030_v28 }
0x13d1   :  { %2495 = vrsqrt.f32 %v2034_v20  ;;  %vm2053_vm10 = vweird.f32 %v2034_v20 }
0x13d4   :  { %v2025_v2 = vpop.xlane.xlu2 %2024 }
0x13d5   :  { %v2031_v3 = vmul.f32 %v2025_v2, %v2004_v29 }
0x13d7   :  { %v2035_v49 = vadd.f32 1e-05, %v2031_v3  ;;  %v2496_v50 = vpop.eup %2495 }
0x13d8   :  { %v2048_v14 = vmul.f32 %v2496_v50, %v2034_v20  ;;  %vm2054_vm7 = vweird.f32 %v2496_v50 }
0x13d9   :  { %2497 = vrsqrt.f32 %v2035_v49  ;;  %vm2063_vm8 = vweird.f32 %v2035_v49  ;;  %vm2055_vm12 = vmor %vm2053_vm10, %vm2054_vm7 }
0x13da   :  { %v2049_v59 = vmul.f32 %v2496_v50, %v2048_v14 }
0x13dc   :  { %v2028_v51 = vpop.xlane.xlu1 %2027  ;;  %v2050_v55 = vmul.f32 0.5, %v2049_v59 }
0x13dd   :  { %v2032_v52 = vmul.f32 %v2028_v51, %v2004_v29 }
0x13de   :  { %v2051_v46 = vsub.f32 1.5, %v2050_v55 }
0x13df   :  { %v2498_v58 = vpop.eup %2497  ;;  %v2036_v44 = vadd.f32 1e-05, %v2032_v52 }
0x13e0   :  { %v2058_v16 = vmul.f32 %v2498_v58, %v2035_v49  ;;  %vm2064_vm6 = vweird.f32 %v2498_v58  ;;  %v2052_v7 = vmul.f32 %v2496_v50, %v2051_v46 }
0x13e1   :  { %2499 = vrsqrt.f32 %v2036_v44  ;;  %vm2065_vm9 = vmor %vm2063_vm8, %vm2064_vm6  ;;  %vm2073_vm13 = vweird.f32 %v2036_v44 }
0x13e2   :  { %v2059_v54 = vmul.f32 %v2498_v58, %v2058_v16  ;;  %v2056_v10 = vsel %vm2055_vm12, %v2496_v50, %v2052_v7 }
0x13e3   :  { %v2078_v6 = vmul.f32 %v2056_v10, %v3152_v31 }
0x13e4   :  { %v2060_v56 = vmul.f32 0.5, %v2059_v54  ;;  %v2019_v57 = vpop.xlane.xlu1 %2018 }
0x13e5   :  { %v2029_v62 = vmul.f32 %v2019_v57, %v2004_v29  ;;  %v2086_v42 = vmul.f32 %v2363_v23, %v2078_v6 }
0x13e6   :  { %v2061_v60 = vsub.f32 1.5, %v2060_v56 }
0x13e7   :  { %v2500_v63 = vpop.eup %2499  ;;  %v2033_v53 = vadd.f32 1e-05, %v2029_v62 }
0x13e8   :  { %v2068_v1 = vmul.f32 %v2500_v63, %v2036_v44  ;;  %v2062_v4 = vmul.f32 %v2498_v58, %v2061_v60  ;;  %vm2074_vm11 = vweird.f32 %v2500_v63 }
0x13e9   :  { %2501 = vrsqrt.f32 %v2033_v53  ;;  %vm2075_vm14 = vmor %vm2073_vm13, %vm2074_vm11  ;;  %vm2043_vm1 = vweird.f32 %v2033_v53 }
0x13ea   :  { %v2069_v5 = vmul.f32 %v2500_v63, %v2068_v1  ;;  %v2066_v11 = vsel %vm2065_vm9, %v2498_v58, %v2062_v4 }
0x13eb   :  { %v2079_v19 = vmul.f32 %v2066_v11, %v3157_v37  ;;  %v2094_v37 = vadd.f32 %v2364_v26, %v2086_v42 }
0x13ec   :  { %v2070_v8 = vmul.f32 0.5, %v2069_v5 }
0x13ed   :  { %v2087_v29 = vmul.f32 %v2363_v23, %v2079_v19 }
0x13ee   :  { %v2071_v12 = vsub.f32 1.5, %v2070_v8 }
0x13ef   :  { %v2502_v15 = vpop.eup %2501  ;;  %v2095_v33 = vadd.f32 %v2364_v26, %v2087_v29 }
0x13f0   :  { %v2072_v17 = vmul.f32 %v2500_v63, %v2071_v12  ;;  %v2038_v18 = vmul.f32 %v2502_v15, %v2033_v53  ;;  %vm2044_vm15 = vweird.f32 %v2502_v15 }
0x13f1   :  { %vm2045_vm2 = vmor %vm2043_vm1, %vm2044_vm15 }
0x13f2   :  { %v2076_v40 = vsel %vm2075_vm14, %v2500_v63, %v2072_v17  ;;  %v2039_v21 = vmul.f32 %v2502_v15, %v2038_v18 }
0x13f3   :  { %v2080_v22 = vmul.f32 %v2076_v40, %v2012_v0  ;;  %v2099_v0 = vld [vmem:[%s3202_s2 + $0x10] sm:$0xff]  ;;  %s2626_s2 = smov 128  }
0x13f4   :  { %v2040_v24 = vmul.f32 0.5, %v2039_v21 }
0x13f5   :  { %v2088_v25 = vmul.f32 %v2363_v23, %v2080_v22 }
0x13f6   :  { %v2041_v30 = vsub.f32 1.5, %v2040_v24 }
0x13f7   :  { %v2096_v9 = vadd.f32 %v2364_v26, %v2088_v25 }
0x13f8   :  { %v2042_v32 = vmul.f32 %v2502_v15, %v2041_v30 }
0x13f9   :  { %2125 = vmatpush.msra.mxu2 %v2096_v9 }
0x13fa   :  { %v2046_v34 = vsel %vm2045_vm2, %v2502_v15, %v2042_v32 }
0x13fb   :  { %2126 = vmatpush.msra.mxu2 %v2095_v33  ;;  %v2077_v31 = vmul.f32 %v2046_v34, %v3163_v35 }
0x13fd   :  { %2127 = vmatpush.msra.mxu2 %v2094_v37  ;;  %v2085_v39 = vmul.f32 %v2363_v23, %v2077_v31 }
0x13ff   :  { %v2093_v41 = vadd.f32 %v2364_v26, %v2085_v39 }
0x1401   :  { %2128 = vmatpush.msra.mxu2 %v2093_v41 }
0x1402   :  { %2316 = vmatmul.msk.f32.vlgmr.msra.gmra.mxu2 %vm117_vm0, %v2097_v43 }
0x140a   :  { %2317 = vmatmul.msk.f32.gmra.mxu2 %vm117_vm0, %v2098_v27 }
0x1412   :  { %2318 = vmatmul.msk.f32.gmra.mxu2 %vm117_vm0, %v2099_v0 }
0x141a   :  { %2319 = vmatmul.msk.f32.gmra.mxu2 %vm117_vm0, %v2100_v45 }
0x1485   :  { %v2130_v48 = vpop.f32.mrf.mxu2 }
0x1486   :  { %2142 = vst.msk [vmem:[#allocation8] sm:$0xff] %vm117_vm0, %v2130_v48 }
0x148d   :  { %v2133_v13 = vpop.f32.mrf.mxu2 }
0x148e   :  { %2143 = vst.msk [vmem:[#allocation8 + $0x8] sm:$0xff] %vm117_vm0, %v2133_v13 }
0x1495   :  { %v2136_v38 = vpop.f32.mrf.mxu2 }
0x1496   :  { %2144 = vst.msk [vmem:[#allocation8 + $0x10] sm:$0xff] %vm117_vm0, %v2136_v38 }
0x149d   :  { %v2139_v35 = vpop.f32.mrf.mxu2 }
0x149e   :  { %2145 = vst.msk [vmem:[#allocation8 + $0x18] sm:$0xff] %vm117_vm0, %v2139_v35 }
0x149f   :  { %2158 = dma.vmem_to_hbm [thread:$0]  %s2151_s6, 512, %s2153_s20, [#allocation4], %s2626_s2, %s2626_s2, %s2627_s21  }
0x14a0   :  { %2607 = dma.done.wait [#allocation4], 512  }
0x14a1   :  { %2608 = vsyncadd [#allocation4], 4294966784 }
0x14a2   :  { %2163 = vsyncpa [#allocation3], 1 }
0x14a3   :  { %2164 = vsyncpa [#allocation6], 1 }
0x14a4   :  { %2165 = vsyncpa [#allocation4], 1 }

</bundles_post_ra>
